<compile_context>
chip_gen: v6e
topology: v6e:2x2x1
jax: 0.10.0
libtpu: 0.0.40
codegen_flags: <defaults>
</compile_context>

<pallas_src>
import functools

import jax
import jax.numpy as jnp
from jax.experimental import pallas as pl
from jax.experimental.pallas import tpu as pltpu


# ----------------------------------------------------------------------------
# Fused kernel: one row-tile of one modal.
#   scalar-prefetch: modal_ids (per-tile modal position) — used only by the
#   index_maps to pick the right slice of the stacked weights.
# ----------------------------------------------------------------------------
def _fused_sense_kernel(modal_ids_ref,                 # SMEM, unused in body
                        x_ref, w1_ref, b1_ref, w2_ref, b2_ref,
                        out_ref, dist_ref):
    del modal_ids_ref
    x = x_ref[...]                                     # (bn, D)   bf16
    # MXU matmul #1, f32 accumulation.
    h = jnp.dot(x, w1_ref[...], preferred_element_type=jnp.float32)  # (bn, Hp)
    h = jnp.maximum(h + b1_ref[...], 0.0)              # f32 bias + ReLU on VPU
    # MXU matmul #2 (operands bf16, f32 accumulation).
    o = jnp.dot(h.astype(jnp.bfloat16), w2_ref[...],
                preferred_element_type=jnp.float32)    # (bn, S)
    o = o + b2_ref[...]
    out_ref[...] = o.astype(out_ref.dtype)             # bf16 store (half HBM)

    # numerically-stable softmax in f32; store bf16.
    m = jnp.max(o, axis=-1, keepdims=True)
    e = jnp.exp(o - m)
    denom = jnp.sum(e, axis=-1, keepdims=True)
    dist_ref[...] = (e * pl.reciprocal(denom, approx=True)).astype(dist_ref.dtype)


# ----------------------------------------------------------------------------
# helpers
# ----------------------------------------------------------------------------
def _round_up(x, m):
    return ((x + m - 1) // m) * m


def _pad_axis(a, axis, target, value=0.0):
    pad = target - a.shape[axis]
    if pad <= 0:
        return a
    widths = [(0, 0)] * a.ndim
    widths[axis] = (0, pad)
    return jnp.pad(a, widths, constant_values=value)


def init_sense_for_token_params(key, token_dim, sense_dim, hid_dim):
    k1, k2 = jax.random.split(key)
    scale1 = 1.0 / jnp.sqrt(token_dim)
    scale2 = 1.0 / jnp.sqrt(hid_dim)
    return {
        "w1": jax.random.normal(k1, (token_dim, hid_dim), jnp.float32) * scale1,
        "b1": jnp.zeros((1, hid_dim), jnp.float32),
        "w2": jax.random.normal(k2, (hid_dim, sense_dim), jnp.float32) * scale2,
        "b2": jnp.zeros((1, sense_dim), jnp.float32),
    }


def prepare_joint_align_params(modals, submodule_params):
    """Pad/cast/stack per-modal weights once; cache and reuse across calls."""
    modals = tuple(modals)
    d = submodule_params[modals[0]]["w1"].shape[0]
    h = submodule_params[modals[0]]["w1"].shape[1]
    s = submodule_params[modals[0]]["w2"].shape[1]
    hp = _round_up(h, 128)     # lane-dense hidden dim (internal only)

    w1s, b1s, w2s, b2s = [], [], [], []
    for m in modals:
        p = submodule_params[m]
        # padded hidden cols: w1 pad 0, b1 pad 0 -> relu(0)=0, w2 pad rows 0
        w1s.append(_pad_axis(p["w1"], 1, hp).astype(jnp.bfloat16))
        b1s.append(_pad_axis(p["b1"].reshape(1, -1), 1, hp).astype(jnp.float32))
        w2s.append(_pad_axis(p["w2"], 0, hp).astype(jnp.bfloat16))
        b2s.append(p["b2"].reshape(1, -1).astype(jnp.float32))
    return {
        "modals": modals,
        "dims": (d, hp, s),
        "w1": jnp.stack(w1s),          # (M, D,  Hp) bf16
        "b1": jnp.stack(b1s),          # (M, 1,  Hp) f32
        "w2": jnp.stack(w2s),          # (M, Hp, S ) bf16
        "b2": jnp.stack(b2s),          # (M, 1,  S ) f32
    }


# ----------------------------------------------------------------------------
# jitted core: input pad/concat -> one fused pallas_call -> per-modal slices.
# ----------------------------------------------------------------------------
@functools.partial(jax.jit, static_argnames=("block_n",))
def _joint_align_core(x_tuple, w1_stack, b1_stack, w2_stack, b2_stack,
                      *, block_n):
    bn = block_n
    d = x_tuple[0].shape[1]
    hp = w1_stack.shape[2]
    s = w2_stack.shape[2]
    assert w1_stack.shape[1] == d, "token_dim mismatch between x and w1"

    # concat inputs, padding each modal to a multiple of block_n so every grid
    # tile belongs to exactly one modal and no tile is partial.
    x_chunks, tile_modal_pos, row_spans = [], [], []
    off = 0
    for pos, x_m in enumerate(x_tuple):
        n_m = x_m.shape[0]
        n_tiles = pl.cdiv(n_m, bn)
        n_pad = n_tiles * bn
        x_chunks.append(_pad_axis(x_m, 0, n_pad).astype(jnp.bfloat16))
        tile_modal_pos += [pos] * n_tiles
        row_spans.append((off, n_m))
        off += n_pad
        assert off % bn == 0            # each tile spans exactly one modal
    x_all = jnp.concatenate(x_chunks, axis=0)          # (total_pad, D) bf16
    total_pad = x_all.shape[0]
    modal_ids = jnp.asarray(tile_modal_pos, dtype=jnp.int32)
    num_tiles = len(tile_modal_pos)

    # VMEM budget: double-buffered block footprint with headroom, capped so it
    # also fits v7x's 64 MiB physical VMEM (v5e default scoped is only 16 MiB).
    blk_bytes = (bn * d * 2 + d * hp * 2 + hp * 4 + hp * s * 2 + s * 4
                 + 2 * bn * s * 2)
    vmem_bytes = int(min(max(4 * blk_bytes, 16 * 1024 * 1024),
                         48 * 1024 * 1024))

    out_pad, dist_pad = pl.pallas_call(
        _fused_sense_kernel,
        out_shape=(
            jax.ShapeDtypeStruct((total_pad, s), jnp.bfloat16),
            jax.ShapeDtypeStruct((total_pad, s), jnp.bfloat16),
        ),
        grid_spec=pltpu.PrefetchScalarGridSpec(
            num_scalar_prefetch=1,
            grid=(num_tiles,),
            in_specs=[
                # x: row-tiled
                pl.BlockSpec((bn, d), lambda i, mids: (i, 0)),
                # stacked weights: block index chosen by per-tile modal id;
                # leading dim squeezed -> kernel sees 2-D weight views.
                pl.BlockSpec((None, d, hp), lambda i, mids: (mids[i], 0, 0)),
                pl.BlockSpec((None, 1, hp), lambda i, mids: (mids[i], 0, 0)),
                pl.BlockSpec((None, hp, s), lambda i, mids: (mids[i], 0, 0)),
                pl.BlockSpec((None, 1, s), lambda i, mids: (mids[i], 0, 0)),
            ],
            out_specs=(
                pl.BlockSpec((bn, s), lambda i, mids: (i, 0)),
                pl.BlockSpec((bn, s), lambda i, mids: (i, 0)),
            ),
        ),
        compiler_params=pltpu.CompilerParams(
            dimension_semantics=("parallel",),
            vmem_limit_bytes=vmem_bytes),
    )(modal_ids, x_all, w1_stack, b1_stack, w2_stack, b2_stack)

    # per-modal static slices (padding rows / no padded columns -> just rows).
    out_list = [out_pad[st:st + n, :] for (st, n) in row_spans]
    dist_list = [dist_pad[st:st + n, :] for (st, n) in row_spans]
    sense_embeddings = (out_list[0] if len(out_list) == 1
                        else jnp.concatenate(out_list, axis=0))
    return tuple(out_list), tuple(dist_list), sense_embeddings


# ----------------------------------------------------------------------------
# joint_align ('token level') forward.
# ----------------------------------------------------------------------------
def joint_align_forward(batch_embeddings, modal_idx, submodule_params, *,
                        block_n=1024, prepared=None):
    """Mirrors joint_align.forward for mode == 'token level'.

    batch_embeddings: dict[str, (N_modal, token_dim) f32]
    prepared: optional cached output of prepare_joint_align_params().
    Outputs ('output'/'distribution') are bf16 (halved HBM write stream).
    """
    assert block_n % 16 == 0, "block_n must be a multiple of 16 (bf16 sublanes)"
    modals = list(batch_embeddings.keys())
    if prepared is None:
        prepared = prepare_joint_align_params(modals, submodule_params)
    assert tuple(modals) == prepared["modals"], "modal order mismatch"

    x_tuple = tuple(batch_embeddings[m] for m in modals)
    out_list, dist_list, sense_embeddings = _joint_align_core(
        x_tuple, prepared["w1"], prepared["b1"], prepared["w2"],
        prepared["b2"], block_n=block_n)

    # host-side bookkeeping (matches the PyTorch module's glue code).
    embedding_dict, centroid_dict, distribution_dict = {}, {}, {}
    label_list, segments = [], []
    last = 0
    for m, o_m, d_m in zip(modals, out_list, dist_list):
        n_m = o_m.shape[0]
        # token-level submodule has no separate 'sense embeddings' key, so
        # embedding_dict falls back to the output (matches .get(..., output)).
        embedding_dict[m] = o_m
        centroid_dict[m] = o_m
        distribution_dict[m] = d_m
        label_list.append(jnp.full((n_m,), modal_idx[m], dtype=jnp.int32))
        segments.append((last, last + n_m))
        last += n_m

    labels = (label_list[0] if len(label_list) == 1
              else jnp.concatenate(label_list))

    return {
        "sense_embeddings": sense_embeddings,
        "labels": labels,
        "segments": segments,
        "embedding_dict": embedding_dict,
        "centroid_dict": centroid_dict,
        "distribution_dict": distribution_dict,
    }


# ----------------------------------------------------------------------------
def _reference_modal(x, p):
    h = jnp.maximum(x @ p["w1"] + p["b1"], 0.0)
    o = h @ p["w2"] + p["b2"]
    return o, jax.nn.softmax(o, axis=-1)


if __name__ == "__main__":
    token_dim, sense_dim, hid_dim = 32, 32, 64
    modals = ["text", "image"]
    modal_idx = {"text": 0, "image": 1}
    n_per_modal = {"text": 512, "image": 256}

    root = jax.random.PRNGKey(0)
    k_text_x, k_img_x, k_text_p, k_img_p = jax.random.split(root, 4)

    batch_embeddings = {
        "text": jax.random.normal(k_text_x, (n_per_modal["text"], token_dim),
                                  jnp.float32),
        "image": jax.random.normal(k_img_x, (n_per_modal["image"], token_dim),
                                   jnp.float32),
    }
    submodule_params = {
        "text": init_sense_for_token_params(k_text_p, token_dim, sense_dim,
                                            hid_dim),
        "image": init_sense_for_token_params(k_img_p, token_dim, sense_dim,
                                             hid_dim),
    }

    # weight stacks prepared once and reused across calls.
    prepared = prepare_joint_align_params(modals, submodule_params)

    out = joint_align_forward(batch_embeddings, modal_idx, submodule_params,
                              block_n=1024, prepared=prepared)

    jax.block_until_ready(out["sense_embeddings"])
    jax.block_until_ready(out["labels"])
    for m in modals:
        jax.block_until_ready(out["distribution_dict"][m])

    # sanity checks
    total_n = sum(n_per_modal.values())
    assert out["sense_embeddings"].shape == (total_n, sense_dim)
    assert out["labels"].shape == (total_n,)
    assert out["segments"] == [(0, 512), (512, 768)]

    for m in modals:
        o_ref, d_ref = _reference_modal(batch_embeddings[m],
                                        submodule_params[m])
        o_k = out["centroid_dict"][m].astype(jnp.float32)
        d_k = out["distribution_dict"][m].astype(jnp.float32)
        # bf16 MXU operands + bf16 stores -> loose tolerances vs f32 reference
        assert jnp.allclose(o_k, o_ref, atol=2e-1), "output mismatch"
        assert jnp.allclose(d_k, d_ref, atol=5e-2), "distribution mismatch"
        assert jnp.allclose(jnp.sum(d_k, axis=-1), 1.0, atol=2e-2)

    print("KERNEL_OK")
</pallas_src>

<mosaic_0001>
module attributes {stable_mosaic.version = 11 : i64} {
  func.func @_fused_sense_kernel(%arg0: i32, %arg1: memref<2xi32, #tpu.memory_space<smem>>, %arg2: memref<1024x32xbf16, #tpu.memory_space<vmem>>, %arg3: memref<1x32x128xbf16, #tpu.memory_space<vmem>>, %arg4: memref<1x1x128xf32, #tpu.memory_space<vmem>>, %arg5: memref<1x128x32xbf16, #tpu.memory_space<vmem>>, %arg6: memref<1x1x32xf32, #tpu.memory_space<vmem>>, %arg7: memref<1024x32xbf16, #tpu.memory_space<vmem>>, %arg8: memref<1024x32xbf16, #tpu.memory_space<vmem>>) attributes {dimension_semantics = [#tpu.dimension_semantics<parallel>], iteration_bounds = array<i64: 2>, scalar_prefetch = 1 : i64, scratch_operands = 0 : i64, tpu.core_type = #tpu.core_type<tc>, window_params = [{transform_indices = @transform_0, window_bounds = array<i64: 1024, 32>}, {transform_indices = @transform_1, window_bounds = array<i64: 1, 32, 128>}, {transform_indices = @transform_2, window_bounds = array<i64: 1, 1, 128>}, {transform_indices = @transform_3, window_bounds = array<i64: 1, 128, 32>}, {transform_indices = @transform_4, window_bounds = array<i64: 1, 1, 32>}, {transform_indices = @transform_5, window_bounds = array<i64: 1024, 32>}, {transform_indices = @transform_6, window_bounds = array<i64: 1024, 32>}]} {
    %c0 = arith.constant 0 : index
    %c0_0 = arith.constant 0 : index
    %0 = vector.load %arg2[%c0, %c0_0] : memref<1024x32xbf16, #tpu.memory_space<vmem>>, vector<1024x32xbf16>
    %c0_1 = arith.constant 0 : index
    %c0_2 = arith.constant 0 : index
    %c0_3 = arith.constant 0 : index
    %1 = vector.load %arg3[%c0_1, %c0_2, %c0_3] : memref<1x32x128xbf16, #tpu.memory_space<vmem>>, vector<1x32x128xbf16>
    %2 = vector.shape_cast %1 : vector<1x32x128xbf16> to vector<32x128xbf16>
    %cst = arith.constant dense<0.000000e+00> : vector<1024x128xf32>
    %3 = tpu.matmul %0, %2, %cst {dimension_numbers = #tpu.dot_dimension_numbers<[1], [0], [0], [1], [0, 0, 1, 1], [], []>} : vector<1024x32xbf16>, vector<32x128xbf16>, vector<1024x128xf32> -> vector<1024x128xf32>
    %c0_4 = arith.constant 0 : index
    %c0_5 = arith.constant 0 : index
    %c0_6 = arith.constant 0 : index
    %4 = vector.load %arg4[%c0_4, %c0_5, %c0_6] : memref<1x1x128xf32, #tpu.memory_space<vmem>>, vector<1x1x128xf32>
    %5 = vector.shape_cast %4 : vector<1x1x128xf32> to vector<1x128xf32>
    %6 = vector.broadcast %5 : vector<1x128xf32> to vector<1024x128xf32>
    %7 = arith.addf %3, %6 : vector<1024x128xf32>
    %cst_7 = arith.constant 0.000000e+00 : f32
    %8 = vector.broadcast %cst_7 : f32 to vector<1024x128xf32>
    %9 = arith.maximumf %7, %8 : vector<1024x128xf32>
    %10 = arith.truncf %9 : vector<1024x128xf32> to vector<1024x128xbf16>
    %c0_8 = arith.constant 0 : index
    %c0_9 = arith.constant 0 : index
    %c0_10 = arith.constant 0 : index
    %11 = vector.load %arg5[%c0_8, %c0_9, %c0_10] : memref<1x128x32xbf16, #tpu.memory_space<vmem>>, vector<1x128x32xbf16>
    %12 = vector.shape_cast %11 : vector<1x128x32xbf16> to vector<128x32xbf16>
    %cst_11 = arith.constant dense<0.000000e+00> : vector<1024x32xf32>
    %13 = tpu.matmul %10, %12, %cst_11 {dimension_numbers = #tpu.dot_dimension_numbers<[1], [0], [0], [1], [0, 0, 1, 1], [], []>} : vector<1024x128xbf16>, vector<128x32xbf16>, vector<1024x32xf32> -> vector<1024x32xf32>
    %c0_12 = arith.constant 0 : index
    %c0_13 = arith.constant 0 : index
    %c0_14 = arith.constant 0 : index
    %14 = vector.load %arg6[%c0_12, %c0_13, %c0_14] : memref<1x1x32xf32, #tpu.memory_space<vmem>>, vector<1x1x32xf32>
    %15 = vector.shape_cast %14 : vector<1x1x32xf32> to vector<1x32xf32>
    %16 = vector.broadcast %15 : vector<1x32xf32> to vector<1024x32xf32>
    %17 = arith.addf %13, %16 : vector<1024x32xf32>
    %18 = arith.truncf %17 : vector<1024x32xf32> to vector<1024x32xbf16>
    %c0_15 = arith.constant 0 : index
    %c0_16 = arith.constant 0 : index
    %19 = vector.load %arg7[%c0_15, %c0_16] : memref<1024x32xbf16, #tpu.memory_space<vmem>>, vector<1024x32xbf16>
    tpu.vector_store %arg7[%c0_15, %c0_16], %18 {strides = array<i32>} : memref<1024x32xbf16, #tpu.memory_space<vmem>>, vector<1024x32xbf16>,
    %cst_17 = arith.constant dense<0xFF800000> : vector<1024xf32>
    %20 = vector.multi_reduction <maximumf>, %17, %cst_17 [1] : vector<1024x32xf32> to vector<1024xf32>
    %21 = vector.shape_cast %20 : vector<1024xf32> to vector<1024x1xf32>
    %22 = vector.broadcast %21 : vector<1024x1xf32> to vector<1024x32xf32>
    %23 = arith.subf %17, %22 : vector<1024x32xf32>
    %24 = math.exp %23 : vector<1024x32xf32>
    %cst_18 = arith.constant dense<0.000000e+00> : vector<1024xf32>
    %25 = vector.multi_reduction <add>, %24, %cst_18 [1] : vector<1024x32xf32> to vector<1024xf32>
    %26 = vector.shape_cast %25 : vector<1024xf32> to vector<1024x1xf32>
    %27 = tpu.reciprocal %26 {approx = true} : vector<1024x1xf32> -> vector<1024x1xf32>
    %28 = vector.broadcast %27 : vector<1024x1xf32> to vector<1024x32xf32>
    %29 = arith.mulf %24, %28 : vector<1024x32xf32>
    %30 = arith.truncf %29 : vector<1024x32xf32> to vector<1024x32xbf16>
    %c0_19 = arith.constant 0 : index
    %c0_20 = arith.constant 0 : index
    %31 = vector.load %arg8[%c0_19, %c0_20] : memref<1024x32xbf16, #tpu.memory_space<vmem>>, vector<1024x32xbf16>
    tpu.vector_store %arg8[%c0_19, %c0_20], %30 {strides = array<i32>} : memref<1024x32xbf16, #tpu.memory_space<vmem>>, vector<1024x32xbf16>,
    return
  }
  func.func @transform_0(%arg0: i32, %arg1: memref<2xi32, #tpu.memory_space<smem>>) -> (i32, i32) {
    %c0_i32 = arith.constant 0 : i32
    %c0_i32_0 = arith.constant 0 : i32
    return %arg0, %c0_i32 : i32, i32
  }
  func.func @transform_1(%arg0: i32, %arg1: memref<2xi32, #tpu.memory_space<smem>>) -> (i32, i32, i32) {
    %0 = arith.index_cast %arg0 : i32 to index
    %1 = memref.load %arg1[%0] : memref<2xi32, #tpu.memory_space<smem>>
    %c0_i32 = arith.constant 0 : i32
    %c0_i32_0 = arith.constant 0 : i32
    %c0_i32_1 = arith.constant 0 : i32
    return %1, %c0_i32, %c0_i32_0 : i32, i32, i32
  }
  func.func @transform_2(%arg0: i32, %arg1: memref<2xi32, #tpu.memory_space<smem>>) -> (i32, i32, i32) {
    %0 = arith.index_cast %arg0 : i32 to index
    %1 = memref.load %arg1[%0] : memref<2xi32, #tpu.memory_space<smem>>
    %c0_i32 = arith.constant 0 : i32
    %c0_i32_0 = arith.constant 0 : i32
    %c0_i32_1 = arith.constant 0 : i32
    return %1, %c0_i32, %c0_i32_0 : i32, i32, i32
  }
  func.func @transform_3(%arg0: i32, %arg1: memref<2xi32, #tpu.memory_space<smem>>) -> (i32, i32, i32) {
    %0 = arith.index_cast %arg0 : i32 to index
    %1 = memref.load %arg1[%0] : memref<2xi32, #tpu.memory_space<smem>>
    %c0_i32 = arith.constant 0 : i32
    %c0_i32_0 = arith.constant 0 : i32
    %c0_i32_1 = arith.constant 0 : i32
    return %1, %c0_i32, %c0_i32_0 : i32, i32, i32
  }
  func.func @transform_4(%arg0: i32, %arg1: memref<2xi32, #tpu.memory_space<smem>>) -> (i32, i32, i32) {
    %0 = arith.index_cast %arg0 : i32 to index
    %1 = memref.load %arg1[%0] : memref<2xi32, #tpu.memory_space<smem>>
    %c0_i32 = arith.constant 0 : i32
    %c0_i32_0 = arith.constant 0 : i32
    %c0_i32_1 = arith.constant 0 : i32
    return %1, %c0_i32, %c0_i32_0 : i32, i32, i32
  }
  func.func @transform_5(%arg0: i32, %arg1: memref<2xi32, #tpu.memory_space<smem>>) -> (i32, i32) {
    %c0_i32 = arith.constant 0 : i32
    %c0_i32_0 = arith.constant 0 : i32
    return %arg0, %c0_i32 : i32, i32
  }
  func.func @transform_6(%arg0: i32, %arg1: memref<2xi32, #tpu.memory_space<smem>>) -> (i32, i32) {
    %c0_i32 = arith.constant 0 : i32
    %c0_i32_0 = arith.constant 0 : i32
    return %arg0, %c0_i32 : i32, i32
  }
}

</mosaic_0001>

<bundles_post_ra>
// kernel: _joint_align_core.1
= control target key start
LH: loop header
LB: loop body
LE: loop exit
PB: predicated region body
PF: predicated region fallthrough
CT: control target
= control target key end

     0   :  { %s9843_s0 = inlined_call_operand.vmem [shape: s32[2], index: 0, kind: input, shape index: {}]   ;;  %s9844_s1 = inlined_call_operand.vmem [shape: bf16[2048,32], index: 1, kind: input, shape index: {}]   ;;  %s9845_s2 = inlined_call_operand.vmem [shape: bf16[2,32,128], index: 2, kind: input, shape index: {}]   ;;  %s9846_s3 = inlined_call_operand.vmem [shape: f32[2,1,128], index: 3, kind: input, shape index: {}]   ;;  %s9847_s4 = inlined_call_operand.vmem [shape: bf16[2,128,32], index: 4, kind: input, shape index: {}]   ;;  %s9848_s5 = inlined_call_operand.vmem [shape: f32[2,1,32], index: 5, kind: input, shape index: {}]   ;;  %s9849_s6 = inlined_call_operand.vmem [shape: bf16[2048,32], index: 6, kind: output, shape index: {0}]   ;;  %s9850_s7 = inlined_call_operand.vmem [shape: bf16[2048,32], index: 7, kind: output, shape index: {1}]  }
   0x1   :  { %s13_s26 = sshll.u32 %s9843_s0, 4  ;;  %s14_s26 = int_to_ptr.vmem [resolvable:$true] %s13_s26 }
   0x2   :  { %s6909_s27 = scalar_lea.vmem %s14_s26, 16  ;;  %p6914_p1 = scmp.lt.s32.totalorder %s14_s26, %s14_s26 }
   0x3   :  { %p6910_p0 = scmp.ne.s32.totalorder %s14_s26, %s6909_s27  ;;  %p6915_p2 = scmp.lt.s32.totalorder %s6909_s27, %s6909_s27 }
   0x5   :  { %p6916_p3 = por %p6915_p2, %p6914_p1 }
   0x7   :  { %p6917_p4 = pnand %p6916_p3, %p6910_p0 }
   0x9   :  { %6920 = shalt.err (!%p6917_p4)  }
   0xa   :  { %s6931_s28 = smov [#allocation3]  }
   0xb   :  { %16 = dma.vmem_to_smem %s14_s26, 16, %s6931_s28, [#allocation2] }
   0xc   :  { %6925 = dma.done.wait [#allocation2], 16 }
   0xd   :  { %6926 = vsyncadd [#allocation2], 4294967280 }
   0xe   :  { %18 = sfence }
   0xf   :  { %s6975_s29 = smov 0  }
  0x10 LB: > { %s6981_s0 = sadd.s32 4294967295, %s6929_s29   ;;  %p5215_p5 = scmp.ge.s32.totalorder %s6929_s29, 1  ;;  %s6929_s29 = sphi %s6975_s29, %s24_s29  }
  0x11   : > { %p275_p6 = scmp.lt.s32.totalorder %s6929_s29, 3 }
  0x13   : > { %p276_p7 = pnand %p5215_p5, %p275_p6 }
  0x15   : > { %279 = sbr.rel (%p276_p7) target bundleno = 1126 (0x466), region = 40 }
  0x1a   : > { %s336_s30 = sld [smem:[#allocation3 + %s6981_s0]]  ;;  %s5216_s8 = sshll.u32 %s6981_s0, 7  ;;  %vm844_vm0 = vcmask 261120   ;;  %vm2902_vm1 = vcmask 257024  }
  0x1b   : > { %p331_p8 = scmp.lt.s32.totalorder %s5216_s8, 255  ;;  %s348_s9 = sld [smem:[#allocation3 + %s6981_s0]] }
  0x1c   : > { %s343_s22 = sld [smem:[#allocation3 + %s6981_s0]] }
  0x1d   : > { %s10359_s8 = smov (!%p331_p8, %s5216_s8), 255  ;;  %s355_s26 = sld [smem:[#allocation3 + %s6981_s0]] }
  0x1e   : > { %s6988_s10 = sshll.u32 %s10359_s8, 2 }
  0x1f   : > { %s6994_s13 = scalar_lea.vmem %s9844_s1, %s6988_s10 }
  0x20   : > { %p337_p9 = scmp.lt.s32.totalorder %s336_s30, 1  ;;  %v6323_v0 = vld [vmem:[%s6994_s13] sm:$0xff]   ;;  %v6324_v4 = vld [vmem:[%s6994_s13 + $0x8] sm:$0xff]   ;;  %v6326_v5 = vld [vmem:[%s6994_s13 + $0x10] sm:$0xff]  }
  0x21   : > { %p349_p10 = scmp.lt.s32.totalorder %s348_s9, 1  ;;  %6024 = vmatprep.mubr.msk.bf16.mxu0 %vm844_vm0, %v6323_v0  ;;  %v6327_v7 = vld [vmem:[%s6994_s13 + $0x18] sm:$0xff]   ;;  %v6328_v8 = vld [vmem:[%s6994_s13 + $0x20] sm:$0xff]   ;;  %v6329_v10 = vld [vmem:[%s6994_s13 + $0x28] sm:$0xff]  }
  0x22   : > { %s10361_s30 = smov (!%p337_p9, %s336_s30), 1  ;;  %v6330_v11 = vld [vmem:[%s6994_s13 + $0x30] sm:$0xff]   ;;  %v6331_v13 = vld [vmem:[%s6994_s13 + $0x38] sm:$0xff]   ;;  %v6332_v14 = vld [vmem:[%s6994_s13 + $0x40] sm:$0xff]   ;;  %p344_p11 = scmp.lt.s32.totalorder %s343_s22, 1 }
  0x23   : > { %s10363_s9 = smov (!%p349_p10, %s348_s9), 1  ;;  %s5624_s14 = sshll.u32 %s10361_s30, 4  ;;  %v6333_v16 = vld [vmem:[%s6994_s13 + $0x48] sm:$0xff]   ;;  %v6335_v17 = vld [vmem:[%s6994_s13 + $0x50] sm:$0xff]   ;;  %v6336_v19 = vld [vmem:[%s6994_s13 + $0x58] sm:$0xff]  }
  0x24   : > { %s341_s17 = scalar_lea.vmem %s9845_s2, %s5624_s14  ;;  %s5625_s18 = sshll.u32 %s10363_s9, 6  ;;  %v6337_v20 = vld [vmem:[%s6994_s13 + $0x60] sm:$0xff]   ;;  %v6338_v21 = vld [vmem:[%s6994_s13 + $0x68] sm:$0xff]   ;;  %v6339_v22 = vld [vmem:[%s6994_s13 + $0x70] sm:$0xff]  }
  0x25   : > { %v6321_v1 = vld [vmem:[%s341_s17 + $0x8] sm:$0xff]   ;;  %s7004_s21 = scalar_lea.vmem %s9847_s4, %s5625_s18  ;;  %v6322_v2 = vld [vmem:[%s341_s17] sm:$0xff]   ;;  %v6340_v23 = vld [vmem:[%s6994_s13 + $0x78] sm:$0xff]   ;;  %s10365_s22 = smov (!%p344_p11, %s343_s22), 1 }
  0x26   : > { %6020 = vmatprep.subr.bf16.mxu0 %v6321_v1  ;;  %v6325_v3 = vld [vmem:[%s7004_s21 + $0x38] sm:$0xff]   ;;  %v6334_v6 = vld [vmem:[%s7004_s21 + $0x30] sm:$0xff]   ;;  %v6343_v9 = vld [vmem:[%s7004_s21 + $0x28] sm:$0xff]   ;;  %s7129_s25 = scalar_lea.vmem %s9846_s3, %s10365_s22  ;;  %p356_p12 = scmp.lt.s32.totalorder %s355_s26, 1 }
  0x27   : > { %6021 = vmatpush3.bf16.msra.mxu0 %v6321_v1  ;;  %6296 = vmatprep.subr.bf16.mxu1 %v6325_v3  ;;  %v6352_v12 = vld [vmem:[%s7004_s21 + $0x20] sm:$0xff]   ;;  %v6361_v15 = vld [vmem:[%s7004_s21 + $0x18] sm:$0xff]   ;;  %v6370_v18 = vld [vmem:[%s7004_s21 + $0x10] sm:$0xff]   ;;  %s7285_s9 = scalar_lea.vmem %s9849_s6, %s6988_s10 }
  0x28   : > { %6022 = vmatprep.subr.bf16.mxu0 %v6322_v2  ;;  %6304 = vmatpush3.bf16.msra.mxu1 %v6325_v3  ;;  %v6341_v24 = vld [vmem:[%s6994_s13 + $0x80] sm:$0xff]   ;;  %v6342_v25 = vld [vmem:[%s6994_s13 + $0x88] sm:$0xff]   ;;  %v6344_v26 = vld [vmem:[%s6994_s13 + $0x90] sm:$0xff]   ;;  %s10367_s26 = smov (!%p356_p12, %s355_s26), 1 }
  0x29   : > { %6297 = vmatprep.subr.bf16.mxu1 %v6334_v6  ;;  %v6379_v27 = vld [vmem:[%s7004_s21 + $0x8] sm:$0xff]   ;;  %v6345_v28 = vld [vmem:[%s6994_s13 + $0x98] sm:$0xff]   ;;  %v6346_v29 = vld [vmem:[%s6994_s13 + $0xa0] sm:$0xff]   ;;  %s7269_s0 = scalar_lea.vmem %s9848_s5, %s10367_s26 }
  0x2a   : > { %v6347_v30 = vld [vmem:[%s6994_s13 + $0xa8] sm:$0xff]   ;;  %v6348_v31 = vld [vmem:[%s6994_s13 + $0xb0] sm:$0xff]   ;;  %v6384_v32 = vld [vmem:[%s7004_s21] sm:$0xff]  }
  0x2b   : > { %6023 = vmatpush3.bf16.msra.mxu0 %v6322_v2  ;;  %v6349_v33 = vld [vmem:[%s6994_s13 + $0xb8] sm:$0xff]   ;;  %v6350_v34 = vld [vmem:[%s6994_s13 + $0xc0] sm:$0xff]   ;;  %v6351_v35 = vld [vmem:[%s6994_s13 + $0xc8] sm:$0xff]  }
  0x2c   : > { %6152 = vmatprep.subr.bf16.mxu0 %v6325_v3  ;;  %6305 = vmatpush3.bf16.msra.mxu1 %v6334_v6  ;;  %v6353_v36 = vld [vmem:[%s6994_s13 + $0xd0] sm:$0xff]   ;;  %v6354_v37 = vld [vmem:[%s6994_s13 + $0xd8] sm:$0xff]   ;;  %v6355_v38 = vld [vmem:[%s6994_s13 + $0xe0] sm:$0xff]  }
  0x2d   : > { %6298 = vmatprep.subr.bf16.mxu1 %v6343_v9  ;;  %v6356_v39 = vld [vmem:[%s6994_s13 + $0xe8] sm:$0xff]   ;;  %v6357_v40 = vld [vmem:[%s6994_s13 + $0xf0] sm:$0xff]   ;;  %v6358_v41 = vld [vmem:[%s6994_s13 + $0xf8] sm:$0xff]  }
  0x2e   : > { %6025 = vmatmul.mubr.msk.bf16.vlgmr.msra.gmra.mxu0 %vm844_vm0, %v6324_v4  ;;  %v6359_v42 = vld [vmem:[%s6994_s13 + $0x100] sm:$0xff]   ;;  %v6360_v43 = vld [vmem:[%s6994_s13 + $0x108] sm:$0xff]   ;;  %v6362_v44 = vld [vmem:[%s6994_s13 + $0x110] sm:$0xff]  }
  0x2f   : > { %6153 = vmatpush3.bf16.msra.mxu0 %v6325_v3  ;;  %6028 = vmatprep.mubr.msk.bf16.mxu0 %vm844_vm0, %v6326_v5  ;;  %v6363_v45 = vld [vmem:[%s6994_s13 + $0x118] sm:$0xff]   ;;  %v6364_v46 = vld [vmem:[%s6994_s13 + $0x120] sm:$0xff]   ;;  %v6365_v47 = vld [vmem:[%s6994_s13 + $0x128] sm:$0xff]  }
  0x30   : > { %6154 = vmatprep.subr.bf16.mxu0 %v6334_v6  ;;  %6306 = vmatpush3.bf16.msra.mxu1 %v6343_v9  ;;  %v6366_v48 = vld [vmem:[%s6994_s13 + $0x130] sm:$0xff]   ;;  %v6367_v49 = vld [vmem:[%s6994_s13 + $0x138] sm:$0xff]   ;;  %v6368_v50 = vld [vmem:[%s6994_s13 + $0x140] sm:$0xff]  }
  0x31   : > { %6299 = vmatprep.subr.bf16.mxu1 %v6352_v12  ;;  %v6369_v51 = vld [vmem:[%s6994_s13 + $0x148] sm:$0xff]   ;;  %v6371_v52 = vld [vmem:[%s6994_s13 + $0x150] sm:$0xff]   ;;  %v6372_v53 = vld [vmem:[%s6994_s13 + $0x158] sm:$0xff]  }
  0x32   : > { %v6373_v54 = vld [vmem:[%s6994_s13 + $0x160] sm:$0xff]   ;;  %v6374_v55 = vld [vmem:[%s6994_s13 + $0x168] sm:$0xff]   ;;  %v6375_v56 = vld [vmem:[%s6994_s13 + $0x170] sm:$0xff]  }
  0x33   : > { %6155 = vmatpush3.bf16.msra.mxu0 %v6334_v6  ;;  %v6376_v57 = vld [vmem:[%s6994_s13 + $0x178] sm:$0xff]   ;;  %v6377_v58 = vld [vmem:[%s6994_s13 + $0x180] sm:$0xff]   ;;  %v6378_v59 = vld [vmem:[%s6994_s13 + $0x188] sm:$0xff]  }
  0x34   : > { %6156 = vmatprep.subr.bf16.mxu0 %v6343_v9  ;;  %6307 = vmatpush3.bf16.msra.mxu1 %v6352_v12  ;;  %v6380_v60 = vld [vmem:[%s6994_s13 + $0x190] sm:$0xff]   ;;  %v6381_v0 = vld [vmem:[%s6994_s13 + $0x198] sm:$0xff]   ;;  %v6382_v1 = vld [vmem:[%s6994_s13 + $0x1a0] sm:$0xff]  }
  0x35   : > { %6300 = vmatprep.subr.bf16.mxu1 %v6361_v15  ;;  %v7133_v5 = vld [vmem:[%s7129_s25] ss:$0 sm:$0xff] }
  0x36   : > { %6029 = vmatmul.mubr.msk.bf16.gmra.mxu0 %vm844_vm0, %v6327_v7  ;;  %v6383_v7 = vld [vmem:[%s6994_s13 + $0x1a8] sm:$0xff]  }
  0x37   : > { %6032 = vmatprep.mubr.msk.bf16.mxu0 %vm844_vm0, %v6328_v8  ;;  %6157 = vmatpush3.bf16.msra.mxu0 %v6343_v9 }
  0x38   : > { %6158 = vmatprep.subr.bf16.mxu0 %v6352_v12  ;;  %6308 = vmatpush3.bf16.msra.mxu1 %v6361_v15 }
  0x39   : > { %6301 = vmatprep.subr.bf16.mxu1 %v6370_v18 }
  0x3b   : > { %6159 = vmatpush3.bf16.msra.mxu0 %v6352_v12 }
  0x3c   : > { %6160 = vmatprep.subr.bf16.mxu0 %v6361_v15  ;;  %6309 = vmatpush3.bf16.msra.mxu1 %v6370_v18 }
  0x3d   : > { %6302 = vmatprep.subr.bf16.mxu1 %v6379_v27 }
  0x3e   : > { %6033 = vmatmul.mubr.msk.bf16.gmra.mxu0 %vm844_vm0, %v6329_v10  ;;  %v6385_v10 = vld [vmem:[%s6994_s13 + $0x1b0] sm:$0xff]  }
  0x3f   : > { %6036 = vmatprep.mubr.msk.bf16.mxu0 %vm844_vm0, %v6330_v11  ;;  %6161 = vmatpush3.bf16.msra.mxu0 %v6361_v15 }
  0x40   : > { %6162 = vmatprep.subr.bf16.mxu0 %v6370_v18  ;;  %6310 = vmatpush3.bf16.msra.mxu1 %v6379_v27 }
  0x41   : > { %6303 = vmatprep.subr.bf16.mxu1 %v6384_v32 }
  0x43   : > { %6163 = vmatpush3.bf16.msra.mxu0 %v6370_v18 }
  0x44   : > { %6164 = vmatprep.subr.bf16.mxu0 %v6379_v27  ;;  %6311 = vmatpush3.bf16.msra.mxu1 %v6384_v32 }
  0x46   : > { %6037 = vmatmul.mubr.msk.bf16.gmra.mxu0 %vm844_vm0, %v6331_v13 }
  0x47   : > { %6040 = vmatprep.mubr.msk.bf16.mxu0 %vm844_vm0, %v6332_v14  ;;  %6165 = vmatpush3.bf16.msra.mxu0 %v6379_v27 }
  0x48   : > { %6166 = vmatprep.subr.bf16.mxu0 %v6384_v32 }
  0x4b   : > { %6167 = vmatpush3.bf16.msra.mxu0 %v6384_v32 }
  0x4e   : > { %6041 = vmatmul.mubr.msk.bf16.gmra.mxu0 %vm844_vm0, %v6333_v16 }
  0x4f   : > { %6044 = vmatprep.mubr.msk.bf16.mxu0 %vm844_vm0, %v6335_v17 }
  0x56   : > { %6045 = vmatmul.mubr.msk.bf16.gmra.mxu0 %vm844_vm0, %v6336_v19 }
  0x57   : > { %6048 = vmatprep.mubr.msk.bf16.mxu0 %vm844_vm0, %v6337_v20 }
  0x5e   : > { %6049 = vmatmul.mubr.msk.bf16.gmra.mxu0 %vm844_vm0, %v6338_v21 }
  0x5f   : > { %6052 = vmatprep.mubr.msk.bf16.mxu0 %vm844_vm0, %v6339_v22 }
  0x66   : > { %6053 = vmatmul.mubr.msk.bf16.gmra.mxu0 %vm844_vm0, %v6340_v23  ;;  %v6386_v23 = vld [vmem:[%s6994_s13 + $0x1b8] sm:$0xff]  }
  0x67   : > { %6056 = vmatprep.mubr.msk.bf16.mxu0 %vm844_vm0, %v6341_v24 }
  0x6e   : > { %6057 = vmatmul.mubr.msk.bf16.gmra.mxu0 %vm844_vm0, %v6342_v25 }
  0x6f   : > { %6060 = vmatprep.mubr.msk.bf16.mxu0 %vm844_vm0, %v6344_v26  ;;  %v6387_v26 = vld [vmem:[%s6994_s13 + $0x1c0] sm:$0xff]  }
  0x76   : > { %6061 = vmatmul.mubr.msk.bf16.gmra.mxu0 %vm844_vm0, %v6345_v28 }
  0x77   : > { %6064 = vmatprep.mubr.msk.bf16.mxu0 %vm844_vm0, %v6346_v29 }
  0x7e   : > { %6065 = vmatmul.mubr.msk.bf16.gmra.mxu0 %vm844_vm0, %v6347_v30 }
  0x7f   : > { %6068 = vmatprep.mubr.msk.bf16.mxu0 %vm844_vm0, %v6348_v31 }
  0x86   : > { %6069 = vmatmul.mubr.msk.bf16.gmra.mxu0 %vm844_vm0, %v6349_v33 }
  0x87   : > { %6072 = vmatprep.mubr.msk.bf16.mxu0 %vm844_vm0, %v6350_v34 }
  0x8e   : > { %6073 = vmatmul.mubr.msk.bf16.gmra.mxu0 %vm844_vm0, %v6351_v35 }
  0x8f   : > { %6076 = vmatprep.mubr.msk.bf16.mxu0 %vm844_vm0, %v6353_v36 }
  0x96   : > { %6077 = vmatmul.mubr.msk.bf16.gmra.mxu0 %vm844_vm0, %v6354_v37 }
  0x97   : > { %6080 = vmatprep.mubr.msk.bf16.mxu0 %vm844_vm0, %v6355_v38 }
  0x9e   : > { %6081 = vmatmul.mubr.msk.bf16.gmra.mxu0 %vm844_vm0, %v6356_v39  ;;  %v6388_v39 = vld [vmem:[%s6994_s13 + $0x1c8] sm:$0xff]  }
  0x9f   : > { %6084 = vmatprep.mubr.msk.bf16.mxu0 %vm844_vm0, %v6357_v40 }
  0xa6   : > { %6085 = vmatmul.mubr.msk.bf16.gmra.mxu0 %vm844_vm0, %v6358_v41 }
  0xa7   : > { %6088 = vmatprep.mubr.msk.bf16.mxu0 %vm844_vm0, %v6359_v42  ;;  %v6389_v42 = vld [vmem:[%s6994_s13 + $0x1d0] sm:$0xff]  }
  0xae   : > { %6089 = vmatmul.mubr.msk.bf16.gmra.mxu0 %vm844_vm0, %v6360_v43 }
  0xaf   : > { %6092 = vmatprep.mubr.msk.bf16.mxu0 %vm844_vm0, %v6362_v44 }
  0xb6   : > { %6093 = vmatmul.mubr.msk.bf16.gmra.mxu0 %vm844_vm0, %v6363_v45 }
  0xb7   : > { %6096 = vmatprep.mubr.msk.bf16.mxu0 %vm844_vm0, %v6364_v46 }
  0xbe   : > { %6097 = vmatmul.mubr.msk.bf16.gmra.mxu0 %vm844_vm0, %v6365_v47 }
  0xbf   : > { %6100 = vmatprep.mubr.msk.bf16.mxu0 %vm844_vm0, %v6366_v48 }
  0xc6   : > { %6101 = vmatmul.mubr.msk.bf16.gmra.mxu0 %vm844_vm0, %v6367_v49 }
  0xc7   : > { %6104 = vmatprep.mubr.msk.bf16.mxu0 %vm844_vm0, %v6368_v50 }
  0xce   : > { %6105 = vmatmul.mubr.msk.bf16.gmra.mxu0 %vm844_vm0, %v6369_v51 }
  0xcf   : > { %6108 = vmatprep.mubr.msk.bf16.mxu0 %vm844_vm0, %v6371_v52 }
  0xd6   : > { %6109 = vmatmul.mubr.msk.bf16.gmra.mxu0 %vm844_vm0, %v6372_v53 }
  0xd7   : > { %6112 = vmatprep.mubr.msk.bf16.mxu0 %vm844_vm0, %v6373_v54 }
  0xde   : > { %6113 = vmatmul.mubr.msk.bf16.gmra.mxu0 %vm844_vm0, %v6374_v55  ;;  %v6390_v55 = vld [vmem:[%s6994_s13 + $0x1d8] sm:$0xff]  }
  0xdf   : > { %6116 = vmatprep.mubr.msk.bf16.mxu0 %vm844_vm0, %v6375_v56 }
  0xe6   : > { %6117 = vmatmul.mubr.msk.bf16.gmra.mxu0 %vm844_vm0, %v6376_v57 }
  0xe7   : > { %6120 = vmatprep.mubr.msk.bf16.mxu0 %vm844_vm0, %v6377_v58  ;;  %v6391_v58 = vld [vmem:[%s6994_s13 + $0x1e0] sm:$0xff]  }
  0xee   : > { %v7113_v61 = vpop.f32.mrf.mxu0  ;;  %6121 = vmatmul.mubr.msk.bf16.gmra.mxu0 %vm844_vm0, %v6378_v59 }
  0xef   : > { %6124 = vmatprep.mubr.msk.bf16.mxu0 %vm844_vm0, %v6380_v60 }
  0xf0   : > { %v7117_v62 = vpop.f32.mrf.mxu0 }
  0xf2   : > { %v7119_v63 = vpop.f32.mrf.mxu0 }
  0xf4   : > { %v7123_v2 = vpop.f32.mrf.mxu0 }
  0xf6   : > { %v6030_v3 = vpop.f32.mrf.mxu0  ;;  %6125 = vmatmul.mubr.msk.bf16.gmra.mxu0 %vm844_vm0, %v6381_v0 }
  0xf7   : > { %6128 = vmatprep.mubr.msk.bf16.mxu0 %vm844_vm0, %v6382_v1  ;;  %v1096_v11 = vadd.f32 %v6030_v3, %v7133_v5 }
  0xf8   : > { %v1087_v4 = vpop.f32.mrf.mxu0 }
  0xf9   : > { %v1088_v8 = vadd.f32 %v7133_v5, %v1087_v4  ;;  %v1588_v18 = vmax.f32 %v1096_v11, 0.0 }
  0xfa   : > { %v6031_v6 = vpop.f32.mrf.mxu0 }
  0xfb   : > { %v1099_v9 = vadd.f32 %v6031_v6, %v7133_v5  ;;  %v1586_v16 = vmax.f32 %v1088_v8, 0.0 }
  0xfc   : > { %v1090_v12 = vpop.f32.mrf.mxu0 }
  0xfd   : > { %v1091_v13 = vadd.f32 %v7133_v5, %v1090_v12  ;;  %v1589_v14 = vmax.f32 %v1099_v9, 0.0  ;;  %v6392_v12 = vld [vmem:[%s6994_s13 + $0x1e8] sm:$0xff]  }
  0xfe   : > { %v6034_v15 = vpop.f32.mrf.mxu0  ;;  %6129 = vmatmul.mubr.msk.bf16.gmra.mxu0 %vm844_vm0, %v6383_v7 }
  0xff   : > { %v1587_v17 = vmax.f32 %v1091_v13, 0.0  ;;  %6132 = vmatprep.mubr.msk.bf16.mxu0 %vm844_vm0, %v6385_v10  ;;  %v1713_v21 = vpack.c.bf16 %v1589_v14, %v1588_v18  ;;  %v1112_v27 = vadd.f32 %v6034_v15, %v7133_v5  ;;  %v6393_v15 = vld [vmem:[%s6994_s13 + $0x1f0] sm:$0xff]   ;;  %v1075_v18 = vadd.f32 %v7133_v5, %v7123_v2  ;;  %v6394_v2 = vld [vmem:[%s6994_s13 + $0x1f8] sm:$0xff]   ;;  %s8881_s13 = scalar_lea.vmem %s9850_s7, %s6988_s10 }
 0x100   : > { %v1103_v19 = vpop.f32.mrf.mxu0 }
 0x101   : > { %v1712_v20 = vpack.c.bf16 %v1587_v17, %v1586_v16  ;;  %v1104_v24 = vadd.f32 %v7133_v5, %v1103_v19  ;;  %v1592_v34 = vmax.f32 %v1112_v27, 0.0  ;;  %v1583_v27 = vmax.f32 %v1075_v18, 0.0 }
 0x102   : > { %v6035_v22 = vpop.f32.mrf.mxu0 }
 0x103   : > { %v1115_v25 = vadd.f32 %v6035_v22, %v7133_v5  ;;  %6172 = vmatprep.mubr.bf16.mxu1 %v1712_v20  ;;  %v1590_v32 = vmax.f32 %v1104_v24, 0.0  ;;  %v1072_v22 = vadd.f32 %v7133_v5, %v7117_v62  ;;  %v1083_v62 = vadd.f32 %v7119_v63, %v7133_v5 }
 0x104   : > { %v1106_v28 = vpop.f32.mrf.mxu0  ;;  %6173 = vmatmul.mubr.bf16.vlgmr.msra.gmra.mxu1 %v1713_v21 }
 0x105   : > { %v1107_v29 = vadd.f32 %v7133_v5, %v1106_v28  ;;  %v1593_v30 = vmax.f32 %v1115_v25, 0.0 }
 0x106   : > { %v6038_v31 = vpop.f32.mrf.mxu0  ;;  %6133 = vmatmul.mubr.msk.bf16.gmra.mxu0 %vm844_vm0, %v6386_v23 }
 0x107   : > { %v1591_v33 = vmax.f32 %v1107_v29, 0.0  ;;  %6136 = vmatprep.mubr.msk.bf16.mxu0 %vm844_vm0, %v6387_v26  ;;  %v1715_v37 = vpack.c.bf16 %v1593_v30, %v1592_v34  ;;  %v1128_v43 = vadd.f32 %v6038_v31, %v7133_v5  ;;  %v1582_v31 = vmax.f32 %v1072_v22, 0.0 }
 0x108   : > { %v1119_v35 = vpop.f32.mrf.mxu0 }
 0x109   : > { %v1714_v36 = vpack.c.bf16 %v1591_v33, %v1590_v32  ;;  %v1120_v40 = vadd.f32 %v7133_v5, %v1119_v35  ;;  %v1596_v50 = vmax.f32 %v1128_v43, 0.0  ;;  %v1585_v43 = vmax.f32 %v1083_v62, 0.0 }
 0x10a   : > { %v6039_v38 = vpop.f32.mrf.mxu0 }
 0x10b   : > { %v1131_v41 = vadd.f32 %v6039_v38, %v7133_v5  ;;  %6176 = vmatprep.mubr.bf16.mxu1 %v1714_v36  ;;  %v1594_v48 = vmax.f32 %v1120_v40, 0.0  ;;  %v1080_v38 = vadd.f32 %v7113_v61, %v7133_v5 }
 0x10c   : > { %v1122_v44 = vpop.f32.mrf.mxu0  ;;  %6177 = vmatmul.mubr.bf16.gmra.mxu1 %v1715_v37  ;;  %v1710_v37 = vpack.c.bf16 %v1583_v27, %v1582_v31 }
 0x10d   : > { %v1123_v45 = vadd.f32 %v7133_v5, %v1122_v44  ;;  %v1597_v46 = vmax.f32 %v1131_v41, 0.0 }
 0x10e   : > { %v6042_v47 = vpop.f32.mrf.mxu0  ;;  %6137 = vmatmul.mubr.msk.bf16.gmra.mxu0 %vm844_vm0, %v6388_v39 }
 0x10f   : > { %v1595_v49 = vmax.f32 %v1123_v45, 0.0  ;;  %6140 = vmatprep.mubr.msk.bf16.mxu0 %vm844_vm0, %v6389_v42  ;;  %v1717_v53 = vpack.c.bf16 %v1597_v46, %v1596_v50  ;;  %v1144_v59 = vadd.f32 %v6042_v47, %v7133_v5  ;;  %v1584_v46 = vmax.f32 %v1080_v38, 0.0 }
 0x110   : > { %v1135_v51 = vpop.f32.mrf.mxu0 }
 0x111   : > { %v1716_v52 = vpack.c.bf16 %v1595_v49, %v1594_v48  ;;  %v1136_v56 = vadd.f32 %v7133_v5, %v1135_v51  ;;  %v1600_v7 = vmax.f32 %v1144_v59, 0.0  ;;  %v1711_v61 = vpack.c.bf16 %v1585_v43, %v1584_v46 }
 0x112   : > { %v6043_v54 = vpop.f32.mrf.mxu0 }
 0x113   : > { %v1147_v57 = vadd.f32 %v6043_v54, %v7133_v5  ;;  %6180 = vmatprep.mubr.bf16.mxu1 %v1716_v52  ;;  %v1598_v4 = vmax.f32 %v1136_v56, 0.0 }
 0x114   : > { %v1138_v60 = vpop.f32.mrf.mxu0  ;;  %6181 = vmatmul.mubr.bf16.gmra.mxu1 %v1717_v53 }
 0x115   : > { %v1139_v0 = vadd.f32 %v7133_v5, %v1138_v60  ;;  %v1601_v1 = vmax.f32 %v1147_v57, 0.0 }
 0x116   : > { %v6046_v3 = vpop.f32.mrf.mxu0  ;;  %6141 = vmatmul.mubr.msk.bf16.gmra.mxu0 %vm844_vm0, %v6390_v55 }
 0x117   : > { %v1599_v6 = vmax.f32 %v1139_v0, 0.0  ;;  %6144 = vmatprep.mubr.msk.bf16.mxu0 %vm844_vm0, %v6391_v58  ;;  %v1719_v10 = vpack.c.bf16 %v1601_v1, %v1600_v7  ;;  %v1160_v16 = vadd.f32 %v6046_v3, %v7133_v5 }
 0x118   : > { %v1151_v8 = vpop.f32.mrf.mxu0 }
 0x119   : > { %v1718_v9 = vpack.c.bf16 %v1599_v6, %v1598_v4  ;;  %v1152_v13 = vadd.f32 %v7133_v5, %v1151_v8  ;;  %v1604_v25 = vmax.f32 %v1160_v16, 0.0 }
 0x11a   : > { %v6047_v11 = vpop.f32.mrf.mxu0 }
 0x11b   : > { %v1163_v14 = vadd.f32 %v6047_v11, %v7133_v5  ;;  %6184 = vmatprep.mubr.bf16.mxu1 %v1718_v9  ;;  %v1602_v23 = vmax.f32 %v1152_v13, 0.0 }
 0x11c   : > { %v1154_v17 = vpop.f32.mrf.mxu0  ;;  %6185 = vmatmul.mubr.bf16.gmra.mxu1 %v1719_v10 }
 0x11d   : > { %v1155_v19 = vadd.f32 %v7133_v5, %v1154_v17  ;;  %v1605_v20 = vmax.f32 %v1163_v14, 0.0 }
 0x11e   : > { %v6050_v21 = vpop.f32.mrf.mxu0  ;;  %6145 = vmatmul.mubr.msk.bf16.gmra.mxu0 %vm844_vm0, %v6392_v12 }
 0x11f   : > { %v1603_v24 = vmax.f32 %v1155_v19, 0.0  ;;  %6148 = vmatprep.mubr.msk.bf16.mxu0 %vm844_vm0, %v6393_v15  ;;  %v1721_v29 = vpack.c.bf16 %v1605_v20, %v1604_v25  ;;  %v1176_v34 = vadd.f32 %v6050_v21, %v7133_v5 }
 0x120   : > { %v1167_v26 = vpop.f32.mrf.mxu0 }
 0x121   : > { %v1720_v28 = vpack.c.bf16 %v1603_v24, %v1602_v23  ;;  %v1168_v32 = vadd.f32 %v7133_v5, %v1167_v26  ;;  %v1608_v44 = vmax.f32 %v1176_v34, 0.0 }
 0x122   : > { %v6051_v30 = vpop.f32.mrf.mxu0 }
 0x123   : > { %v1179_v33 = vadd.f32 %v6051_v30, %v7133_v5  ;;  %6188 = vmatprep.mubr.bf16.mxu1 %v1720_v28  ;;  %v1606_v41 = vmax.f32 %v1168_v32, 0.0 }
 0x124   : > { %v1170_v35 = vpop.f32.mrf.mxu0  ;;  %6189 = vmatmul.mubr.bf16.gmra.mxu1 %v1721_v29 }
 0x125   : > { %v1171_v36 = vadd.f32 %v7133_v5, %v1170_v35  ;;  %v1609_v39 = vmax.f32 %v1179_v33, 0.0 }
 0x126   : > { %v6054_v40 = vpop.f32.mrf.mxu0  ;;  %6149 = vmatmul.mubr.msk.bf16.gmra.mxu0 %vm844_vm0, %v6394_v2 }
 0x127   : > { %v1607_v42 = vmax.f32 %v1171_v36, 0.0  ;;  %6168 = vmatprep.mubr.bf16.mxu0 %v1710_v37  ;;  %v1723_v47 = vpack.c.bf16 %v1609_v39, %v1608_v44  ;;  %v1192_v51 = vadd.f32 %v6054_v40, %v7133_v5 }
 0x128   : > { %v1183_v63 = vpop.f32.mrf.mxu0 }
 0x129   : > { %v1722_v45 = vpack.c.bf16 %v1607_v42, %v1606_v41  ;;  %v1184_v49 = vadd.f32 %v7133_v5, %v1183_v63  ;;  %v1612_v58 = vmax.f32 %v1192_v51, 0.0 }
 0x12a   : > { %v6055_v48 = vpop.f32.mrf.mxu0 }
 0x12b   : > { %v1195_v50 = vadd.f32 %v6055_v48, %v7133_v5  ;;  %6192 = vmatprep.mubr.bf16.mxu1 %v1722_v45  ;;  %v1610_v56 = vmax.f32 %v1184_v49, 0.0 }
 0x12c   : > { %v1186_v52 = vpop.f32.mrf.mxu0  ;;  %6193 = vmatmul.mubr.bf16.gmra.mxu1 %v1723_v47 }
 0x12d   : > { %v1187_v53 = vadd.f32 %v7133_v5, %v1186_v52  ;;  %v1613_v54 = vmax.f32 %v1195_v50, 0.0 }
 0x12e   : > { %v6058_v55 = vpop.f32.mrf.mxu0  ;;  %6169 = vmatmul.mubr.bf16.vlgmr.msra.gmra.mxu0 %v1711_v61 }
 0x12f   : > { %v1611_v57 = vmax.f32 %v1187_v53, 0.0  ;;  %v1725_v0 = vpack.c.bf16 %v1613_v54, %v1612_v58  ;;  %v1208_v6 = vadd.f32 %v6058_v55, %v7133_v5 }
 0x130   : > { %v1199_v59 = vpop.f32.mrf.mxu0 }
 0x131   : > { %v1724_v60 = vpack.c.bf16 %v1611_v57, %v1610_v56  ;;  %v1200_v3 = vadd.f32 %v7133_v5, %v1199_v59  ;;  %v1616_v13 = vmax.f32 %v1208_v6, 0.0 }
 0x132   : > { %v6059_v1 = vpop.f32.mrf.mxu0 }
 0x133   : > { %v1211_v4 = vadd.f32 %v6059_v1, %v7133_v5  ;;  %6196 = vmatprep.mubr.bf16.mxu1 %v1724_v60  ;;  %v1614_v11 = vmax.f32 %v1200_v3, 0.0 }
 0x134   : > { %v1202_v7 = vpop.f32.mrf.mxu0  ;;  %6197 = vmatmul.mubr.bf16.gmra.mxu1 %v1725_v0 }
 0x135   : > { %v1203_v8 = vadd.f32 %v7133_v5, %v1202_v7  ;;  %v1617_v9 = vmax.f32 %v1211_v4, 0.0 }
 0x136   : > { %v6062_v10 = vpop.f32.mrf.mxu0 }
 0x137   : > { %v1615_v12 = vmax.f32 %v1203_v8, 0.0  ;;  %v1727_v16 = vpack.c.bf16 %v1617_v9, %v1616_v13  ;;  %v1224_v20 = vadd.f32 %v6062_v10, %v7133_v5 }
 0x138   : > { %v1215_v14 = vpop.f32.mrf.mxu0 }
 0x139   : > { %v1726_v15 = vpack.c.bf16 %v1615_v12, %v1614_v11  ;;  %v1216_v18 = vadd.f32 %v7133_v5, %v1215_v14  ;;  %v1620_v27 = vmax.f32 %v1224_v20, 0.0 }
 0x13a   : > { %v6063_v17 = vpop.f32.mrf.mxu0 }
 0x13b   : > { %v1227_v19 = vadd.f32 %v6063_v17, %v7133_v5  ;;  %6200 = vmatprep.mubr.bf16.mxu1 %v1726_v15  ;;  %v1618_v25 = vmax.f32 %v1216_v18, 0.0 }
 0x13c   : > { %v1218_v21 = vpop.f32.mrf.mxu0  ;;  %6201 = vmatmul.mubr.bf16.gmra.mxu1 %v1727_v16 }
 0x13d   : > { %v1219_v22 = vadd.f32 %v7133_v5, %v1218_v21  ;;  %v1621_v23 = vmax.f32 %v1227_v19, 0.0 }
 0x13e   : > { %v6066_v24 = vpop.f32.mrf.mxu0 }
 0x13f   : > { %v1619_v26 = vmax.f32 %v1219_v22, 0.0  ;;  %v1729_v30 = vpack.c.bf16 %v1621_v23, %v1620_v27  ;;  %v1240_v33 = vadd.f32 %v6066_v24, %v7133_v5 }
 0x140   : > { %v1231_v28 = vpop.f32.mrf.mxu0 }
 0x141   : > { %v1728_v29 = vpack.c.bf16 %v1619_v26, %v1618_v25  ;;  %v1232_v31 = vadd.f32 %v7133_v5, %v1231_v28  ;;  %v1624_v39 = vmax.f32 %v1240_v33, 0.0 }
 0x142   : > { %v6067_v2 = vpop.f32.mrf.mxu0 }
 0x143   : > { %v1243_v32 = vadd.f32 %v6067_v2, %v7133_v5  ;;  %6204 = vmatprep.mubr.bf16.mxu1 %v1728_v29  ;;  %v1622_v37 = vmax.f32 %v1232_v31, 0.0 }
 0x144   : > { %v1234_v62 = vpop.f32.mrf.mxu0  ;;  %6205 = vmatmul.mubr.bf16.gmra.mxu1 %v1729_v30 }
 0x145   : > { %v1235_v34 = vadd.f32 %v7133_v5, %v1234_v62  ;;  %v1625_v35 = vmax.f32 %v1243_v32, 0.0 }
 0x146   : > { %v6070_v36 = vpop.f32.mrf.mxu0 }
 0x147   : > { %v1623_v38 = vmax.f32 %v1235_v34, 0.0  ;;  %v1731_v42 = vpack.c.bf16 %v1625_v35, %v1624_v39  ;;  %v1256_v45 = vadd.f32 %v6070_v36, %v7133_v5 }
 0x148   : > { %v1247_v40 = vpop.f32.mrf.mxu0 }
 0x149   : > { %v1730_v41 = vpack.c.bf16 %v1623_v38, %v1622_v37  ;;  %v1248_v44 = vadd.f32 %v7133_v5, %v1247_v40  ;;  %v1628_v51 = vmax.f32 %v1256_v45, 0.0 }
 0x14a   : > { %v6071_v43 = vpop.f32.mrf.mxu0 }
 0x14b   : > { %v1259_v63 = vadd.f32 %v6071_v43, %v7133_v5  ;;  %6208 = vmatprep.mubr.bf16.mxu1 %v1730_v41  ;;  %v1626_v50 = vmax.f32 %v1248_v44, 0.0 }
 0x14c   : > { %v1250_v46 = vpop.f32.mrf.mxu0  ;;  %6209 = vmatmul.mubr.bf16.gmra.mxu1 %v1731_v42 }
 0x14d   : > { %v1251_v47 = vadd.f32 %v7133_v5, %v1250_v46  ;;  %v1629_v48 = vmax.f32 %v1259_v63, 0.0 }
 0x14e   : > { %v6074_v49 = vpop.f32.mrf.mxu0 }
 0x14f   : > { %v1627_v61 = vmax.f32 %v1251_v47, 0.0  ;;  %v1733_v54 = vpack.c.bf16 %v1629_v48, %v1628_v51  ;;  %v1272_v58 = vadd.f32 %v6074_v49, %v7133_v5 }
 0x150   : > { %v1263_v52 = vpop.f32.mrf.mxu0 }
 0x151   : > { %v1732_v53 = vpack.c.bf16 %v1627_v61, %v1626_v50  ;;  %v1264_v56 = vadd.f32 %v7133_v5, %v1263_v52  ;;  %v1632_v6 = vmax.f32 %v1272_v58, 0.0 }
 0x152   : > { %v6075_v55 = vpop.f32.mrf.mxu0 }
 0x153   : > { %v1275_v57 = vadd.f32 %v6075_v55, %v7133_v5  ;;  %6212 = vmatprep.mubr.bf16.mxu1 %v1732_v53  ;;  %v1630_v3 = vmax.f32 %v1264_v56, 0.0 }
 0x154   : > { %v1266_v59 = vpop.f32.mrf.mxu0  ;;  %6213 = vmatmul.mubr.bf16.gmra.mxu1 %v1733_v54 }
 0x155   : > { %v1267_v60 = vadd.f32 %v7133_v5, %v1266_v59  ;;  %v1633_v0 = vmax.f32 %v1275_v57, 0.0 }
 0x156   : > { %v6078_v1 = vpop.f32.mrf.mxu0 }
 0x157   : > { %v1631_v4 = vmax.f32 %v1267_v60, 0.0  ;;  %v1735_v9 = vpack.c.bf16 %v1633_v0, %v1632_v6  ;;  %v1288_v13 = vadd.f32 %v6078_v1, %v7133_v5 }
 0x158   : > { %v1279_v7 = vpop.f32.mrf.mxu0 }
 0x159   : > { %v1734_v8 = vpack.c.bf16 %v1631_v4, %v1630_v3  ;;  %v1280_v11 = vadd.f32 %v7133_v5, %v1279_v7  ;;  %v1636_v20 = vmax.f32 %v1288_v13, 0.0 }
 0x15a   : > { %v6079_v10 = vpop.f32.mrf.mxu0 }
 0x15b   : > { %v1291_v12 = vadd.f32 %v6079_v10, %v7133_v5  ;;  %6216 = vmatprep.mubr.bf16.mxu1 %v1734_v8  ;;  %v1634_v18 = vmax.f32 %v1280_v11, 0.0 }
 0x15c   : > { %v1282_v14 = vpop.f32.mrf.mxu0  ;;  %6217 = vmatmul.mubr.bf16.gmra.mxu1 %v1735_v9 }
 0x15d   : > { %v1283_v15 = vadd.f32 %v7133_v5, %v1282_v14  ;;  %v1637_v16 = vmax.f32 %v1291_v12, 0.0 }
 0x15e   : > { %v6082_v17 = vpop.f32.mrf.mxu0 }
 0x15f   : > { %v1635_v19 = vmax.f32 %v1283_v15, 0.0  ;;  %v1737_v23 = vpack.c.bf16 %v1637_v16, %v1636_v20  ;;  %v1304_v27 = vadd.f32 %v6082_v17, %v7133_v5 }
 0x160   : > { %v1295_v21 = vpop.f32.mrf.mxu0 }
 0x161   : > { %v1736_v22 = vpack.c.bf16 %v1635_v19, %v1634_v18  ;;  %v1296_v25 = vadd.f32 %v7133_v5, %v1295_v21  ;;  %v1640_v33 = vmax.f32 %v1304_v27, 0.0 }
 0x162   : > { %v6083_v24 = vpop.f32.mrf.mxu0 }
 0x163   : > { %v1307_v26 = vadd.f32 %v6083_v24, %v7133_v5  ;;  %6220 = vmatprep.mubr.bf16.mxu1 %v1736_v22  ;;  %v1638_v31 = vmax.f32 %v1296_v25, 0.0 }
 0x164   : > { %v1298_v28 = vpop.f32.mrf.mxu0  ;;  %6221 = vmatmul.mubr.bf16.gmra.mxu1 %v1737_v23 }
 0x165   : > { %v1299_v29 = vadd.f32 %v7133_v5, %v1298_v28  ;;  %v1641_v30 = vmax.f32 %v1307_v26, 0.0 }
 0x166   : > { %v6086_v2 = vpop.f32.mrf.mxu0 }
 0x167   : > { %v1639_v32 = vmax.f32 %v1299_v29, 0.0  ;;  %v1739_v35 = vpack.c.bf16 %v1641_v30, %v1640_v33  ;;  %v1320_v39 = vadd.f32 %v6086_v2, %v7133_v5 }
 0x168   : > { %v1311_v62 = vpop.f32.mrf.mxu0 }
 0x169   : > { %v1738_v34 = vpack.c.bf16 %v1639_v32, %v1638_v31  ;;  %v1312_v37 = vadd.f32 %v7133_v5, %v1311_v62  ;;  %v1644_v45 = vmax.f32 %v1320_v39, 0.0 }
 0x16a   : > { %v6087_v36 = vpop.f32.mrf.mxu0 }
 0x16b   : > { %v1323_v38 = vadd.f32 %v6087_v36, %v7133_v5  ;;  %6224 = vmatprep.mubr.bf16.mxu1 %v1738_v34  ;;  %v1642_v44 = vmax.f32 %v1312_v37, 0.0 }
 0x16c   : > { %v1314_v40 = vpop.f32.mrf.mxu0  ;;  %6225 = vmatmul.mubr.bf16.gmra.mxu1 %v1739_v35 }
 0x16d   : > { %v1315_v41 = vadd.f32 %v7133_v5, %v1314_v40  ;;  %v1645_v42 = vmax.f32 %v1323_v38, 0.0 }
 0x16e   : > { %v6090_v43 = vpop.f32.mrf.mxu0 }
 0x16f   : > { %v1643_v63 = vmax.f32 %v1315_v41, 0.0  ;;  %v1741_v48 = vpack.c.bf16 %v1645_v42, %v1644_v45  ;;  %v1336_v51 = vadd.f32 %v6090_v43, %v7133_v5 }
 0x170   : > { %v1327_v46 = vpop.f32.mrf.mxu0 }
 0x171   : > { %v1740_v47 = vpack.c.bf16 %v1643_v63, %v1642_v44  ;;  %v1328_v50 = vadd.f32 %v7133_v5, %v1327_v46  ;;  %v1648_v58 = vmax.f32 %v1336_v51, 0.0 }
 0x172   : > { %v6091_v49 = vpop.f32.mrf.mxu0 }
 0x173   : > { %v1339_v61 = vadd.f32 %v6091_v49, %v7133_v5  ;;  %6228 = vmatprep.mubr.bf16.mxu1 %v1740_v47  ;;  %v1646_v56 = vmax.f32 %v1328_v50, 0.0 }
 0x174   : > { %v1330_v52 = vpop.f32.mrf.mxu0  ;;  %6229 = vmatmul.mubr.bf16.gmra.mxu1 %v1741_v48 }
 0x175   : > { %v1331_v53 = vadd.f32 %v7133_v5, %v1330_v52  ;;  %v1649_v54 = vmax.f32 %v1339_v61, 0.0 }
 0x176   : > { %v6094_v55 = vpop.f32.mrf.mxu0 }
 0x177   : > { %v1647_v57 = vmax.f32 %v1331_v53, 0.0  ;;  %v1743_v0 = vpack.c.bf16 %v1649_v54, %v1648_v58  ;;  %v1352_v6 = vadd.f32 %v6094_v55, %v7133_v5 }
 0x178   : > { %v1343_v59 = vpop.f32.mrf.mxu0 }
 0x179   : > { %v1742_v60 = vpack.c.bf16 %v1647_v57, %v1646_v56  ;;  %v1344_v3 = vadd.f32 %v7133_v5, %v1343_v59  ;;  %v1652_v13 = vmax.f32 %v1352_v6, 0.0 }
 0x17a   : > { %v6095_v1 = vpop.f32.mrf.mxu0 }
 0x17b   : > { %v1355_v4 = vadd.f32 %v6095_v1, %v7133_v5  ;;  %6232 = vmatprep.mubr.bf16.mxu1 %v1742_v60  ;;  %v1650_v11 = vmax.f32 %v1344_v3, 0.0 }
 0x17c   : > { %v1346_v7 = vpop.f32.mrf.mxu0  ;;  %6233 = vmatmul.mubr.bf16.gmra.mxu1 %v1743_v0 }
 0x17d   : > { %v1347_v8 = vadd.f32 %v7133_v5, %v1346_v7  ;;  %v1653_v9 = vmax.f32 %v1355_v4, 0.0 }
 0x17e   : > { %v6098_v10 = vpop.f32.mrf.mxu0 }
 0x17f   : > { %v1651_v12 = vmax.f32 %v1347_v8, 0.0  ;;  %v1745_v16 = vpack.c.bf16 %v1653_v9, %v1652_v13  ;;  %v1368_v20 = vadd.f32 %v6098_v10, %v7133_v5 }
 0x180   : > { %v1359_v14 = vpop.f32.mrf.mxu0 }
 0x181   : > { %v1744_v15 = vpack.c.bf16 %v1651_v12, %v1650_v11  ;;  %v1360_v18 = vadd.f32 %v7133_v5, %v1359_v14  ;;  %v1656_v27 = vmax.f32 %v1368_v20, 0.0 }
 0x182   : > { %v6099_v17 = vpop.f32.mrf.mxu0 }
 0x183   : > { %v1371_v19 = vadd.f32 %v6099_v17, %v7133_v5  ;;  %6236 = vmatprep.mubr.bf16.mxu1 %v1744_v15  ;;  %v1654_v25 = vmax.f32 %v1360_v18, 0.0 }
 0x184   : > { %v1362_v21 = vpop.f32.mrf.mxu0  ;;  %6237 = vmatmul.mubr.bf16.gmra.mxu1 %v1745_v16 }
 0x185   : > { %v1363_v22 = vadd.f32 %v7133_v5, %v1362_v21  ;;  %v1657_v23 = vmax.f32 %v1371_v19, 0.0 }
 0x186   : > { %v6102_v24 = vpop.f32.mrf.mxu0 }
 0x187   : > { %v1655_v26 = vmax.f32 %v1363_v22, 0.0  ;;  %v1747_v30 = vpack.c.bf16 %v1657_v23, %v1656_v27  ;;  %v1384_v33 = vadd.f32 %v6102_v24, %v7133_v5 }
 0x188   : > { %v1375_v28 = vpop.f32.mrf.mxu0 }
 0x189   : > { %v1746_v29 = vpack.c.bf16 %v1655_v26, %v1654_v25  ;;  %v1376_v31 = vadd.f32 %v7133_v5, %v1375_v28  ;;  %v1660_v39 = vmax.f32 %v1384_v33, 0.0 }
 0x18a   : > { %v6103_v2 = vpop.f32.mrf.mxu0 }
 0x18b   : > { %v1387_v32 = vadd.f32 %v6103_v2, %v7133_v5  ;;  %6240 = vmatprep.mubr.bf16.mxu1 %v1746_v29  ;;  %v1658_v37 = vmax.f32 %v1376_v31, 0.0 }
 0x18c   : > { %v1378_v62 = vpop.f32.mrf.mxu0  ;;  %6241 = vmatmul.mubr.bf16.gmra.mxu1 %v1747_v30 }
 0x18d   : > { %v1379_v34 = vadd.f32 %v7133_v5, %v1378_v62  ;;  %v1661_v35 = vmax.f32 %v1387_v32, 0.0 }
 0x18e   : > { %v6106_v36 = vpop.f32.mrf.mxu0 }
 0x18f   : > { %v1659_v38 = vmax.f32 %v1379_v34, 0.0  ;;  %v1749_v42 = vpack.c.bf16 %v1661_v35, %v1660_v39  ;;  %v1400_v45 = vadd.f32 %v6106_v36, %v7133_v5 }
 0x190   : > { %v1391_v40 = vpop.f32.mrf.mxu0 }
 0x191   : > { %v1748_v41 = vpack.c.bf16 %v1659_v38, %v1658_v37  ;;  %v1392_v44 = vadd.f32 %v7133_v5, %v1391_v40  ;;  %v1664_v51 = vmax.f32 %v1400_v45, 0.0 }
 0x192   : > { %v6107_v43 = vpop.f32.mrf.mxu0 }
 0x193   : > { %v1403_v63 = vadd.f32 %v6107_v43, %v7133_v5  ;;  %6244 = vmatprep.mubr.bf16.mxu1 %v1748_v41  ;;  %v1662_v50 = vmax.f32 %v1392_v44, 0.0 }
 0x194   : > { %v1394_v46 = vpop.f32.mrf.mxu0  ;;  %6245 = vmatmul.mubr.bf16.gmra.mxu1 %v1749_v42 }
 0x195   : > { %v1395_v47 = vadd.f32 %v7133_v5, %v1394_v46  ;;  %v1665_v48 = vmax.f32 %v1403_v63, 0.0 }
 0x196   : > { %v6110_v49 = vpop.f32.mrf.mxu0 }
 0x197   : > { %v1663_v61 = vmax.f32 %v1395_v47, 0.0  ;;  %v1751_v54 = vpack.c.bf16 %v1665_v48, %v1664_v51  ;;  %v1416_v58 = vadd.f32 %v6110_v49, %v7133_v5 }
 0x198   : > { %v1407_v52 = vpop.f32.mrf.mxu0 }
 0x199   : > { %v1750_v53 = vpack.c.bf16 %v1663_v61, %v1662_v50  ;;  %v1408_v56 = vadd.f32 %v7133_v5, %v1407_v52  ;;  %v1668_v6 = vmax.f32 %v1416_v58, 0.0 }
 0x19a   : > { %v6111_v55 = vpop.f32.mrf.mxu0 }
 0x19b   : > { %v1419_v57 = vadd.f32 %v6111_v55, %v7133_v5  ;;  %6248 = vmatprep.mubr.bf16.mxu1 %v1750_v53  ;;  %v1666_v3 = vmax.f32 %v1408_v56, 0.0 }
 0x19c   : > { %v1410_v59 = vpop.f32.mrf.mxu0  ;;  %6249 = vmatmul.mubr.bf16.gmra.mxu1 %v1751_v54 }
 0x19d   : > { %v1411_v60 = vadd.f32 %v7133_v5, %v1410_v59  ;;  %v1669_v0 = vmax.f32 %v1419_v57, 0.0 }
 0x19e   : > { %v6114_v1 = vpop.f32.mrf.mxu0 }
 0x19f   : > { %v1667_v4 = vmax.f32 %v1411_v60, 0.0  ;;  %v1753_v9 = vpack.c.bf16 %v1669_v0, %v1668_v6  ;;  %v1432_v13 = vadd.f32 %v6114_v1, %v7133_v5 }
 0x1a0   : > { %v1423_v7 = vpop.f32.mrf.mxu0 }
 0x1a1   : > { %v1752_v8 = vpack.c.bf16 %v1667_v4, %v1666_v3  ;;  %v1424_v11 = vadd.f32 %v7133_v5, %v1423_v7  ;;  %v1672_v20 = vmax.f32 %v1432_v13, 0.0  ;;  %v7272_v3 = vld [vmem:[%s7269_s0] ss:$0 sm:$0xff] }
 0x1a2   : > { %v6115_v10 = vpop.f32.mrf.mxu0 }
 0x1a3   : > { %v1435_v12 = vadd.f32 %v6115_v10, %v7133_v5  ;;  %6252 = vmatprep.mubr.bf16.mxu1 %v1752_v8  ;;  %v1670_v18 = vmax.f32 %v1424_v11, 0.0 }
 0x1a4   : > { %v1426_v14 = vpop.f32.mrf.mxu0  ;;  %6253 = vmatmul.mubr.bf16.gmra.mxu1 %v1753_v9 }
 0x1a5   : > { %v1427_v15 = vadd.f32 %v7133_v5, %v1426_v14  ;;  %v1673_v16 = vmax.f32 %v1435_v12, 0.0 }
 0x1a6   : > { %v6118_v17 = vpop.f32.mrf.mxu0 }
 0x1a7   : > { %v1671_v19 = vmax.f32 %v1427_v15, 0.0  ;;  %v1755_v23 = vpack.c.bf16 %v1673_v16, %v1672_v20  ;;  %v1448_v27 = vadd.f32 %v6118_v17, %v7133_v5 }
 0x1a8   : > { %v1439_v21 = vpop.f32.mrf.mxu0 }
 0x1a9   : > { %v1754_v22 = vpack.c.bf16 %v1671_v19, %v1670_v18  ;;  %v1440_v25 = vadd.f32 %v7133_v5, %v1439_v21  ;;  %v1676_v33 = vmax.f32 %v1448_v27, 0.0 }
 0x1aa   : > { %v6119_v24 = vpop.f32.mrf.mxu0 }
 0x1ab   : > { %v1451_v26 = vadd.f32 %v6119_v24, %v7133_v5  ;;  %6256 = vmatprep.mubr.bf16.mxu1 %v1754_v22  ;;  %v1674_v31 = vmax.f32 %v1440_v25, 0.0 }
 0x1ac   : > { %v1442_v28 = vpop.f32.mrf.mxu0  ;;  %6257 = vmatmul.mubr.bf16.gmra.mxu1 %v1755_v23 }
 0x1ad   : > { %v1443_v29 = vadd.f32 %v7133_v5, %v1442_v28  ;;  %v1677_v30 = vmax.f32 %v1451_v26, 0.0 }
 0x1ae   : > { %v6122_v2 = vpop.f32.mrf.mxu0 }
 0x1af   : > { %v1675_v32 = vmax.f32 %v1443_v29, 0.0  ;;  %v1757_v35 = vpack.c.bf16 %v1677_v30, %v1676_v33  ;;  %v1464_v39 = vadd.f32 %v6122_v2, %v7133_v5 }
 0x1b0   : > { %v1455_v62 = vpop.f32.mrf.mxu0 }
 0x1b1   : > { %v1756_v34 = vpack.c.bf16 %v1675_v32, %v1674_v31  ;;  %v1456_v37 = vadd.f32 %v7133_v5, %v1455_v62  ;;  %v1680_v45 = vmax.f32 %v1464_v39, 0.0 }
 0x1b2   : > { %v6123_v36 = vpop.f32.mrf.mxu0 }
 0x1b3   : > { %v1467_v38 = vadd.f32 %v6123_v36, %v7133_v5  ;;  %6260 = vmatprep.mubr.bf16.mxu1 %v1756_v34  ;;  %v1678_v44 = vmax.f32 %v1456_v37, 0.0 }
 0x1b4   : > { %v1458_v40 = vpop.f32.mrf.mxu0  ;;  %6261 = vmatmul.mubr.bf16.gmra.mxu1 %v1757_v35 }
 0x1b5   : > { %v1459_v41 = vadd.f32 %v7133_v5, %v1458_v40  ;;  %v1681_v42 = vmax.f32 %v1467_v38, 0.0 }
 0x1b6   : > { %v6126_v43 = vpop.f32.mrf.mxu0 }
 0x1b7   : > { %v1679_v63 = vmax.f32 %v1459_v41, 0.0  ;;  %v1759_v48 = vpack.c.bf16 %v1681_v42, %v1680_v45  ;;  %v1480_v51 = vadd.f32 %v6126_v43, %v7133_v5 }
 0x1b8   : > { %v1471_v46 = vpop.f32.mrf.mxu0 }
 0x1b9   : > { %v1758_v47 = vpack.c.bf16 %v1679_v63, %v1678_v44  ;;  %v1472_v50 = vadd.f32 %v7133_v5, %v1471_v46  ;;  %v1684_v58 = vmax.f32 %v1480_v51, 0.0 }
 0x1ba   : > { %v6127_v49 = vpop.f32.mrf.mxu0 }
 0x1bb   : > { %v1483_v61 = vadd.f32 %v6127_v49, %v7133_v5  ;;  %6264 = vmatprep.mubr.bf16.mxu1 %v1758_v47  ;;  %v1682_v56 = vmax.f32 %v1472_v50, 0.0 }
 0x1bc   : > { %v1474_v52 = vpop.f32.mrf.mxu0  ;;  %6265 = vmatmul.mubr.bf16.gmra.mxu1 %v1759_v48 }
 0x1bd   : > { %v1475_v53 = vadd.f32 %v7133_v5, %v1474_v52  ;;  %v1685_v54 = vmax.f32 %v1483_v61, 0.0 }
 0x1be   : > { %v6130_v55 = vpop.f32.mrf.mxu0 }
 0x1bf   : > { %v1683_v57 = vmax.f32 %v1475_v53, 0.0  ;;  %v1761_v0 = vpack.c.bf16 %v1685_v54, %v1684_v58  ;;  %v1496_v7 = vadd.f32 %v6130_v55, %v7133_v5 }
 0x1c0   : > { %v1487_v59 = vpop.f32.mrf.mxu0 }
 0x1c1   : > { %v1760_v60 = vpack.c.bf16 %v1683_v57, %v1682_v56  ;;  %v1488_v4 = vadd.f32 %v7133_v5, %v1487_v59  ;;  %v1688_v18 = vmax.f32 %v1496_v7, 0.0  ;;  %v7349_v59 = vld [vmem:[%s7129_s25] ss:$0 sm:$0xff] }
 0x1c2   : > { %v6131_v1 = vpop.f32.mrf.mxu0 }
 0x1c3   : > { %v1499_v6 = vadd.f32 %v6131_v1, %v7133_v5  ;;  %6268 = vmatprep.mubr.bf16.mxu1 %v1760_v60  ;;  %v1686_v15 = vmax.f32 %v1488_v4, 0.0 }
 0x1c4   : > { %v1490_v8 = vpop.f32.mrf.mxu0  ;;  %v6174_v9 = vpop.f32.mrf.mxu1  ;;  %6269 = vmatmul.mubr.bf16.gmra.mxu1 %v1761_v0 }
 0x1c5   : > { %v1491_v10 = vadd.f32 %v7133_v5, %v1490_v8  ;;  %v7279_v11 = vadd.f32 %v6174_v9, %v7272_v3  ;;  %v1689_v12 = vmax.f32 %v1499_v6, 0.0 }
 0x1c6   : > { %v6134_v13 = vpop.f32.mrf.mxu0  ;;  %v1895_v14 = vpop.f32.mrf.mxu1 }
 0x1c7   : > { %v1687_v16 = vmax.f32 %v1491_v10, 0.0  ;;  %v5632_v17 = vpack.c.bf16 %v7279_v11, %v7279_v11  ;;  %v7290_v19 = vadd.f32 %v7272_v3, %v1895_v14  ;;  %v3049_v21 = vsel %vm844_vm0, %v7279_v11, -inf }
 0x1c8   : > { %v1503_v20 = vpop.f32.mrf.mxu0  ;;  %v6175_v22 = vpop.f32.mrf.mxu1  ;;  %3050 = vmax.xlane.f32.xlu0 %v3049_v21  ;;  %v1763_v25 = vpack.c.bf16 %v1689_v12, %v1688_v18  ;;  %v1512_v32 = vadd.f32 %v6134_v13, %v7133_v5 }
 0x1c9   : > { %v1762_v23 = vpack.c.bf16 %v1687_v16, %v1686_v15  ;;  %2909 = vst.msk [vmem:[%s7285_s9 + $0x18] sm:$0xf] %vm2902_vm1, %v5632_v17  ;;  %v7297_v24 = vadd.f32 %v6175_v22, %v7272_v3  ;;  %v5630_v26 = vpack.c.bf16 %v7290_v19, %v7290_v19  ;;  %v1504_v29 = vadd.f32 %v7133_v5, %v1503_v20 }
 0x1ca   : > { %v6135_v27 = vpop.f32.mrf.mxu0  ;;  %v1898_v28 = vpop.f32.mrf.mxu1  ;;  %v3043_v35 = vsel %vm844_vm0, %v7290_v19, -inf  ;;  %v1692_v63 = vmax.f32 %v1512_v32, 0.0 }
 0x1cb   : > { %v5633_v30 = vpack.c.bf16 %v7297_v24, %v7297_v24  ;;  %v1515_v2 = vadd.f32 %v6135_v27, %v7133_v5  ;;  %v7306_v31 = vadd.f32 %v7272_v3, %v1898_v28  ;;  %6272 = vmatprep.mubr.bf16.mxu1 %v1762_v23  ;;  %2907 = vst.msk [vmem:[%s7285_s9 + $0x10] sm:$0xf] %vm2902_vm1, %v5630_v26  ;;  %v3052_v62 = vsel %vm844_vm0, %v7297_v24, -inf }
 0x1cc   : > { %v1506_v33 = vpop.f32.mrf.mxu0  ;;  %6273 = vmatmul.mubr.bf16.gmra.mxu1 %v1763_v25  ;;  %v6178_v34 = vpop.f32.mrf.mxu1  ;;  %3053 = vmax.xlane.f32.xlu1 %v3052_v62  ;;  %v1690_v42 = vmax.f32 %v1504_v29, 0.0 }
 0x1cd   : > { %2910 = vst.msk [vmem:[%s7285_s9 + $0x1c] sm:$0xf] %vm2902_vm1, %v5633_v30  ;;  %v5631_v36 = vpack.c.bf16 %v7306_v31, %v7306_v31  ;;  %v1507_v37 = vadd.f32 %v7133_v5, %v1506_v33  ;;  %v7321_v38 = vadd.f32 %v6178_v34, %v7272_v3  ;;  %3044 = vmax.xlane.f32.xlu0 %v3043_v35  ;;  %v1693_v39 = vmax.f32 %v1515_v2, 0.0 }
 0x1ce   : > { %v6138_v40 = vpop.f32.mrf.mxu0  ;;  %v1911_v41 = vpop.f32.mrf.mxu1  ;;  %v3046_v48 = vsel %vm844_vm0, %v7306_v31, -inf }
 0x1cf   : > { %2908 = vst.msk [vmem:[%s7285_s9 + $0x14] sm:$0xf] %vm2902_vm1, %v5631_v36  ;;  %v1691_v43 = vmax.f32 %v1507_v37, 0.0  ;;  %v5636_v44 = vpack.c.bf16 %v7321_v38, %v7321_v38  ;;  %v7328_v45 = vadd.f32 %v7272_v3, %v1911_v41  ;;  %v3061_v49 = vsel %vm844_vm0, %v7321_v38, -inf }
 0x1d0   : > { %v1519_v46 = vpop.f32.mrf.mxu0  ;;  %v6179_v47 = vpop.f32.mrf.mxu1  ;;  %3047 = vmax.xlane.f32.xlu1 %v3046_v48  ;;  %v1765_v51 = vpack.c.bf16 %v1693_v39, %v1692_v63  ;;  %v1528_v60 = vadd.f32 %v7349_v59, %v6138_v40 }
 0x1d1   : > { %v1764_v50 = vpack.c.bf16 %v1691_v43, %v1690_v42  ;;  %2913 = vst.msk [vmem:[%s7285_s9 + $0x28] sm:$0xf] %vm2902_vm1, %v5636_v44  ;;  %v7337_v61 = vadd.f32 %v6179_v47, %v7272_v3  ;;  %3062 = vmax.xlane.f32.xlu0 %v3061_v49  ;;  %v5634_v52 = vpack.c.bf16 %v7328_v45, %v7328_v45 }
 0x1d2   : > { %v6139_v53 = vpop.f32.mrf.mxu0  ;;  %v1914_v54 = vpop.f32.mrf.mxu1  ;;  %v1520_v55 = vadd.f32 %v7133_v5, %v1519_v46  ;;  %v1696_v16 = vmax.f32 %v1528_v60, 0.0 }
 0x1d3   : > { %v5637_v56 = vpack.c.bf16 %v7337_v61, %v7337_v61  ;;  %v1531_v57 = vadd.f32 %v6139_v53, %v7133_v5  ;;  %v7346_v58 = vadd.f32 %v7272_v3, %v1914_v54  ;;  %6276 = vmatprep.mubr.bf16.mxu1 %v1764_v50  ;;  %2911 = vst.msk [vmem:[%s7285_s9 + $0x20] sm:$0xf] %vm2902_vm1, %v5634_v52  ;;  %v3064_v4 = vsel %vm844_vm0, %v7337_v61, -inf }
 0x1d4   : > { %v1522_v0 = vpop.f32.mrf.mxu0  ;;  %v6182_v1 = vpop.f32.mrf.mxu1  ;;  %6277 = vmatmul.mubr.bf16.gmra.mxu1 %v1765_v51  ;;  %v3055_v5 = vsel %vm844_vm0, %v7328_v45, -inf  ;;  %3065 = vmax.xlane.f32.xlu1 %v3064_v4  ;;  %v1694_v13 = vmax.f32 %v1520_v55, 0.0 }
 0x1d5   : > { %2914 = vst.msk [vmem:[%s7285_s9 + $0x2c] sm:$0xf] %vm2902_vm1, %v5637_v56  ;;  %v5635_v6 = vpack.c.bf16 %v7346_v58, %v7346_v58  ;;  %v1523_v7 = vadd.f32 %v7349_v59, %v1522_v0  ;;  %v7364_v8 = vadd.f32 %v6182_v1, %v7272_v3  ;;  %3056 = vmax.xlane.f32.xlu0 %v3055_v5  ;;  %v1697_v9 = vmax.f32 %v1531_v57, 0.0 }
 0x1d6   : > { %v6142_v10 = vpop.f32.mrf.mxu0  ;;  %v1927_v12 = vpop.f32.mrf.mxu1  ;;  %v3058_v21 = vsel %vm844_vm0, %v7346_v58, -inf }
 0x1d7   : > { %2912 = vst.msk [vmem:[%s7285_s9 + $0x24] sm:$0xf] %vm2902_vm1, %v5635_v6  ;;  %v1695_v14 = vmax.f32 %v1523_v7, 0.0  ;;  %v5640_v15 = vpack.c.bf16 %v7364_v8, %v7364_v8  ;;  %v7371_v17 = vadd.f32 %v7272_v3, %v1927_v12  ;;  %v3073_v22 = vsel %vm844_vm0, %v7364_v8, -inf }
 0x1d8   : > { %v1535_v18 = vpop.f32.mrf.mxu0  ;;  %v6183_v20 = vpop.f32.mrf.mxu1  ;;  %3059 = vmax.xlane.f32.xlu1 %v3058_v21  ;;  %v1767_v26 = vpack.c.bf16 %v1697_v9, %v1696_v16  ;;  %v1544_v62 = vadd.f32 %v7349_v59, %v6142_v10 }
 0x1d9   : > { %v1766_v23 = vpack.c.bf16 %v1695_v14, %v1694_v13  ;;  %2917 = vst.msk [vmem:[%s7285_s9 + $0x38] sm:$0xf] %vm2902_vm1, %v5640_v15  ;;  %v7380_v25 = vadd.f32 %v6183_v20, %v7272_v3  ;;  %3074 = vmax.xlane.f32.xlu0 %v3073_v22  ;;  %v5638_v27 = vpack.c.bf16 %v7371_v17, %v7371_v17  ;;  %v3067_v37 = vsel %vm844_vm0, %v7371_v17, -inf }
 0x1da   : > { %v6143_v28 = vpop.f32.mrf.mxu0  ;;  %v1930_v29 = vpop.f32.mrf.mxu1  ;;  %v1536_v30 = vadd.f32 %v7349_v59, %v1535_v18  ;;  %v1700_v48 = vmax.f32 %v1544_v62, 0.0 }
 0x1db   : > { %v5641_v2 = vpack.c.bf16 %v7380_v25, %v7380_v25  ;;  %v1547_v32 = vadd.f32 %v7349_v59, %v6143_v28  ;;  %v7389_v33 = vadd.f32 %v7272_v3, %v1930_v29  ;;  %6280 = vmatprep.mubr.bf16.mxu1 %v1766_v23  ;;  %2915 = vst.msk [vmem:[%s7285_s9 + $0x30] sm:$0xf] %vm2902_vm1, %v5638_v27  ;;  %v3076_v36 = vsel %vm844_vm0, %v7380_v25, -inf }
 0x1dc   : > { %v1538_v34 = vpop.f32.mrf.mxu0  ;;  %v6186_v35 = vpop.f32.mrf.mxu1  ;;  %6281 = vmatmul.mubr.bf16.gmra.mxu1 %v1767_v26  ;;  %3077 = vmax.xlane.f32.xlu1 %v3076_v36  ;;  %v1698_v63 = vmax.f32 %v1536_v30, 0.0 }
 0x1dd   : > { %2918 = vst.msk [vmem:[%s7285_s9 + $0x3c] sm:$0xf] %vm2902_vm1, %v5641_v2  ;;  %v5639_v39 = vpack.c.bf16 %v7389_v33, %v7389_v33  ;;  %v1539_v40 = vadd.f32 %v7349_v59, %v1538_v34  ;;  %v7404_v41 = vadd.f32 %v6186_v35, %v7272_v3  ;;  %3068 = vmax.xlane.f32.xlu0 %v3067_v37  ;;  %v1701_v42 = vmax.f32 %v1547_v32, 0.0 }
 0x1de   : > { %v6146_v43 = vpop.f32.mrf.mxu0  ;;  %v1943_v44 = vpop.f32.mrf.mxu1  ;;  %v3070_v52 = vsel %vm844_vm0, %v7389_v33, -inf }
 0x1df   : > { %2916 = vst.msk [vmem:[%s7285_s9 + $0x34] sm:$0xf] %vm2902_vm1, %v5639_v39  ;;  %v1699_v46 = vmax.f32 %v1539_v40, 0.0  ;;  %v5644_v47 = vpack.c.bf16 %v7404_v41, %v7404_v41  ;;  %v7411_v49 = vadd.f32 %v7272_v3, %v1943_v44  ;;  %v3085_v53 = vsel %vm844_vm0, %v7404_v41, -inf }
 0x1e0   : > { %v1551_v50 = vpop.f32.mrf.mxu0  ;;  %v6187_v51 = vpop.f32.mrf.mxu1  ;;  %3071 = vmax.xlane.f32.xlu1 %v3070_v52  ;;  %v1769_v56 = vpack.c.bf16 %v1701_v42, %v1700_v48  ;;  %v1560_v7 = vadd.f32 %v7349_v59, %v6146_v43 }
 0x1e1   : > { %v1768_v54 = vpack.c.bf16 %v1699_v46, %v1698_v63  ;;  %2921 = vst.msk [vmem:[%s7285_s9 + $0x48] sm:$0xf] %vm2902_vm1, %v5644_v47  ;;  %v7420_v55 = vadd.f32 %v6187_v51, %v7272_v3  ;;  %3086 = vmax.xlane.f32.xlu0 %v3085_v53  ;;  %v5642_v57 = vpack.c.bf16 %v7411_v49, %v7411_v49  ;;  %v3079_v13 = vsel %vm844_vm0, %v7411_v49, -inf }
 0x1e2   : > { %v6147_v60 = vpop.f32.mrf.mxu0  ;;  %v1946_v0 = vpop.f32.mrf.mxu1  ;;  %v1552_v1 = vadd.f32 %v7349_v59, %v1551_v50  ;;  %v1704_v27 = vmax.f32 %v1560_v7, 0.0 }
 0x1e3   : > { %v5645_v4 = vpack.c.bf16 %v7420_v55, %v7420_v55  ;;  %v1563_v5 = vadd.f32 %v7349_v59, %v6147_v60  ;;  %v7429_v6 = vadd.f32 %v7272_v3, %v1946_v0  ;;  %6284 = vmatprep.mubr.bf16.mxu1 %v1768_v54  ;;  %2919 = vst.msk [vmem:[%s7285_s9 + $0x40] sm:$0xf] %vm2902_vm1, %v5642_v57  ;;  %v3088_v12 = vsel %vm844_vm0, %v7420_v55, -inf }
 0x1e4   : > { %v1554_v9 = vpop.f32.mrf.mxu0  ;;  %v6190_v10 = vpop.f32.mrf.mxu1  ;;  %6285 = vmatmul.mubr.bf16.gmra.mxu1 %v1769_v56  ;;  %3089 = vmax.xlane.f32.xlu1 %v3088_v12  ;;  %v1702_v22 = vmax.f32 %v1552_v1, 0.0 }
 0x1e5   : > { %2922 = vst.msk [vmem:[%s7285_s9 + $0x4c] sm:$0xf] %vm2902_vm1, %v5645_v4  ;;  %v5643_v14 = vpack.c.bf16 %v7429_v6, %v7429_v6  ;;  %v1555_v15 = vadd.f32 %v7349_v59, %v1554_v9  ;;  %v7444_v16 = vadd.f32 %v6190_v10, %v7272_v3  ;;  %3080 = vmax.xlane.f32.xlu0 %v3079_v13  ;;  %v1705_v18 = vmax.f32 %v1563_v5, 0.0 }
 0x1e6   : > { %v6150_v20 = vpop.f32.mrf.mxu0  ;;  %v1959_v21 = vpop.f32.mrf.mxu1  ;;  %v3082_v2 = vsel %vm844_vm0, %v7429_v6, -inf }
 0x1e7   : > { %2920 = vst.msk [vmem:[%s7285_s9 + $0x44] sm:$0xf] %vm2902_vm1, %v5643_v14  ;;  %v1703_v23 = vmax.f32 %v1555_v15, 0.0  ;;  %v5648_v26 = vpack.c.bf16 %v7444_v16, %v7444_v16  ;;  %v7451_v28 = vadd.f32 %v7272_v3, %v1959_v21  ;;  %v3097_v32 = vsel %vm844_vm0, %v7444_v16, -inf }
 0x1e8   : > { %v1567_v29 = vpop.f32.mrf.mxu0  ;;  %v6191_v30 = vpop.f32.mrf.mxu1  ;;  %3083 = vmax.xlane.f32.xlu1 %v3082_v2  ;;  %v1771_v35 = vpack.c.bf16 %v1705_v18, %v1704_v27  ;;  %v1576_v63 = vadd.f32 %v7349_v59, %v6150_v20 }
 0x1e9   : > { %v1770_v62 = vpack.c.bf16 %v1703_v23, %v1702_v22  ;;  %2925 = vst.msk [vmem:[%s7285_s9 + $0x58] sm:$0xf] %vm2902_vm1, %v5648_v26  ;;  %v7460_v34 = vadd.f32 %v6191_v30, %v7272_v3  ;;  %3098 = vmax.xlane.f32.xlu0 %v3097_v32  ;;  %v5646_v36 = vpack.c.bf16 %v7451_v28, %v7451_v28  ;;  %v3091_v50 = vsel %vm844_vm0, %v7451_v28, -inf }
 0x1ea   : > { %v6151_v37 = vpop.f32.mrf.mxu0  ;;  %v1962_v39 = vpop.f32.mrf.mxu1  ;;  %v1568_v40 = vadd.f32 %v7349_v59, %v1567_v29 }
 0x1eb   : > { %v5649_v42 = vpack.c.bf16 %v7460_v34, %v7460_v34  ;;  %v1579_v43 = vadd.f32 %v7349_v59, %v6151_v37  ;;  %v7469_v44 = vadd.f32 %v7272_v3, %v1962_v39  ;;  %6288 = vmatprep.mubr.bf16.mxu1 %v1770_v62  ;;  %2923 = vst.msk [vmem:[%s7285_s9 + $0x50] sm:$0xf] %vm2902_vm1, %v5646_v36  ;;  %v3100_v48 = vsel %vm844_vm0, %v7460_v34, -inf }
 0x1ec   : > { %v1570_v46 = vpop.f32.mrf.mxu0  ;;  %v6194_v47 = vpop.f32.mrf.mxu1  ;;  %6289 = vmatmul.mubr.bf16.gmra.mxu1 %v1771_v35  ;;  %3101 = vmax.xlane.f32.xlu1 %v3100_v48  ;;  %v1706_v60 = vmax.f32 %v1568_v40, 0.0 }
 0x1ed   : > { %2926 = vst.msk [vmem:[%s7285_s9 + $0x5c] sm:$0xf] %vm2902_vm1, %v5649_v42  ;;  %v5647_v51 = vpack.c.bf16 %v7469_v44, %v7469_v44  ;;  %v1571_v52 = vadd.f32 %v7349_v59, %v1570_v46  ;;  %v7484_v53 = vadd.f32 %v6194_v47, %v7272_v3  ;;  %3092 = vmax.xlane.f32.xlu0 %v3091_v50  ;;  %v1709_v54 = vmax.f32 %v1579_v43, 0.0 }
 0x1ee   : > { %v6170_v56 = vpop.f32.mrf.mxu0  ;;  %v1975_v57 = vpop.f32.mrf.mxu1  ;;  %v1708_v59 = vmax.f32 %v1576_v63, 0.0  ;;  %v3094_v9 = vsel %vm844_vm0, %v7469_v44, -inf }
 0x1ef   : > { %2924 = vst.msk [vmem:[%s7285_s9 + $0x54] sm:$0xf] %vm2902_vm1, %v5647_v51  ;;  %v1707_v0 = vmax.f32 %v1571_v52, 0.0  ;;  %v5652_v1 = vpack.c.bf16 %v7484_v53, %v7484_v53  ;;  %v7491_v4 = vadd.f32 %v6170_v56, %v7272_v3  ;;  %v7494_v5 = vadd.f32 %v7272_v3, %v1975_v57 }
 0x1f0   : > { %v6195_v7 = vpop.f32.mrf.mxu1  ;;  %v3109_v10 = vsel %vm844_vm0, %v7484_v53, -inf  ;;  %v1879_v12 = vpop.f32.mrf.mxu0  ;;  %3095 = vmax.xlane.f32.xlu1 %v3094_v9  ;;  %v1773_v18 = vpack.c.bf16 %v1709_v54, %v1708_v59 }
 0x1f1   : > { %v1772_v13 = vpack.c.bf16 %v1707_v0, %v1706_v60  ;;  %2929 = vst.msk [vmem:[%s7285_s9 + $0x68] sm:$0xf] %vm2902_vm1, %v5652_v1  ;;  %v5628_v14 = vpack.c.bf16 %v7491_v4, %v7491_v4  ;;  %v7505_v15 = vadd.f32 %v6195_v7, %v7272_v3  ;;  %3110 = vmax.xlane.f32.xlu0 %v3109_v10  ;;  %v3103_v32 = vsel %vm844_vm0, %v7494_v5, -inf }
 0x1f2   : > { %v5650_v20 = vpack.c.bf16 %v7494_v5, %v7494_v5  ;;  %v7510_v21 = vadd.f32 %v7272_v3, %v1879_v12  ;;  %v6171_v22 = vpop.f32.mrf.mxu0  ;;  %v1978_v23 = vpop.f32.mrf.mxu1  ;;  %v3037_v62 = vsel %vm844_vm0, %v7491_v4, -inf }
 0x1f3   : > { %2905 = vst.msk [vmem:[%s7285_s9 + $0x8] sm:$0xf] %vm2902_vm1, %v5628_v14  ;;  %v5653_v26 = vpack.c.bf16 %v7505_v15, %v7505_v15  ;;  %v7517_v27 = vadd.f32 %v6171_v22, %v7272_v3  ;;  %v7520_v29 = vadd.f32 %v7272_v3, %v1978_v23  ;;  %6292 = vmatprep.mubr.bf16.mxu1 %v1772_v13  ;;  %v3112_v48 = vsel %vm844_vm0, %v7505_v15, -inf }
 0x1f4   : > { %2927 = vst.msk [vmem:[%s7285_s9 + $0x60] sm:$0xf] %vm2902_vm1, %v5650_v20  ;;  %v5626_v30 = vpack.c.bf16 %v7510_v21, %v7510_v21  ;;  %v6198_v2 = vpop.f32.mrf.mxu1  ;;  %6293 = vmatmul.mubr.bf16.gmra.mxu1 %v1773_v18  ;;  %v1882_v35 = vpop.f32.mrf.mxu0  ;;  %3038 = vmax.xlane.f32.xlu1 %v3037_v62  ;;  %v3031_v50 = vsel %vm844_vm0, %v7510_v21, -inf }
 0x1f5   : > { %2930 = vst.msk [vmem:[%s7285_s9 + $0x6c] sm:$0xf] %vm2902_vm1, %v5653_v26  ;;  %v5629_v36 = vpack.c.bf16 %v7517_v27, %v7517_v27  ;;  %v5651_v37 = vpack.c.bf16 %v7520_v29, %v7520_v29  ;;  %v7537_v39 = vadd.f32 %v6198_v2, %v7272_v3  ;;  %3104 = vmax.xlane.f32.xlu0 %v3103_v32  ;;  %v3040_v0 = vsel %vm844_vm0, %v7517_v27, -inf }
 0x1f6   : > { %2903 = vst.msk [vmem:[%s7285_s9] sm:$0xf] %vm2902_vm1, %v5626_v30  ;;  %v7542_v40 = vadd.f32 %v7272_v3, %v1882_v35  ;;  %v1991_v42 = vpop.f32.mrf.mxu1  ;;  %v3106_v14 = vsel %vm844_vm0, %v7520_v29, -inf }
 0x1f7   : > { %2906 = vst.msk [vmem:[%s7285_s9 + $0xc] sm:$0xf] %vm2902_vm1, %v5629_v36  ;;  %2928 = vst.msk [vmem:[%s7285_s9 + $0x64] sm:$0xf] %vm2902_vm1, %v5651_v37  ;;  %v5656_v43 = vpack.c.bf16 %v7537_v39, %v7537_v39  ;;  %v7551_v63 = vadd.f32 %v7272_v3, %v1991_v42  ;;  %v3121_v18 = vsel %vm844_vm0, %v7537_v39, -inf }
 0x1f8   : > { %v5627_v46 = vpack.c.bf16 %v7542_v40, %v7542_v40  ;;  %v6199_v47 = vpop.f32.mrf.mxu1  ;;  %3113 = vmax.xlane.f32.xlu1 %v3112_v48  ;;  %v3034_v1 = vsel %vm844_vm0, %v7542_v40, -inf }
 0x1f9   : > { %2933 = vst.msk [vmem:[%s7285_s9 + $0x78] sm:$0xf] %vm2902_vm1, %v5656_v43  ;;  %v5654_v51 = vpack.c.bf16 %v7551_v63, %v7551_v63  ;;  %v7564_v52 = vadd.f32 %v6199_v47, %v7272_v3  ;;  %3032 = vmax.xlane.f32.xlu0 %v3031_v50  ;;  %v3115_v62 = vsel %vm844_vm0, %v7551_v63, -inf }
 0x1fa   : > { %2904 = vst.msk [vmem:[%s7285_s9 + $0x4] sm:$0xf] %vm2902_vm1, %v5627_v46  ;;  %v1994_v54 = vpop.f32.mrf.mxu1 }
 0x1fb   : > { %2931 = vst.msk [vmem:[%s7285_s9 + $0x70] sm:$0xf] %vm2902_vm1, %v5654_v51  ;;  %v5657_v56 = vpack.c.bf16 %v7564_v52, %v7564_v52  ;;  %v7573_v57 = vadd.f32 %v7272_v3, %v1994_v54  ;;  %v3124_v32 = vsel %vm844_vm0, %v7564_v52, -inf }
 0x1fc   : > { %v6202_v60 = vpop.f32.mrf.mxu1  ;;  %3041 = vmax.xlane.f32.xlu1 %v3040_v0 }
 0x1fd   : > { %2934 = vst.msk [vmem:[%s7285_s9 + $0x7c] sm:$0xf] %vm2902_vm1, %v5657_v56  ;;  %v5655_v59 = vpack.c.bf16 %v7573_v57, %v7573_v57  ;;  %v7584_v7 = vadd.f32 %v6202_v60, %v7272_v3  ;;  %3035 = vmax.xlane.f32.xlu0 %v3034_v1  ;;  %v3118_v47 = vsel %vm844_vm0, %v7573_v57, -inf }
 0x1fe   : > { %v2007_v9 = vpop.f32.mrf.mxu1 }
 0x1ff   : > { %2932 = vst.msk [vmem:[%s7285_s9 + $0x74] sm:$0xf] %vm2902_vm1, %v5655_v59  ;;  %v5660_v10 = vpack.c.bf16 %v7584_v7, %v7584_v7  ;;  %v7591_v12 = vadd.f32 %v7272_v3, %v2007_v9  ;;  %v3133_v48 = vsel %vm844_vm0, %v7584_v7, -inf }
 0x200   : > { %v6203_v13 = vpop.f32.mrf.mxu1  ;;  %3107 = vmax.xlane.f32.xlu1 %v3106_v14 }
 0x201   : > { %10022 = vst [vmem:[#allocation5_spill] sm:$0xff] %v7591_v12  ;;  %2937 = vst.msk [vmem:[%s7285_s9 + $0x88] sm:$0xf] %vm2902_vm1, %v5660_v10  ;;  %v5658_v20 = vpack.c.bf16 %v7591_v12, %v7591_v12  ;;  %v7602_v22 = vadd.f32 %v6203_v13, %v7272_v3  ;;  %3122 = vmax.xlane.f32.xlu0 %v3121_v18  ;;  %v3127_v59 = vsel %vm844_vm0, %v7591_v12, -inf }
 0x202   : > { %v2010_v23 = vpop.f32.mrf.mxu1 }
 0x203   : > { %2935 = vst.msk [vmem:[%s7285_s9 + $0x80] sm:$0xf] %vm2902_vm1, %v5658_v20  ;;  %v5661_v26 = vpack.c.bf16 %v7602_v22, %v7602_v22  ;;  %v7609_v30 = vadd.f32 %v7272_v3, %v2010_v23  ;;  %v3136_v1 = vsel %vm844_vm0, %v7602_v22, -inf }
 0x204   : > { %v6206_v2 = vpop.f32.mrf.mxu1  ;;  %3125 = vmax.xlane.f32.xlu1 %v3124_v32 }
 0x205   : > { %10023 = vst [vmem:[#allocation6_spill] sm:$0xff] %v7609_v30  ;;  %2938 = vst.msk [vmem:[%s7285_s9 + $0x8c] sm:$0xf] %vm2902_vm1, %v5661_v26  ;;  %v5659_v35 = vpack.c.bf16 %v7609_v30, %v7609_v30  ;;  %v7620_v36 = vadd.f32 %v6206_v2, %v7272_v3  ;;  %3116 = vmax.xlane.f32.xlu0 %v3115_v62  ;;  %v3130_v23 = vsel %vm844_vm0, %v7609_v30, -inf }
 0x206   : > { %v2023_v37 = vpop.f32.mrf.mxu1 }
 0x207   : > { %10024 = vst [vmem:[#allocation7_spill] sm:$0xff] %v7620_v36  ;;  %2936 = vst.msk [vmem:[%s7285_s9 + $0x84] sm:$0xf] %vm2902_vm1, %v5659_v35  ;;  %v5664_v42 = vpack.c.bf16 %v7620_v36, %v7620_v36  ;;  %v7627_v43 = vadd.f32 %v7272_v3, %v2023_v37  ;;  %v3145_v26 = vsel %vm844_vm0, %v7620_v36, -inf }
 0x208   : > { %v6207_v46 = vpop.f32.mrf.mxu1  ;;  %3119 = vmax.xlane.f32.xlu1 %v3118_v47 }
 0x209   : > { %10025 = vst [vmem:[#allocation8_spill] sm:$0xff] %v7627_v43  ;;  %2941 = vst.msk [vmem:[%s7285_s9 + $0x98] sm:$0xf] %vm2902_vm1, %v5664_v42  ;;  %v5662_v50 = vpack.c.bf16 %v7627_v43, %v7627_v43  ;;  %v7638_v51 = vadd.f32 %v6207_v46, %v7272_v3  ;;  %3134 = vmax.xlane.f32.xlu0 %v3133_v48  ;;  %v3139_v47 = vsel %vm844_vm0, %v7627_v43, -inf }
 0x20a   : > { %v2026_v54 = vpop.f32.mrf.mxu1 }
 0x20b   : > { %10026 = vst [vmem:[#allocation9_spill] sm:$0xff] %v7638_v51  ;;  %2939 = vst.msk [vmem:[%s7285_s9 + $0x90] sm:$0xf] %vm2902_vm1, %v5662_v50  ;;  %v5665_v56 = vpack.c.bf16 %v7638_v51, %v7638_v51  ;;  %v7645_v60 = vadd.f32 %v7272_v3, %v2026_v54  ;;  %v3148_v46 = vsel %vm844_vm0, %v7638_v51, -inf }
 0x20c   : > { %v6210_v0 = vpop.f32.mrf.mxu1  ;;  %3137 = vmax.xlane.f32.xlu1 %v3136_v1 }
 0x20d   : > { %10027 = vst [vmem:[#allocation10_spill] sm:$0xff] %v7645_v60  ;;  %2942 = vst.msk [vmem:[%s7285_s9 + $0x9c] sm:$0xf] %vm2902_vm1, %v5665_v56  ;;  %v5663_v9 = vpack.c.bf16 %v7645_v60, %v7645_v60  ;;  %v7656_v10 = vadd.f32 %v6210_v0, %v7272_v3  ;;  %3128 = vmax.xlane.f32.xlu0 %v3127_v59  ;;  %v3142_v59 = vsel %vm844_vm0, %v7645_v60, -inf }
 0x20e   : > { %v2039_v13 = vpop.f32.mrf.mxu1 }
 0x20f   : > { %10028 = vst [vmem:[#allocation11_spill] sm:$0xff] %v7656_v10  ;;  %2940 = vst.msk [vmem:[%s7285_s9 + $0x94] sm:$0xf] %vm2902_vm1, %v5663_v9  ;;  %v5668_v14 = vpack.c.bf16 %v7656_v10, %v7656_v10  ;;  %v7663_v18 = vadd.f32 %v7272_v3, %v2039_v13  ;;  %v3157_v9 = vsel %vm844_vm0, %v7656_v10, -inf }
 0x210   : > { %v6211_v20 = vpop.f32.mrf.mxu1  ;;  %3131 = vmax.xlane.f32.xlu1 %v3130_v23 }
 0x211   : > { %10029 = vst [vmem:[#allocation12_spill] sm:$0xff] %v7663_v18  ;;  %2945 = vst.msk [vmem:[%s7285_s9 + $0xa8] sm:$0xf] %vm2902_vm1, %v5668_v14  ;;  %v5666_v2 = vpack.c.bf16 %v7663_v18, %v7663_v18  ;;  %v7674_v32 = vadd.f32 %v6211_v20, %v7272_v3  ;;  %3146 = vmax.xlane.f32.xlu0 %v3145_v26 }
 0x212   : > { %v2042_v62 = vpop.f32.mrf.mxu1 }
 0x213   : > { %10030 = vst [vmem:[#allocation13_spill] sm:$0xff] %v7674_v32  ;;  %2943 = vst.msk [vmem:[%s7285_s9 + $0xa0] sm:$0xf] %vm2902_vm1, %v5666_v2  ;;  %v5669_v35 = vpack.c.bf16 %v7674_v32, %v7674_v32  ;;  %v7681_v37 = vadd.f32 %v7272_v3, %v2042_v62  ;;  %v3160_v62 = vsel %vm844_vm0, %v7674_v32, -inf }
 0x214   : > { %v6214_v42 = vpop.f32.mrf.mxu1  ;;  %3149 = vmax.xlane.f32.xlu1 %v3148_v46 }
 0x215   : > { %10031 = vst [vmem:[#allocation14_spill] sm:$0xff] %v7681_v37  ;;  %2946 = vst.msk [vmem:[%s7285_s9 + $0xac] sm:$0xf] %vm2902_vm1, %v5669_v35  ;;  %v5667_v48 = vpack.c.bf16 %v7681_v37, %v7681_v37  ;;  %v7692_v50 = vadd.f32 %v6214_v42, %v7272_v3  ;;  %3140 = vmax.xlane.f32.xlu0 %v3139_v47  ;;  %v3151_v35 = vsel %vm844_vm0, %v7663_v18, -inf }
 0x216   : > { %v2055_v54 = vpop.f32.mrf.mxu1 }
 0x217   : > { %10032 = vst [vmem:[#allocation15_spill] sm:$0xff] %v7692_v50  ;;  %2944 = vst.msk [vmem:[%s7285_s9 + $0xa4] sm:$0xf] %vm2902_vm1, %v5667_v48  ;;  %v5672_v56 = vpack.c.bf16 %v7692_v50, %v7692_v50  ;;  %v7699_v0 = vadd.f32 %v7272_v3, %v2055_v54 }
 0x218   : > { %v6215_v1 = vpop.f32.mrf.mxu1  ;;  %3143 = vmax.xlane.f32.xlu1 %v3142_v59  ;;  %v3169_v59 = vsel %vm844_vm0, %v7692_v50, -inf }
 0x219   : > { %10033 = vst [vmem:[#allocation16_spill] sm:$0xff] %v7699_v0  ;;  %2949 = vst.msk [vmem:[%s7285_s9 + $0xb8] sm:$0xf] %vm2902_vm1, %v5672_v56  ;;  %v5670_v13 = vpack.c.bf16 %v7699_v0, %v7699_v0  ;;  %v7710_v14 = vadd.f32 %v6215_v1, %v7272_v3  ;;  %3158 = vmax.xlane.f32.xlu0 %v3157_v9  ;;  %v3154_v1 = vsel %vm844_vm0, %v7681_v37, -inf }
 0x21a   : > { %v2058_v20 = vpop.f32.mrf.mxu1 }
 0x21b   : > { %10034 = vst [vmem:[#allocation17_spill] sm:$0xff] %v7710_v14  ;;  %2947 = vst.msk [vmem:[%s7285_s9 + $0xb0] sm:$0xf] %vm2902_vm1, %v5670_v13  ;;  %v5673_v23 = vpack.c.bf16 %v7710_v14, %v7710_v14  ;;  %v7717_v26 = vadd.f32 %v7272_v3, %v2058_v20 }
 0x21c   : > { %v6218_v2 = vpop.f32.mrf.mxu1  ;;  %3161 = vmax.xlane.f32.xlu1 %v3160_v62 }
 0x21d   : > { %10035 = vst [vmem:[#allocation18_spill] sm:$0xff] %v7717_v26  ;;  %2950 = vst.msk [vmem:[%s7285_s9 + $0xbc] sm:$0xf] %vm2902_vm1, %v5673_v23  ;;  %v5671_v42 = vpack.c.bf16 %v7717_v26, %v7717_v26  ;;  %v7728_v46 = vadd.f32 %v6218_v2, %v7272_v3  ;;  %3152 = vmax.xlane.f32.xlu0 %v3151_v35  ;;  %v3172_v35 = vsel %vm844_vm0, %v7710_v14, -inf }
 0x21e   : > { %v2071_v47 = vpop.f32.mrf.mxu1 }
 0x21f   : > { %10036 = vst [vmem:[#allocation19_spill] sm:$0xff] %v7728_v46  ;;  %2948 = vst.msk [vmem:[%s7285_s9 + $0xb4] sm:$0xf] %vm2902_vm1, %v5671_v42  ;;  %v5676_v48 = vpack.c.bf16 %v7728_v46, %v7728_v46  ;;  %v7735_v54 = vadd.f32 %v7272_v3, %v2071_v47  ;;  %v3163_v42 = vsel %vm844_vm0, %v7699_v0, -inf }
 0x220   : > { %v6219_v56 = vpop.f32.mrf.mxu1  ;;  %3155 = vmax.xlane.f32.xlu1 %v3154_v1 }
 0x221   : > { %10037 = vst [vmem:[#allocation20_spill] sm:$0xff] %v7735_v54  ;;  %2953 = vst.msk [vmem:[%s7285_s9 + $0xc8] sm:$0xf] %vm2902_vm1, %v5676_v48  ;;  %v5674_v9 = vpack.c.bf16 %v7735_v54, %v7735_v54  ;;  %v7746_v13 = vadd.f32 %v6219_v56, %v7272_v3  ;;  %3170 = vmax.xlane.f32.xlu0 %v3169_v59 }
 0x222   : > { %v2074_v20 = vpop.f32.mrf.mxu1 }
 0x223   : > { %10038 = vst [vmem:[#allocation21_spill] sm:$0xff] %v7746_v13  ;;  %2951 = vst.msk [vmem:[%s7285_s9 + $0xc0] sm:$0xf] %vm2902_vm1, %v5674_v9  ;;  %v5677_v23 = vpack.c.bf16 %v7746_v13, %v7746_v13  ;;  %v7753_v2 = vadd.f32 %v7272_v3, %v2074_v20  ;;  %v3166_v20 = vsel %vm844_vm0, %v7717_v26, -inf }
 0x224   : > { %v6222_v62 = vpop.f32.mrf.mxu1  ;;  %3173 = vmax.xlane.f32.xlu1 %v3172_v35 }
 0x225   : > { %10039 = vst [vmem:[#allocation22_spill] sm:$0xff] %v7753_v2  ;;  %2954 = vst.msk [vmem:[%s7285_s9 + $0xcc] sm:$0xf] %vm2902_vm1, %v5677_v23  ;;  %v5675_v47 = vpack.c.bf16 %v7753_v2, %v7753_v2  ;;  %v7764_v48 = vadd.f32 %v6222_v62, %v7272_v3  ;;  %3164 = vmax.xlane.f32.xlu0 %v3163_v42  ;;  %v3181_v23 = vsel %vm844_vm0, %v7728_v46, -inf  ;;  %v3184_v46 = vsel %vm844_vm0, %v7746_v13, -inf }
 0x226   : > { %v2087_v56 = vpop.f32.mrf.mxu1 }
 0x227   : > { %10040 = vst [vmem:[#allocation23_spill] sm:$0xff] %v7764_v48  ;;  %2952 = vst.msk [vmem:[%s7285_s9 + $0xc4] sm:$0xf] %vm2902_vm1, %v5675_v47  ;;  %v5680_v1 = vpack.c.bf16 %v7764_v48, %v7764_v48  ;;  %v7771_v59 = vadd.f32 %v7272_v3, %v2087_v56 }
 0x228   : > { %v6223_v9 = vpop.f32.mrf.mxu1  ;;  %3167 = vmax.xlane.f32.xlu1 %v3166_v20 }
 0x229   : > { %10041 = vst [vmem:[#allocation24_spill] sm:$0xff] %v7771_v59  ;;  %2957 = vst.msk [vmem:[%s7285_s9 + $0xd8] sm:$0xf] %vm2902_vm1, %v5680_v1  ;;  %v5678_v62 = vpack.c.bf16 %v7771_v59, %v7771_v59  ;;  %v7782_v35 = vadd.f32 %v6223_v9, %v7272_v3  ;;  %3182 = vmax.xlane.f32.xlu0 %v3181_v23  ;;  %v3175_v9 = vsel %vm844_vm0, %v7735_v54, -inf  ;;  %v3178_v54 = vsel %vm844_vm0, %v7753_v2, -inf }
 0x22a   : > { %v2090_v42 = vpop.f32.mrf.mxu1 }
 0x22b   : > { %10042 = vst [vmem:[#allocation25_spill] sm:$0xff] %v7782_v35  ;;  %2955 = vst.msk [vmem:[%s7285_s9 + $0xd0] sm:$0xf] %vm2902_vm1, %v5678_v62  ;;  %v5681_v47 = vpack.c.bf16 %v7782_v35, %v7782_v35  ;;  %v7789_v56 = vadd.f32 %v7272_v3, %v2090_v42 }
 0x22c   : > { %v6226_v1 = vpop.f32.mrf.mxu1  ;;  %3185 = vmax.xlane.f32.xlu1 %v3184_v46 }
 0x22d   : > { %10043 = vst [vmem:[#allocation26_spill] sm:$0xff] %v7789_v56  ;;  %2958 = vst.msk [vmem:[%s7285_s9 + $0xdc] sm:$0xf] %vm2902_vm1, %v5681_v47  ;;  %v5679_v20 = vpack.c.bf16 %v7789_v56, %v7789_v56  ;;  %v7800_v23 = vadd.f32 %v6226_v1, %v7272_v3  ;;  %3176 = vmax.xlane.f32.xlu0 %v3175_v9  ;;  %v3193_v1 = vsel %vm844_vm0, %v7764_v48, -inf  ;;  %v3196_v48 = vsel %vm844_vm0, %v7782_v35, -inf }
 0x22e   : > { %v2103_v62 = vpop.f32.mrf.mxu1 }
 0x22f   : > { %10044 = vst [vmem:[#allocation27_spill] sm:$0xff] %v7800_v23  ;;  %2956 = vst.msk [vmem:[%s7285_s9 + $0xd4] sm:$0xf] %vm2902_vm1, %v5679_v20  ;;  %v5684_v42 = vpack.c.bf16 %v7800_v23, %v7800_v23  ;;  %v7807_v13 = vadd.f32 %v7272_v3, %v2103_v62 }
 0x230   : > { %v6227_v47 = vpop.f32.mrf.mxu1  ;;  %3179 = vmax.xlane.f32.xlu1 %v3178_v54 }
 0x231   : > { %10045 = vst [vmem:[#allocation28_spill] sm:$0xff] %v7807_v13  ;;  %2961 = vst.msk [vmem:[%s7285_s9 + $0xe8] sm:$0xf] %vm2902_vm1, %v5684_v42  ;;  %v5682_v46 = vpack.c.bf16 %v7807_v13, %v7807_v13  ;;  %v7818_v9 = vadd.f32 %v6227_v47, %v7272_v3  ;;  %3194 = vmax.xlane.f32.xlu0 %v3193_v1  ;;  %v3187_v47 = vsel %vm844_vm0, %v7771_v59, -inf  ;;  %v3190_v59 = vsel %vm844_vm0, %v7789_v56, -inf }
 0x232   : > { %v2106_v20 = vpop.f32.mrf.mxu1 }
 0x233   : > { %10046 = vst [vmem:[#allocation29_spill] sm:$0xff] %v7818_v9  ;;  %2959 = vst.msk [vmem:[%s7285_s9 + $0xe0] sm:$0xf] %vm2902_vm1, %v5682_v46  ;;  %v5685_v62 = vpack.c.bf16 %v7818_v9, %v7818_v9  ;;  %v7825_v2 = vadd.f32 %v7272_v3, %v2106_v20 }
 0x234   : > { %v6230_v42 = vpop.f32.mrf.mxu1  ;;  %3197 = vmax.xlane.f32.xlu1 %v3196_v48 }
 0x235   : > { %10047 = vst [vmem:[#allocation30_spill] sm:$0xff] %v7825_v2  ;;  %2962 = vst.msk [vmem:[%s7285_s9 + $0xec] sm:$0xf] %vm2902_vm1, %v5685_v62  ;;  %v5683_v54 = vpack.c.bf16 %v7825_v2, %v7825_v2  ;;  %v7836_v1 = vadd.f32 %v6230_v42, %v7272_v3  ;;  %3188 = vmax.xlane.f32.xlu0 %v3187_v47  ;;  %v3205_v42 = vsel %vm844_vm0, %v7800_v23, -inf  ;;  %v3208_v23 = vsel %vm844_vm0, %v7818_v9, -inf }
 0x236   : > { %v2119_v46 = vpop.f32.mrf.mxu1 }
 0x237   : > { %10048 = vst [vmem:[#allocation31_spill] sm:$0xff] %v7836_v1  ;;  %2960 = vst.msk [vmem:[%s7285_s9 + $0xe4] sm:$0xf] %vm2902_vm1, %v5683_v54  ;;  %v5688_v20 = vpack.c.bf16 %v7836_v1, %v7836_v1  ;;  %v7843_v35 = vadd.f32 %v7272_v3, %v2119_v46 }
 0x238   : > { %v6231_v62 = vpop.f32.mrf.mxu1  ;;  %3191 = vmax.xlane.f32.xlu1 %v3190_v59 }
 0x239   : > { %10049 = vst [vmem:[#allocation32_spill] sm:$0xff] %v7843_v35  ;;  %2965 = vst.msk [vmem:[%s7285_s9 + $0xf8] sm:$0xf] %vm2902_vm1, %v5688_v20  ;;  %v5686_v48 = vpack.c.bf16 %v7843_v35, %v7843_v35  ;;  %v7854_v47 = vadd.f32 %v6231_v62, %v7272_v3  ;;  %3206 = vmax.xlane.f32.xlu0 %v3205_v42  ;;  %v3199_v62 = vsel %vm844_vm0, %v7807_v13, -inf  ;;  %v3202_v13 = vsel %vm844_vm0, %v7825_v2, -inf }
 0x23a   : > { %v2122_v54 = vpop.f32.mrf.mxu1 }
 0x23b   : > { %10050 = vst [vmem:[#allocation33_spill] sm:$0xff] %v7854_v47  ;;  %2963 = vst.msk [vmem:[%s7285_s9 + $0xf0] sm:$0xf] %vm2902_vm1, %v5686_v48  ;;  %v5689_v46 = vpack.c.bf16 %v7854_v47, %v7854_v47  ;;  %v7861_v56 = vadd.f32 %v7272_v3, %v2122_v54 }
 0x23c   : > { %v6234_v20 = vpop.f32.mrf.mxu1  ;;  %3209 = vmax.xlane.f32.xlu1 %v3208_v23 }
 0x23d   : > { %10051 = vst [vmem:[#allocation34_spill] sm:$0xff] %v7861_v56  ;;  %2966 = vst.msk [vmem:[%s7285_s9 + $0xfc] sm:$0xf] %vm2902_vm1, %v5689_v46  ;;  %v5687_v59 = vpack.c.bf16 %v7861_v56, %v7861_v56  ;;  %v7872_v42 = vadd.f32 %v6234_v20, %v7272_v3  ;;  %3200 = vmax.xlane.f32.xlu0 %v3199_v62  ;;  %v3217_v20 = vsel %vm844_vm0, %v7836_v1, -inf  ;;  %v3220_v1 = vsel %vm844_vm0, %v7854_v47, -inf }
 0x23e   : > { %v2135_v48 = vpop.f32.mrf.mxu1  ;;  %v3214_v47 = vsel %vm844_vm0, %v7861_v56, -inf  ;;  %v7933_v56 = vld [vmem:[%s7269_s0] ss:$0 sm:$0xff] }
 0x23f   : > { %10052 = vst [vmem:[#allocation35_spill] sm:$0xff] %v7872_v42  ;;  %2964 = vst.msk [vmem:[%s7285_s9 + $0xf4] sm:$0xf] %vm2902_vm1, %v5687_v59  ;;  %v5692_v54 = vpack.c.bf16 %v7872_v42, %v7872_v42  ;;  %v7879_v9 = vadd.f32 %v7272_v3, %v2135_v48 }
 0x240   : > { %v6235_v46 = vpop.f32.mrf.mxu1  ;;  %3203 = vmax.xlane.f32.xlu1 %v3202_v13 }
 0x241   : > { %10053 = vst [vmem:[#allocation36_spill] sm:$0xff] %v7879_v9  ;;  %2969 = vst.msk [vmem:[%s7285_s9 + $0x108] sm:$0xf] %vm2902_vm1, %v5692_v54  ;;  %v5690_v23 = vpack.c.bf16 %v7879_v9, %v7879_v9  ;;  %v7890_v62 = vadd.f32 %v6235_v46, %v7272_v3  ;;  %3218 = vmax.xlane.f32.xlu0 %v3217_v20  ;;  %v3211_v46 = vsel %vm844_vm0, %v7843_v35, -inf }
 0x242   : > { %v2138_v59 = vpop.f32.mrf.mxu1 }
 0x243   : > { %10054 = vst [vmem:[#allocation37_spill] sm:$0xff] %v7890_v62  ;;  %2967 = vst.msk [vmem:[%s7285_s9 + $0x100] sm:$0xf] %vm2902_vm1, %v5690_v23  ;;  %v5693_v48 = vpack.c.bf16 %v7890_v62, %v7890_v62  ;;  %v7897_v2 = vadd.f32 %v7272_v3, %v2138_v59 }
 0x244   : > { %v6238_v54 = vpop.f32.mrf.mxu1  ;;  %3221 = vmax.xlane.f32.xlu1 %v3220_v1 }
 0x245   : > { %10055 = vst [vmem:[#allocation38_spill] sm:$0xff] %v7897_v2  ;;  %2970 = vst.msk [vmem:[%s7285_s9 + $0x10c] sm:$0xf] %vm2902_vm1, %v5693_v48  ;;  %v5691_v13 = vpack.c.bf16 %v7897_v2, %v7897_v2  ;;  %v7908_v20 = vadd.f32 %v6238_v54, %v7272_v3  ;;  %3212 = vmax.xlane.f32.xlu0 %v3211_v46  ;;  %v3229_v54 = vsel %vm844_vm0, %v7872_v42, -inf }
 0x246   : > { %v2151_v23 = vpop.f32.mrf.mxu1 }
 0x247   : > { %10056 = vst [vmem:[#allocation39_spill] sm:$0xff] %v7908_v20  ;;  %2968 = vst.msk [vmem:[%s7285_s9 + $0x104] sm:$0xf] %vm2902_vm1, %v5691_v13  ;;  %v5696_v59 = vpack.c.bf16 %v7908_v20, %v7908_v20  ;;  %v7915_v35 = vadd.f32 %v7272_v3, %v2151_v23 }
 0x248   : > { %v6239_v48 = vpop.f32.mrf.mxu1  ;;  %3215 = vmax.xlane.f32.xlu1 %v3214_v47  ;;  %v3223_v47 = vsel %vm844_vm0, %v7879_v9, -inf }
 0x249   : > { %10057 = vst [vmem:[#allocation40_spill] sm:$0xff] %v7915_v35  ;;  %2973 = vst.msk [vmem:[%s7285_s9 + $0x118] sm:$0xf] %vm2902_vm1, %v5696_v59  ;;  %v5694_v1 = vpack.c.bf16 %v7915_v35, %v7915_v35  ;;  %v7926_v46 = vadd.f32 %v6239_v48, %v7272_v3  ;;  %3230 = vmax.xlane.f32.xlu0 %v3229_v54  ;;  %v3232_v3 = vsel %vm844_vm0, %v7890_v62, -inf }
 0x24a   : > { %v2154_v13 = vpop.f32.mrf.mxu1 }
 0x24b   : > { %10058 = vst [vmem:[#allocation41_spill] sm:$0xff] %v7926_v46  ;;  %2971 = vst.msk [vmem:[%s7285_s9 + $0x110] sm:$0xf] %vm2902_vm1, %v5694_v1  ;;  %v5697_v23 = vpack.c.bf16 %v7926_v46, %v7926_v46  ;;  %v7936_v42 = vadd.f32 %v7933_v56, %v2154_v13  ;;  %v3244_v26 = vsel %vm844_vm0, %v7926_v46, -inf }
 0x24c   : > { %v6242_v59 = vpop.f32.mrf.mxu1  ;;  %3233 = vmax.xlane.f32.xlu1 %v3232_v3 }
 0x24d   : > { %10059 = vst [vmem:[#allocation42_spill] sm:$0xff] %v7936_v42  ;;  %2974 = vst.msk [vmem:[%s7285_s9 + $0x11c] sm:$0xf] %vm2902_vm1, %v5697_v23  ;;  %v5695_v48 = vpack.c.bf16 %v7936_v42, %v7936_v42  ;;  %v7947_v54 = vadd.f32 %v7933_v56, %v6242_v59  ;;  %3224 = vmax.xlane.f32.xlu0 %v3223_v47  ;;  %v3226_v23 = vsel %vm844_vm0, %v7897_v2, -inf  ;;  %v3241_v59 = vsel %vm844_vm0, %v7908_v20, -inf }
 0x24e   : > { %v2167_v1 = vpop.f32.mrf.mxu1 }
 0x24f   : > { %10060 = vst [vmem:[#allocation43_spill] sm:$0xff] %v7947_v54  ;;  %2972 = vst.msk [vmem:[%s7285_s9 + $0x114] sm:$0xf] %vm2902_vm1, %v5695_v48  ;;  %v5700_v13 = vpack.c.bf16 %v7947_v54, %v7947_v54  ;;  %v7954_v62 = vadd.f32 %v7933_v56, %v2167_v1 }
 0x250   : > { %v6243_v9 = vpop.f32.mrf.mxu1  ;;  %3227 = vmax.xlane.f32.xlu1 %v3226_v23 }
 0x251   : > { %10061 = vst [vmem:[#allocation44_spill] sm:$0xff] %v7954_v62  ;;  %2977 = vst.msk [vmem:[%s7285_s9 + $0x128] sm:$0xf] %vm2902_vm1, %v5700_v13  ;;  %v5698_v3 = vpack.c.bf16 %v7954_v62, %v7954_v62  ;;  %v7965_v47 = vadd.f32 %v7933_v56, %v6243_v9  ;;  %3242 = vmax.xlane.f32.xlu0 %v3241_v59  ;;  %v3051_v48 = vpop.xlane.xlu0 %3050  ;;  %v3235_v9 = vsel %vm844_vm0, %v7915_v35, -inf }
 0x252   : > { %v2170_v1 = vpop.f32.mrf.mxu1  ;;  %v3421_v0 = vsub.f32 %v7279_v11, %v3051_v48 }
 0x253   : > { %10062 = vst [vmem:[#allocation45_spill] sm:$0xff] %v7965_v47  ;;  %2975 = vst.msk [vmem:[%s7285_s9 + $0x120] sm:$0xf] %vm2902_vm1, %v5698_v3  ;;  %v5701_v2 = vpack.c.bf16 %v7965_v47, %v7965_v47  ;;  %v7972_v20 = vadd.f32 %v7933_v56, %v2170_v1 }
 0x254   : > { %v6246_v13 = vpop.f32.mrf.mxu1  ;;  %3245 = vmax.xlane.f32.xlu1 %v3244_v26  ;;  %v3253_v26 = vsel %vm844_vm0, %v7947_v54, -inf }
 0x255   : > { %10063 = vst [vmem:[#allocation46_spill] sm:$0xff] %v7972_v20  ;;  %2978 = vst.msk [vmem:[%s7285_s9 + $0x12c] sm:$0xf] %vm2902_vm1, %v5701_v2  ;;  %v5699_v23 = vpack.c.bf16 %v7972_v20, %v7972_v20  ;;  %v7983_v59 = vadd.f32 %v7933_v56, %v6246_v13  ;;  %3236 = vmax.xlane.f32.xlu0 %v3235_v9  ;;  %v3054_v3 = vpop.xlane.xlu1 %3053  ;;  %v3238_v13 = vsel %vm844_vm0, %v7936_v42, -inf  ;;  %v3555_v42 = vmul.f32 1.442695, %v3421_v0 }
 0x256   : > { %v3045_v1 = vpop.xlane.xlu0 %3044  ;;  %v2183_v35 = vpop.f32.mrf.mxu1  ;;  %v3422_v11 = vsub.f32 %v7297_v24, %v3054_v3  ;;  %v3256_v3 = vsel %vm844_vm0, %v7965_v47, -inf }
 0x257   : > { %10064 = vst [vmem:[#allocation47_spill] sm:$0xff] %v7983_v59  ;;  %2976 = vst.msk [vmem:[%s7285_s9 + $0x124] sm:$0xf] %vm2902_vm1, %v5699_v23  ;;  %v5704_v46 = vpack.c.bf16 %v7983_v59, %v7983_v59  ;;  %v7991_v2 = vadd.f32 %v7933_v56, %v2183_v35  ;;  %v3419_v54 = vsub.f32 %v7290_v19, %v3045_v1  ;;  %6395 = vpow2.f32 %v3555_v42 }
 0x258   : > { %v6247_v9 = vpop.f32.mrf.mxu1  ;;  %3239 = vmax.xlane.f32.xlu1 %v3238_v13  ;;  %v3247_v13 = vsel %vm844_vm0, %v7954_v62, -inf  ;;  %v3557_v19 = vmul.f32 1.442695, %v3422_v11 }
 0x259   : > { %10065 = vst [vmem:[#allocation48_spill] sm:$0xff] %v7991_v2  ;;  %2981 = vst.msk [vmem:[%s7285_s9 + $0x138] sm:$0xf] %vm2902_vm1, %v5704_v46  ;;  %3254 = vmax.xlane.f32.xlu0 %v3253_v26  ;;  %v5702_v48 = vpack.c.bf16 %v7991_v2, %v7991_v2  ;;  %v8003_v35 = vadd.f32 %v7933_v56, %v6247_v9  ;;  %v3048_v23 = vpop.xlane.xlu1 %3047 }
 0x25a   : > { %v8005_v14 = vpop.xlane.xlu0 %3062  ;;  %v2186_v50 = vpop.f32.mrf.mxu1  ;;  %v3420_v11 = vsub.f32 %v7306_v31, %v3048_v23  ;;  %6397 = vpow2.f32 %v3557_v19 }
 0x25b   : > { %10066 = vst [vmem:[#allocation49_spill] sm:$0xff] %v8003_v35  ;;  %2979 = vst.msk [vmem:[%s7285_s9 + $0x130] sm:$0xf] %vm2902_vm1, %v5702_v48  ;;  %v5705_v46 = vpack.c.bf16 %v8003_v35, %v8003_v35  ;;  %v8013_v24 = vadd.f32 %v7933_v56, %v2186_v50  ;;  %v3551_v48 = vmul.f32 1.442695, %v3419_v54 }
 0x25c   : > { %v6250_v26 = vpop.f32.mrf.mxu1  ;;  %3257 = vmax.xlane.f32.xlu1 %v3256_v3  ;;  %v3250_v3 = vsel %vm844_vm0, %v7972_v20, -inf }
 0x25d   : > { %10067 = vst [vmem:[#allocation50_spill] sm:$0xff] %v8013_v24  ;;  %3248 = vmax.xlane.f32.xlu0 %v3247_v13  ;;  %2982 = vst.msk [vmem:[%s7285_s9 + $0x13c] sm:$0xf] %vm2902_vm1, %v5705_v46  ;;  %v5703_v0 = vpack.c.bf16 %v8013_v24, %v8013_v24  ;;  %v8024_v1 = vadd.f32 %v7933_v56, %v6250_v26  ;;  %v8026_v50 = vpop.xlane.xlu1 %3065  ;;  %v3265_v26 = vsel %vm844_vm0, %v7983_v59, -inf  ;;  %6399 = vpow2.f32 %v3551_v48 }
 0x25e   : > { %v8028_v9 = vpop.xlane.xlu0 %3056  ;;  %v2199_v62 = vpop.f32.mrf.mxu1 }
 0x25f   : > { %10068 = vst [vmem:[#allocation51_spill] sm:$0xff] %v8024_v1  ;;  %2980 = vst.msk [vmem:[%s7285_s9 + $0x134] sm:$0xf] %vm2902_vm1, %v5703_v0  ;;  %v5708_v46 = vpack.c.bf16 %v8024_v1, %v8024_v1  ;;  %v8038_v13 = vadd.f32 %v7933_v56, %v2199_v62 }
 0x260   : > { %v6251_v42 = vpop.f32.mrf.mxu1  ;;  %3251 = vmax.xlane.f32.xlu1 %v3250_v3  ;;  %v3259_v3 = vsel %vm844_vm0, %v7991_v2, -inf }
 0x261   : > { %10069 = vst [vmem:[#allocation52_spill] sm:$0xff] %v8038_v13  ;;  %3266 = vmax.xlane.f32.xlu0 %v3265_v26  ;;  %2985 = vst.msk [vmem:[%s7285_s9 + $0x148] sm:$0xf] %vm2902_vm1, %v5708_v46  ;;  %v5706_v31 = vpack.c.bf16 %v8038_v13, %v8038_v13  ;;  %v8047_v54 = vadd.f32 %v7933_v56, %v6251_v42  ;;  %v8049_v23 = vpop.xlane.xlu1 %3059  ;;  %v3553_v26 = vmul.f32 1.442695, %v3420_v11  ;;  %v3268_v42 = vsel %vm844_vm0, %v8003_v35, -inf }
 0x262   : > { %v8051_v62 = vpop.xlane.xlu0 %3074  ;;  %v2202_v0 = vpop.f32.mrf.mxu1 }
 0x263   : > { %10070 = vst [vmem:[#allocation53_spill] sm:$0xff] %v8047_v54  ;;  %2983 = vst.msk [vmem:[%s7285_s9 + $0x140] sm:$0xf] %vm2902_vm1, %v5706_v31  ;;  %v5709_v19 = vpack.c.bf16 %v8047_v54, %v8047_v54  ;;  %v8060_v46 = vadd.f32 %v7933_v56, %v2202_v0  ;;  %v3425_v0 = vsub.f32 %v7321_v38, %v8005_v14  ;;  %6401 = vpow2.f32 %v3553_v26 }
 0x264   : > { %v6254_v59 = vpop.f32.mrf.mxu1  ;;  %3269 = vmax.xlane.f32.xlu1 %v3268_v42  ;;  %v3277_v42 = vsel %vm844_vm0, %v8024_v1, -inf  ;;  %v3426_v38 = vsub.f32 %v7337_v61, %v8026_v50  ;;  %v3280_v50 = vsel %vm844_vm0, %v8047_v54, -inf }
 0x265   : > { %10071 = vst [vmem:[#allocation54_spill] sm:$0xff] %v8060_v46  ;;  %3260 = vmax.xlane.f32.xlu0 %v3259_v3  ;;  %2986 = vst.msk [vmem:[%s7285_s9 + $0x14c] sm:$0xf] %vm2902_vm1, %v5709_v19  ;;  %v5707_v48 = vpack.c.bf16 %v8060_v46, %v8060_v46  ;;  %v8069_v11 = vadd.f32 %v7933_v56, %v6254_v59  ;;  %v8071_v31 = vpop.xlane.xlu1 %3077  ;;  %v3262_v3 = vsel %vm844_vm0, %v8013_v24, -inf  ;;  %v3563_v1 = vmul.f32 1.442695, %v3425_v0  ;;  %v8103_v24 = vpop.eup %6395 }
 0x266   : > { %v8073_v2 = vpop.xlane.xlu0 %3068  ;;  %v2215_v35 = vpop.f32.mrf.mxu1  ;;  %10075 = vst [vmem:[#allocation58_spill] sm:$0xff] %v8103_v24  ;;  %v3271_v0 = vsel %vm844_vm0, %v8038_v13, -inf  ;;  %v3274_v37 = vsel %vm844_vm0, %v8060_v46, -inf }
 0x267   : > { %10072 = vst [vmem:[#allocation55_spill] sm:$0xff] %v8069_v11  ;;  %2984 = vst.msk [vmem:[%s7285_s9 + $0x144] sm:$0xf] %vm2902_vm1, %v5707_v48  ;;  %v5712_v19 = vpack.c.bf16 %v8069_v11, %v8069_v11  ;;  %v8084_v59 = vadd.f32 %v7933_v56, %v2215_v35  ;;  %v8127_v54 = vpop.eup %6397  ;;  %6403 = vpow2.f32 %v3563_v1  ;;  %v3817_v1 = vsel %vm844_vm0, %v8103_v24, 0.0 }
 0x268   : > { %v6255_v20 = vpop.f32.mrf.mxu1  ;;  %3263 = vmax.xlane.f32.xlu1 %v3262_v3  ;;  %v3423_v3 = vsub.f32 %v7328_v45, %v8028_v9  ;;  %v3565_v45 = vmul.f32 1.442695, %v3426_v38  ;;  %10078 = vst [vmem:[#allocation61_spill] sm:$0xff] %v8127_v54  ;;  %v3424_v38 = vsub.f32 %v7346_v58, %v8049_v23 }
 0x269   : > { %10073 = vst [vmem:[#allocation56_spill] sm:$0xff] %v8084_v59  ;;  %3278 = vmax.xlane.f32.xlu0 %v3277_v42  ;;  %2989 = vst.msk [vmem:[%s7285_s9 + $0x158] sm:$0xf] %vm2902_vm1, %v5712_v19  ;;  %v5710_v14 = vpack.c.bf16 %v8084_v59, %v8084_v59  ;;  %v8095_v26 = vadd.f32 %v7933_v56, %v6255_v20  ;;  %v8097_v35 = vpop.xlane.xlu1 %3071 }
 0x26a   : > { %v8099_v48 = vpop.xlane.xlu0 %3086  ;;  %v2218_v42 = vpop.f32.mrf.mxu1  ;;  %v3559_v13 = vmul.f32 1.442695, %v3423_v3  ;;  %6405 = vpow2.f32 %v3565_v45  ;;  %v3561_v46 = vmul.f32 1.442695, %v3424_v38 }
 0x26b   : > { %10074 = vst [vmem:[#allocation57_spill] sm:$0xff] %v8095_v26  ;;  %2987 = vst.msk [vmem:[%s7285_s9 + $0x150] sm:$0xf] %vm2902_vm1, %v5710_v14  ;;  %v5713_v61 = vpack.c.bf16 %v8095_v26, %v8095_v26  ;;  %v8110_v20 = vadd.f32 %v7933_v56, %v2218_v42 }
 0x26c   : > { %v6258_v19 = vpop.f32.mrf.mxu1  ;;  %3281 = vmax.xlane.f32.xlu1 %v3280_v50  ;;  %6407 = vpow2.f32 %v3559_v13 }
 0x26d   : > { %10076 = vst [vmem:[#allocation59_spill] sm:$0xff] %v8110_v20  ;;  %3272 = vmax.xlane.f32.xlu0 %v3271_v0  ;;  %2990 = vst.msk [vmem:[%s7285_s9 + $0x15c] sm:$0xf] %vm2902_vm1, %v5713_v61  ;;  %v5711_v9 = vpack.c.bf16 %v8110_v20, %v8110_v20  ;;  %v8121_v14 = vadd.f32 %v7933_v56, %v6258_v19  ;;  %v8123_v42 = vpop.xlane.xlu1 %3089  ;;  %v8131_v61 = vpop.eup %6399  ;;  %6409 = vpow2.f32 %v3561_v46  ;;  %v3286_v60 = vsel %vm844_vm0, %v8110_v20, -inf }
 0x26e   : > { %v8125_v47 = vpop.xlane.xlu0 %3080  ;;  %v2231_v50 = vpop.f32.mrf.mxu1  ;;  %10079 = vst [vmem:[#allocation62_spill] sm:$0xff] %v8131_v61 }
 0x26f   : > { %10077 = vst [vmem:[#allocation60_spill] sm:$0xff] %v8121_v14  ;;  %2988 = vst.msk [vmem:[%s7285_s9 + $0x154] sm:$0xf] %vm2902_vm1, %v5711_v9  ;;  %v5716_v0 = vpack.c.bf16 %v8121_v14, %v8121_v14  ;;  %v8138_v19 = vadd.f32 %v7933_v56, %v2231_v50 }
 0x270   : > { %v6259_v3 = vpop.f32.mrf.mxu1  ;;  %3275 = vmax.xlane.f32.xlu1 %v3274_v37 }
 0x271   : > { %10080 = vst [vmem:[#allocation63_spill] sm:$0xff] %v8138_v19  ;;  %3818 = vadd.xlane.f32.xlu0 %v3817_v1  ;;  %2993 = vst.msk [vmem:[%s7285_s9 + $0x168] sm:$0xf] %vm2902_vm1, %v5716_v0  ;;  %v5714_v58 = vpack.c.bf16 %v8138_v19, %v8138_v19  ;;  %v8149_v23 = vadd.f32 %v7933_v56, %v6259_v3  ;;  %v8151_v9 = vpop.xlane.xlu1 %3083  ;;  %v3820_v0 = vsel %vm844_vm0, %v8127_v54, 0.0  ;;  %v3811_v1 = vsel %vm844_vm0, %v8131_v61, 0.0  ;;  %v8166_v3 = vpop.eup %6401 }
 0x272   : > { %v8153_v50 = vpop.xlane.xlu0 %3098  ;;  %v2234_v24 = vpop.f32.mrf.mxu1  ;;  %10083 = vst [vmem:[#allocation66_spill] sm:$0xff] %v8166_v3  ;;  %v3429_v61 = vsub.f32 %v7364_v8, %v8051_v62  ;;  %v3430_v8 = vsub.f32 %v7380_v25, %v8071_v31 }
 0x273   : > { %10081 = vst [vmem:[#allocation64_spill] sm:$0xff] %v8149_v23  ;;  %2991 = vst.msk [vmem:[%s7285_s9 + $0x160] sm:$0xf] %vm2902_vm1, %v5714_v58  ;;  %v5717_v37 = vpack.c.bf16 %v8149_v23, %v8149_v23  ;;  %v8160_v45 = vadd.f32 %v7933_v56, %v2234_v24 }
 0x274   : > { %v6262_v13 = vpop.f32.mrf.mxu1  ;;  %3821 = vadd.xlane.f32.xlu1 %v3820_v0  ;;  %v8207_v32 = vpop.eup %6403 }
 0x275   : > { %10082 = vst [vmem:[#allocation65_spill] sm:$0xff] %v8160_v45  ;;  %3812 = vadd.xlane.f32.xlu0 %v3811_v1  ;;  %2994 = vst.msk [vmem:[%s7285_s9 + $0x16c] sm:$0xf] %vm2902_vm1, %v5717_v37  ;;  %v5715_v38 = vpack.c.bf16 %v8160_v45, %v8160_v45  ;;  %v8173_v24 = vadd.f32 %v7933_v56, %v6262_v13  ;;  %v8175_v58 = vpop.xlane.xlu1 %3101  ;;  %v3814_v1 = vsel %vm844_vm0, %v8166_v3, 0.0  ;;  %v3289_v13 = vsel %vm844_vm0, %v8069_v11, -inf }
 0x276   : > { %v8177_v54 = vpop.xlane.xlu0 %3092  ;;  %v2247_v18 = vpop.f32.mrf.mxu1  ;;  %v3571_v11 = vmul.f32 1.442695, %v3429_v61  ;;  %10087 = vst [vmem:[#allocation70_spill] sm:$0xff] %v8207_v32  ;;  %v3283_v61 = vsel %vm844_vm0, %v8084_v59, -inf  ;;  %v3298_v30 = vsel %vm844_vm0, %v8160_v45, -inf }
 0x277   : > { %10084 = vst [vmem:[#allocation67_spill] sm:$0xff] %v8173_v24  ;;  %2992 = vst.msk [vmem:[%s7285_s9 + $0x164] sm:$0xf] %vm2902_vm1, %v5715_v38  ;;  %v5720_v37 = vpack.c.bf16 %v8173_v24, %v8173_v24  ;;  %v8186_v0 = vadd.f32 %v7933_v56, %v2247_v18 }
 0x278   : > { %v6263_v46 = vpop.f32.mrf.mxu1  ;;  %3815 = vadd.xlane.f32.xlu1 %v3814_v1  ;;  %v3427_v1 = vsub.f32 %v7371_v17, %v8073_v2  ;;  %v3573_v17 = vmul.f32 1.442695, %v3430_v8  ;;  %6411 = vpow2.f32 %v3571_v11  ;;  %v3428_v8 = vsub.f32 %v7389_v33, %v8097_v35 }
 0x279   : > { %10085 = vst [vmem:[#allocation68_spill] sm:$0xff] %v8186_v0  ;;  %3290 = vmax.xlane.f32.xlu0 %v3289_v13  ;;  %2997 = vst.msk [vmem:[%s7285_s9 + $0x178] sm:$0xf] %vm2902_vm1, %v5720_v37  ;;  %v5718_v62 = vpack.c.bf16 %v8186_v0, %v8186_v0  ;;  %v8199_v18 = vadd.f32 %v7933_v56, %v6263_v46  ;;  %v8201_v38 = vpop.xlane.xlu1 %3095  ;;  %v3292_v37 = vsel %vm844_vm0, %v8095_v26, -inf  ;;  %v8231_v26 = vpop.eup %6405  ;;  %v3829_v11 = vsel %vm844_vm0, %v8207_v32, 0.0 }
 0x27a   : > { %v8203_v3 = vpop.xlane.xlu0 %3110  ;;  %v2250_v13 = vpop.f32.mrf.mxu1  ;;  %10090 = vst [vmem:[#allocation73_spill] sm:$0xff] %v8231_v26  ;;  %v3567_v59 = vmul.f32 1.442695, %v3427_v1  ;;  %6413 = vpow2.f32 %v3573_v17  ;;  %v3569_v20 = vmul.f32 1.442695, %v3428_v8 }
 0x27b   : > { %10086 = vst [vmem:[#allocation69_spill] sm:$0xff] %v8199_v18  ;;  %2995 = vst.msk [vmem:[%s7285_s9 + $0x170] sm:$0xf] %vm2902_vm1, %v5718_v62  ;;  %v5721_v25 = vpack.c.bf16 %v8199_v18, %v8199_v18  ;;  %v8214_v31 = vadd.f32 %v7933_v56, %v2250_v13 }
 0x27c   : > { %v6266_v46 = vpop.f32.mrf.mxu1  ;;  %3293 = vmax.xlane.f32.xlu1 %v3292_v37  ;;  %6415 = vpow2.f32 %v3567_v59 }
 0x27d   : > { %10088 = vst [vmem:[#allocation71_spill] sm:$0xff] %v8214_v31  ;;  %3284 = vmax.xlane.f32.xlu0 %v3283_v61  ;;  %2998 = vst.msk [vmem:[%s7285_s9 + $0x17c] sm:$0xf] %vm2902_vm1, %v5721_v25  ;;  %v5719_v2 = vpack.c.bf16 %v8214_v31, %v8214_v31  ;;  %v8225_v62 = vadd.f32 %v7933_v56, %v6266_v46  ;;  %v8229_v10 = vpop.xlane.xlu1 %3038  ;;  %v8235_v25 = vpop.eup %6407  ;;  %6417 = vpow2.f32 %v3569_v20 }
 0x27e   : > { %v8227_v13 = vpop.xlane.xlu0 %3104  ;;  %v2263_v37 = vpop.f32.mrf.mxu1  ;;  %10091 = vst [vmem:[#allocation74_spill] sm:$0xff] %v8235_v25 }
 0x27f   : > { %10089 = vst [vmem:[#allocation72_spill] sm:$0xff] %v8225_v62  ;;  %2996 = vst.msk [vmem:[%s7285_s9 + $0x174] sm:$0xf] %vm2902_vm1, %v5719_v2  ;;  %v5724_v61 = vpack.c.bf16 %v8225_v62, %v8225_v62  ;;  %v8242_v46 = vadd.f32 %v7933_v56, %v2263_v37  ;;  %v8259_v43 = vpop.eup %6409 }
 0x280   : > { %v6267_v1 = vpop.f32.mrf.mxu1  ;;  %3287 = vmax.xlane.f32.xlu1 %v3286_v60  ;;  %10094 = vst [vmem:[#allocation77_spill] sm:$0xff] %v8259_v43 }
 0x281   : > { %10092 = vst [vmem:[#allocation75_spill] sm:$0xff] %v8242_v46  ;;  %3830 = vadd.xlane.f32.xlu0 %v3829_v11  ;;  %3001 = vst.msk [vmem:[%s7285_s9 + $0x188] sm:$0xf] %vm2902_vm1, %v5724_v61  ;;  %v5722_v33 = vpack.c.bf16 %v8242_v46, %v8242_v46  ;;  %v8253_v35 = vadd.f32 %v7933_v56, %v6267_v1  ;;  %v8255_v2 = vpop.xlane.xlu1 %3113  ;;  %v3832_v61 = vsel %vm844_vm0, %v8231_v26, 0.0  ;;  %v3823_v11 = vsel %vm844_vm0, %v8235_v25, 0.0 }
 0x282   : > { %v8257_v37 = vpop.xlane.xlu0 %3032  ;;  %v2266_v32 = vpop.f32.mrf.mxu1  ;;  %v3433_v25 = vsub.f32 %v7404_v41, %v8099_v48  ;;  %v3434_v41 = vsub.f32 %v7420_v55, %v8123_v42 }
 0x283   : > { %10093 = vst [vmem:[#allocation76_spill] sm:$0xff] %v8253_v35  ;;  %2999 = vst.msk [vmem:[%s7285_s9 + $0x180] sm:$0xf] %vm2902_vm1, %v5722_v33  ;;  %v5725_v60 = vpack.c.bf16 %v8253_v35, %v8253_v35  ;;  %v8266_v17 = vadd.f32 %v7933_v56, %v2266_v32 }
 0x284   : > { %v6270_v59 = vpop.f32.mrf.mxu1  ;;  %3833 = vadd.xlane.f32.xlu1 %v3832_v61 }
 0x285   : > { %10095 = vst [vmem:[#allocation78_spill] sm:$0xff] %v8266_v17  ;;  %3824 = vadd.xlane.f32.xlu0 %v3823_v11  ;;  %3002 = vst.msk [vmem:[%s7285_s9 + $0x18c] sm:$0xf] %vm2902_vm1, %v5725_v60  ;;  %v5723_v8 = vpack.c.bf16 %v8266_v17, %v8266_v17  ;;  %v8277_v1 = vadd.f32 %v7933_v56, %v6270_v59  ;;  %v8279_v32 = vpop.xlane.xlu1 %3041  ;;  %v3826_v11 = vsel %vm844_vm0, %v8259_v43, 0.0  ;;  %v3301_v59 = vsel %vm844_vm0, %v8121_v14, -inf  ;;  %v8311_v51 = vpop.eup %6411 }
 0x286   : > { %v8281_v33 = vpop.xlane.xlu0 %3035  ;;  %v2279_v26 = vpop.f32.mrf.mxu1  ;;  %v3579_v14 = vmul.f32 1.442695, %v3433_v25  ;;  %10099 = vst [vmem:[#allocation82_spill] sm:$0xff] %v8311_v51  ;;  %v3295_v25 = vsel %vm844_vm0, %v8138_v19, -inf }
 0x287   : > { %10096 = vst [vmem:[#allocation79_spill] sm:$0xff] %v8277_v1  ;;  %3000 = vst.msk [vmem:[%s7285_s9 + $0x184] sm:$0xf] %vm2902_vm1, %v5723_v8  ;;  %v5728_v60 = vpack.c.bf16 %v8277_v1, %v8277_v1  ;;  %v8290_v61 = vadd.f32 %v7933_v56, %v2279_v26 }
 0x288   : > { %v6271_v20 = vpop.f32.mrf.mxu1  ;;  %3827 = vadd.xlane.f32.xlu1 %v3826_v11  ;;  %v3431_v11 = vsub.f32 %v7411_v49, %v8125_v47  ;;  %v3581_v49 = vmul.f32 1.442695, %v3434_v41  ;;  %6419 = vpow2.f32 %v3579_v14  ;;  %v3432_v41 = vsub.f32 %v7429_v6, %v8151_v9 }
 0x289   : > { %10097 = vst [vmem:[#allocation80_spill] sm:$0xff] %v8290_v61  ;;  %3302 = vmax.xlane.f32.xlu0 %v3301_v59  ;;  %3005 = vst.msk [vmem:[%s7285_s9 + $0x198] sm:$0xf] %vm2902_vm1, %v5728_v60  ;;  %v5726_v48 = vpack.c.bf16 %v8290_v61, %v8290_v61  ;;  %v8303_v26 = vadd.f32 %v7933_v56, %v6271_v20  ;;  %v8305_v8 = vpop.xlane.xlu1 %3107  ;;  %v3304_v60 = vsel %vm844_vm0, %v8149_v23, -inf  ;;  %v8335_v23 = vpop.eup %6413  ;;  %v3841_v14 = vsel %vm844_vm0, %v8311_v51, 0.0 }
 0x28a   : > { %v8307_v43 = vpop.xlane.xlu0 %3122  ;;  %v2282_v59 = vpop.f32.mrf.mxu1  ;;  %10102 = vst [vmem:[#allocation85_spill] sm:$0xff] %v8335_v23  ;;  %v3575_v19 = vmul.f32 1.442695, %v3431_v11  ;;  %6421 = vpow2.f32 %v3581_v49  ;;  %v3577_v45 = vmul.f32 1.442695, %v3432_v41 }
 0x28b   : > { %10098 = vst [vmem:[#allocation81_spill] sm:$0xff] %v8303_v26  ;;  %3003 = vst.msk [vmem:[%s7285_s9 + $0x190] sm:$0xf] %vm2902_vm1, %v5726_v48  ;;  %v5729_v55 = vpack.c.bf16 %v8303_v26, %v8303_v26  ;;  %v8318_v42 = vadd.f32 %v7933_v56, %v2282_v59 }
 0x28c   : > { %v6274_v20 = vpop.f32.mrf.mxu1  ;;  %3305 = vmax.xlane.f32.xlu1 %v3304_v60  ;;  %6423 = vpow2.f32 %v3575_v19 }
 0x28d   : > { %10100 = vst [vmem:[#allocation83_spill] sm:$0xff] %v8318_v42  ;;  %3296 = vmax.xlane.f32.xlu0 %v3295_v25  ;;  %3006 = vst.msk [vmem:[%s7285_s9 + $0x19c] sm:$0xf] %vm2902_vm1, %v5729_v55  ;;  %v5727_v47 = vpack.c.bf16 %v8318_v42, %v8318_v42  ;;  %v8329_v48 = vadd.f32 %v7933_v56, %v6274_v20  ;;  %v8331_v59 = vpop.xlane.xlu1 %3125  ;;  %v8339_v55 = vpop.eup %6415  ;;  %6425 = vpow2.f32 %v3577_v45 }
 0x28e   : > { %v8333_v36 = vpop.xlane.xlu0 %3116  ;;  %v2295_v60 = vpop.f32.mrf.mxu1  ;;  %10103 = vst [vmem:[#allocation86_spill] sm:$0xff] %v8339_v55 }
 0x28f   : > { %10101 = vst [vmem:[#allocation84_spill] sm:$0xff] %v8329_v48  ;;  %3004 = vst.msk [vmem:[%s7285_s9 + $0x194] sm:$0xf] %vm2902_vm1, %v5727_v47  ;;  %v5732_v25 = vpack.c.bf16 %v8329_v48, %v8329_v48  ;;  %v8346_v20 = vadd.f32 %v7933_v56, %v2295_v60  ;;  %v8363_v12 = vpop.eup %6417 }
 0x290   : > { %v6275_v11 = vpop.f32.mrf.mxu1  ;;  %3299 = vmax.xlane.f32.xlu1 %v3298_v30  ;;  %10106 = vst [vmem:[#allocation89_spill] sm:$0xff] %v8363_v12 }
 0x291   : > { %10104 = vst [vmem:[#allocation87_spill] sm:$0xff] %v8346_v20  ;;  %3842 = vadd.xlane.f32.xlu0 %v3841_v14  ;;  %3009 = vst.msk [vmem:[%s7285_s9 + $0x1a8] sm:$0xf] %vm2902_vm1, %v5732_v25  ;;  %v5730_v6 = vpack.c.bf16 %v8346_v20, %v8346_v20  ;;  %v8357_v9 = vadd.f32 %v7933_v56, %v6275_v11  ;;  %v8359_v47 = vpop.xlane.xlu1 %3119  ;;  %v3844_v25 = vsel %vm844_vm0, %v8335_v23, 0.0  ;;  %v3835_v14 = vsel %vm844_vm0, %v8339_v55, 0.0 }
 0x292   : > { %v8361_v60 = vpop.xlane.xlu0 %3134  ;;  %v2298_v51 = vpop.f32.mrf.mxu1  ;;  %v3437_v55 = vsub.f32 %v7444_v16, %v8153_v50  ;;  %v3438_v16 = vsub.f32 %v7460_v34, %v8175_v58 }
 0x293   : > { %10105 = vst [vmem:[#allocation88_spill] sm:$0xff] %v8357_v9  ;;  %3007 = vst.msk [vmem:[%s7285_s9 + $0x1a0] sm:$0xf] %vm2902_vm1, %v5730_v6  ;;  %v5733_v30 = vpack.c.bf16 %v8357_v9, %v8357_v9  ;;  %v8370_v49 = vadd.f32 %v7933_v56, %v2298_v51 }
 0x294   : > { %v6278_v19 = vpop.f32.mrf.mxu1  ;;  %3845 = vadd.xlane.f32.xlu1 %v3844_v25 }
 0x295   : > { %10107 = vst [vmem:[#allocation90_spill] sm:$0xff] %v8370_v49  ;;  %3836 = vadd.xlane.f32.xlu0 %v3835_v14  ;;  %3010 = vst.msk [vmem:[%s7285_s9 + $0x1ac] sm:$0xf] %vm2902_vm1, %v5733_v30  ;;  %v5731_v41 = vpack.c.bf16 %v8370_v49, %v8370_v49  ;;  %v8381_v11 = vadd.f32 %v7933_v56, %v6278_v19  ;;  %v8383_v51 = vpop.xlane.xlu1 %3137  ;;  %v3838_v14 = vsel %vm844_vm0, %v8363_v12, 0.0  ;;  %v3313_v19 = vsel %vm844_vm0, %v8173_v24, -inf }
 0x296   : > { %v8385_v6 = vpop.xlane.xlu0 %3128  ;;  %v2311_v23 = vpop.f32.mrf.mxu1  ;;  %v3587_v24 = vmul.f32 1.442695, %v3437_v55  ;;  %v3307_v55 = vsel %vm844_vm0, %v8186_v0, -inf }
 0x297   : > { %10108 = vst [vmem:[#allocation91_spill] sm:$0xff] %v8381_v11  ;;  %3008 = vst.msk [vmem:[%s7285_s9 + $0x1a4] sm:$0xf] %vm2902_vm1, %v5731_v41  ;;  %v5736_v30 = vpack.c.bf16 %v8381_v11, %v8381_v11  ;;  %v8394_v25 = vadd.f32 %v7933_v56, %v2311_v23  ;;  %v8415_v11 = vpop.eup %6419 }
 0x298   : > { %v6279_v45 = vpop.f32.mrf.mxu1  ;;  %3839 = vadd.xlane.f32.xlu1 %v3838_v14  ;;  %v3435_v14 = vsub.f32 %v7451_v28, %v8177_v54  ;;  %10111 = vst [vmem:[#allocation94_spill] sm:$0xff] %v8415_v11  ;;  %v3589_v28 = vmul.f32 1.442695, %v3438_v16  ;;  %6427 = vpow2.f32 %v3587_v24  ;;  %v3436_v16 = vsub.f32 %v7469_v44, %v8201_v38 }
 0x299   : > { %10109 = vst [vmem:[#allocation92_spill] sm:$0xff] %v8394_v25  ;;  %3314 = vmax.xlane.f32.xlu0 %v3313_v19  ;;  %3013 = vst.msk [vmem:[%s7285_s9 + $0x1b8] sm:$0xf] %vm2902_vm1, %v5736_v30  ;;  %v5734_v50 = vpack.c.bf16 %v8394_v25, %v8394_v25  ;;  %v8407_v23 = vadd.f32 %v7933_v56, %v6279_v45  ;;  %v8409_v41 = vpop.xlane.xlu1 %3131  ;;  %v3316_v30 = vsel %vm844_vm0, %v8199_v18, -inf  ;;  %v8439_v18 = vpop.eup %6421  ;;  %v3853_v24 = vsel %vm844_vm0, %v8415_v11, 0.0 }
 0x29a   : > { %v8411_v12 = vpop.xlane.xlu0 %3146  ;;  %v2314_v19 = vpop.f32.mrf.mxu1  ;;  %10114 = vst [vmem:[#allocation97_spill] sm:$0xff] %v8439_v18  ;;  %v3583_v0 = vmul.f32 1.442695, %v3435_v14  ;;  %6429 = vpow2.f32 %v3589_v28 }
 0x29b   : > { %10110 = vst [vmem:[#allocation93_spill] sm:$0xff] %v8407_v23  ;;  %3011 = vst.msk [vmem:[%s7285_s9 + $0x1b0] sm:$0xf] %vm2902_vm1, %v5734_v50  ;;  %v5737_v34 = vpack.c.bf16 %v8407_v23, %v8407_v23  ;;  %v8422_v58 = vadd.f32 %v7933_v56, %v2314_v19 }
 0x29c   : > { %v6282_v45 = vpop.f32.mrf.mxu1  ;;  %3317 = vmax.xlane.f32.xlu1 %v3316_v30  ;;  %6431 = vpow2.f32 %v3583_v0 }
 0x29d   : > { %10112 = vst [vmem:[#allocation95_spill] sm:$0xff] %v8422_v58  ;;  %3308 = vmax.xlane.f32.xlu0 %v3307_v55  ;;  %3014 = vst.msk [vmem:[%s7285_s9 + $0x1bc] sm:$0xf] %vm2902_vm1, %v5737_v34  ;;  %v5735_v54 = vpack.c.bf16 %v8422_v58, %v8422_v58  ;;  %v8433_v50 = vadd.f32 %v7933_v56, %v6282_v45  ;;  %v8435_v19 = vpop.xlane.xlu1 %3149  ;;  %v8443_v34 = vpop.eup %6423  ;;  %v3310_v58 = vsel %vm844_vm0, %v8214_v31, -inf  ;;  %v3585_v31 = vmul.f32 1.442695, %v3436_v16 }
 0x29e   : > { %v8437_v25 = vpop.xlane.xlu0 %3140  ;;  %v2327_v30 = vpop.f32.mrf.mxu1  ;;  %10115 = vst [vmem:[#allocation98_spill] sm:$0xff] %v8443_v34 }
 0x29f   : > { %10113 = vst [vmem:[#allocation96_spill] sm:$0xff] %v8433_v50  ;;  %3012 = vst.msk [vmem:[%s7285_s9 + $0x1b4] sm:$0xf] %vm2902_vm1, %v5735_v54  ;;  %v5740_v55 = vpack.c.bf16 %v8433_v50, %v8433_v50  ;;  %v8450_v45 = vadd.f32 %v7933_v56, %v2327_v30  ;;  %v8467_v50 = vpop.eup %6425  ;;  %6433 = vpow2.f32 %v3585_v31 }
 0x2a0   : > { %v6283_v14 = vpop.f32.mrf.mxu1  ;;  %3311 = vmax.xlane.f32.xlu1 %v3310_v58  ;;  %10118 = vst [vmem:[#allocation101_spill] sm:$0xff] %v8467_v50 }
 0x2a1   : > { %10116 = vst [vmem:[#allocation99_spill] sm:$0xff] %v8450_v45  ;;  %3854 = vadd.xlane.f32.xlu0 %v3853_v24  ;;  %3017 = vst.msk [vmem:[%s7285_s9 + $0x1c8] sm:$0xf] %vm2902_vm1, %v5740_v55  ;;  %v5738_v44 = vpack.c.bf16 %v8450_v45, %v8450_v45  ;;  %v8461_v38 = vadd.f32 %v7933_v56, %v6283_v14  ;;  %v8463_v54 = vpop.xlane.xlu1 %3143  ;;  %v3856_v55 = vsel %vm844_vm0, %v8439_v18, 0.0  ;;  %v3847_v24 = vsel %vm844_vm0, %v8443_v34, 0.0 }
 0x2a2   : > { %v8465_v30 = vpop.xlane.xlu0 %3158  ;;  %v2330_v11 = vpop.f32.mrf.mxu1  ;;  %v3441_v34 = vsub.f32 %v7484_v53, %v8203_v3  ;;  %v3417_v53 = vsub.f32 %v7491_v4, %v8229_v10 }
 0x2a3   : > { %10117 = vst [vmem:[#allocation100_spill] sm:$0xff] %v8461_v38  ;;  %3015 = vst.msk [vmem:[%s7285_s9 + $0x1c0] sm:$0xf] %vm2902_vm1, %v5738_v44  ;;  %v5741_v58 = vpack.c.bf16 %v8461_v38, %v8461_v38  ;;  %v8474_v28 = vadd.f32 %v7933_v56, %v2330_v11 }
 0x2a4   : > { %v6286_v0 = vpop.f32.mrf.mxu1  ;;  %3857 = vadd.xlane.f32.xlu1 %v3856_v55 }
 0x2a5   : > { %10119 = vst [vmem:[#allocation102_spill] sm:$0xff] %v8474_v28  ;;  %3848 = vadd.xlane.f32.xlu0 %v3847_v24  ;;  %3018 = vst.msk [vmem:[%s7285_s9 + $0x1cc] sm:$0xf] %vm2902_vm1, %v5741_v58  ;;  %v5739_v16 = vpack.c.bf16 %v8474_v28, %v8474_v28  ;;  %v8485_v14 = vadd.f32 %v7933_v56, %v6286_v0  ;;  %v8487_v11 = vpop.xlane.xlu1 %3161  ;;  %v3850_v24 = vsel %vm844_vm0, %v8467_v50, 0.0  ;;  %v3325_v0 = vsel %vm844_vm0, %v8225_v62, -inf }
 0x2a6   : > { %v8489_v44 = vpop.xlane.xlu0 %3152  ;;  %v2343_v18 = vpop.f32.mrf.mxu1  ;;  %v3595_v62 = vmul.f32 1.442695, %v3441_v34  ;;  %v3319_v34 = vsel %vm844_vm0, %v8242_v46, -inf }
 0x2a7   : > { %10120 = vst [vmem:[#allocation103_spill] sm:$0xff] %v8485_v14  ;;  %3016 = vst.msk [vmem:[%s7285_s9 + $0x1c4] sm:$0xf] %vm2902_vm1, %v5739_v16  ;;  %v5744_v58 = vpack.c.bf16 %v8485_v14, %v8485_v14  ;;  %v8498_v55 = vadd.f32 %v7933_v56, %v2343_v18  ;;  %v8519_v14 = vpop.eup %6427 }
 0x2a8   : > { %v6287_v31 = vpop.f32.mrf.mxu1  ;;  %3851 = vadd.xlane.f32.xlu1 %v3850_v24  ;;  %v3442_v24 = vsub.f32 %v7505_v15, %v8255_v2  ;;  %10123 = vst [vmem:[#allocation106_spill] sm:$0xff] %v8519_v14  ;;  %v3439_v15 = vsub.f32 %v7494_v5, %v8227_v13  ;;  %v3547_v2 = vmul.f32 1.442695, %v3417_v53  ;;  %v8545_v46 = vpop.eup %6429  ;;  %6435 = vpow2.f32 %v3595_v62 }
 0x2a9   : > { %10121 = vst [vmem:[#allocation104_spill] sm:$0xff] %v8498_v55  ;;  %3326 = vmax.xlane.f32.xlu0 %v3325_v0  ;;  %3021 = vst.msk [vmem:[%s7285_s9 + $0x1d8] sm:$0xf] %vm2902_vm1, %v5744_v58  ;;  %v5742_v3 = vpack.c.bf16 %v8498_v55, %v8498_v55  ;;  %v8511_v18 = vadd.f32 %v7933_v56, %v6287_v31  ;;  %v8513_v16 = vpop.xlane.xlu1 %3155  ;;  %v3328_v58 = vsel %vm844_vm0, %v8253_v35, -inf  ;;  %v8549_v53 = vpop.eup %6431  ;;  %v3865_v62 = vsel %vm844_vm0, %v8519_v14, 0.0 }
 0x2aa   : > { %v8515_v50 = vpop.xlane.xlu0 %3170  ;;  %v2346_v0 = vpop.f32.mrf.mxu1  ;;  %10126 = vst [vmem:[#allocation109_spill] sm:$0xff] %v8545_v46  ;;  %v3418_v5 = vsub.f32 %v7517_v27, %v8279_v32  ;;  %10127 = vst [vmem:[#allocation110_spill] sm:$0xff] %v8549_v53  ;;  %v3591_v27 = vmul.f32 1.442695, %v3439_v15  ;;  %6437 = vpow2.f32 %v3547_v2  ;;  %v3868_v15 = vsel %vm844_vm0, %v8545_v46, 0.0 }
 0x2ab   : > { %10122 = vst [vmem:[#allocation105_spill] sm:$0xff] %v8511_v18  ;;  %3019 = vst.msk [vmem:[%s7285_s9 + $0x1d0] sm:$0xf] %vm2902_vm1, %v5742_v3  ;;  %v5745_v4 = vpack.c.bf16 %v8511_v18, %v8511_v18  ;;  %v8526_v10 = vadd.f32 %v7933_v56, %v2346_v0 }
 0x2ac   : > { %v6290_v31 = vpop.f32.mrf.mxu1  ;;  %3329 = vmax.xlane.f32.xlu1 %v3328_v58  ;;  %v3597_v58 = vmul.f32 1.442695, %v3442_v24  ;;  %v3549_v14 = vmul.f32 1.442695, %v3418_v5  ;;  %v8575_v2 = vpop.eup %6433 }
 0x2ad   : > { %10124 = vst [vmem:[#allocation107_spill] sm:$0xff] %v8526_v10  ;;  %3320 = vmax.xlane.f32.xlu0 %v3319_v34  ;;  %3022 = vst.msk [vmem:[%s7285_s9 + $0x1dc] sm:$0xf] %vm2902_vm1, %v5745_v4  ;;  %v5743_v3 = vpack.c.bf16 %v8526_v10, %v8526_v10  ;;  %v8539_v0 = vadd.f32 %v7933_v56, %v6290_v31  ;;  %v8541_v35 = vpop.xlane.xlu1 %3173  ;;  %v3322_v31 = vsel %vm844_vm0, %v8266_v17, -inf }
 0x2ae   : > { %v8543_v55 = vpop.xlane.xlu0 %3164  ;;  %v2359_v13 = vpop.f32.mrf.mxu1  ;;  %6439 = vpow2.f32 %v3597_v58  ;;  %10128 = vst [vmem:[#allocation111_spill] sm:$0xff] %v8575_v2  ;;  %v3859_v58 = vsel %vm844_vm0, %v8549_v53, 0.0  ;;  %v3862_v53 = vsel %vm844_vm0, %v8575_v2, 0.0 }
 0x2af   : > { %10125 = vst [vmem:[#allocation108_spill] sm:$0xff] %v8539_v0  ;;  %3020 = vst.msk [vmem:[%s7285_s9 + $0x1d4] sm:$0xf] %vm2902_vm1, %v5743_v3  ;;  %v5748_v4 = vpack.c.bf16 %v8539_v0, %v8539_v0  ;;  %v8556_v34 = vadd.f32 %v7933_v56, %v2359_v13  ;;  %6441 = vpow2.f32 %v3591_v27  ;;  %v3337_v27 = vsel %vm844_vm0, %v8277_v1, -inf }
 0x2b0   : > { %v6291_v24 = vpop.f32.mrf.mxu1  ;;  %3323 = vmax.xlane.f32.xlu1 %v3322_v31  ;;  %6443 = vpow2.f32 %v3549_v14 }
 0x2b1   : > { %3866 = vadd.xlane.f32.xlu0 %v3865_v62  ;;  %3025 = vst.msk [vmem:[%s7285_s9 + $0x1e8] sm:$0xf] %vm2902_vm1, %v5748_v4  ;;  %v5746_v32 = vpack.c.bf16 %v8556_v34, %v8556_v34  ;;  %v8567_v3 = vadd.f32 %v7933_v56, %v6291_v24  ;;  %v8569_v13 = vpop.xlane.xlu1 %3167  ;;  %v3440_v4 = vsub.f32 %v7520_v29, %v8305_v8 }
 0x2b2   : > { %v8571_v17 = vpop.xlane.xlu0 %3182  ;;  %v2362_v0 = vpop.f32.mrf.mxu1 }
 0x2b3   : > { %3023 = vst.msk [vmem:[%s7285_s9 + $0x1e0] sm:$0xf] %vm2902_vm1, %v5746_v32  ;;  %v5749_v31 = vpack.c.bf16 %v8567_v3, %v8567_v3  ;;  %v8584_v62 = vadd.f32 %v7933_v56, %v2362_v0  ;;  %v3415_v32 = vsub.f32 %v7510_v21, %v8257_v37 }
 0x2b4   : > { %v6294_v5 = vpop.f32.mrf.mxu1  ;;  %3869 = vadd.xlane.f32.xlu1 %v3868_v15 }
 0x2b5   : > { %10129 = vst [vmem:[#allocation112_spill] sm:$0xff] %v8584_v62  ;;  %3860 = vadd.xlane.f32.xlu0 %v3859_v58  ;;  %3026 = vst.msk [vmem:[%s7285_s9 + $0x1ec] sm:$0xf] %vm2902_vm1, %v5749_v31  ;;  %v5747_v29 = vpack.c.bf16 %v8584_v62, %v8584_v62  ;;  %v8593_v8 = vadd.f32 %v7933_v56, %v6294_v5  ;;  %v8595_v24 = vpop.xlane.xlu1 %3185  ;;  %v3593_v31 = vmul.f32 1.442695, %v3440_v4 }
 0x2b6   : > { %v8597_v0 = vpop.xlane.xlu0 %3176  ;;  %v2375_v15 = vpop.f32.mrf.mxu1 }
 0x2b7   : > { %3024 = vst.msk [vmem:[%s7285_s9 + $0x1e4] sm:$0xf] %vm2902_vm1, %v5747_v29  ;;  %v5752_v58 = vpack.c.bf16 %v8593_v8, %v8593_v8  ;;  %v8608_v5 = vadd.f32 %v7933_v56, %v2375_v15  ;;  %v3543_v29 = vmul.f32 1.442695, %v3415_v32  ;;  %v3416_v15 = vsub.f32 %v7542_v40, %v8281_v33 }
 0x2b8   : > { %v6295_v46 = vpop.f32.mrf.mxu1  ;;  %3863 = vadd.xlane.f32.xlu1 %v3862_v53  ;;  %v3331_v53 = vsel %vm844_vm0, %v8290_v61, -inf  ;;  %6445 = vpow2.f32 %v3593_v31  ;;  %v3340_v32 = vsel %vm844_vm0, %v8303_v26, -inf }
 0x2b9   : > { %3338 = vmax.xlane.f32.xlu0 %v3337_v27  ;;  %3029 = vst.msk [vmem:[%s7285_s9 + $0x1f8] sm:$0xf] %vm2902_vm1, %v5752_v58  ;;  %v5750_v21 = vpack.c.bf16 %v8608_v5, %v8608_v5  ;;  %v8617_v37 = vadd.f32 %v7933_v56, %v6295_v46  ;;  %v8619_v14 = vpop.xlane.xlu1 %3179  ;;  %v8627_v27 = vpop.eup %6435  ;;  %6447 = vpow2.f32 %v3543_v29  ;;  %v3545_v61 = vmul.f32 1.442695, %v3416_v15 }
 0x2ba   : > { %v8621_v4 = vpop.xlane.xlu0 %3194  ;;  %v2378_v1 = vpop.f32.mrf.mxu1  ;;  %10130 = vst [vmem:[#allocation113_spill] sm:$0xff] %v8627_v27  ;;  %v3443_v15 = vsub.f32 %v7551_v63, %v8333_v36 }
 0x2bb   : > { %3027 = vst.msk [vmem:[%s7285_s9 + $0x1f0] sm:$0xf] %vm2902_vm1, %v5750_v21  ;;  %v5753_v46 = vpack.c.bf16 %v8617_v37, %v8617_v37  ;;  %v8634_v58 = vadd.f32 %v7933_v56, %v2378_v1  ;;  %v8646_v21 = vpop.eup %6437  ;;  %v3445_v56 = vsub.f32 %v7537_v39, %v8307_v43  ;;  %v3446_v43 = vsub.f32 %v7564_v52, %v8331_v59 }
 0x2bc   : > { %3341 = vmax.xlane.f32.xlu1 %v3340_v32  ;;  %10131 = vst [vmem:[#allocation114_spill] sm:$0xff] %v8646_v21  ;;  %v8650_v1 = vpop.eup %6439  ;;  %6449 = vpow2.f32 %v3545_v61  ;;  %v3599_v59 = vmul.f32 1.442695, %v3443_v15  ;;  %v3444_v61 = vsub.f32 %v7573_v57, %v8359_v47  ;;  %v3349_v47 = vsel %vm844_vm0, %v8329_v48, -inf }
 0x2bd   : > { %3332 = vmax.xlane.f32.xlu0 %v3331_v53  ;;  %3030 = vst.msk [vmem:[%s7285_s9 + $0x1fc] sm:$0xf] %vm2902_vm1, %v5753_v46  ;;  %v5751_v40 = vpack.c.bf16 %v8634_v58, %v8634_v58  ;;  %v8642_v33 = vpop.xlane.xlu1 %3197  ;;  %10132 = vst [vmem:[#allocation115_spill] sm:$0xff] %v8650_v1  ;;  %v3334_v53 = vsel %vm844_vm0, %v8318_v42, -inf  ;;  %v3877_v46 = vsel %vm844_vm0, %v8627_v27, 0.0  ;;  %v8662_v2 = vpop.eup %6441 }
 0x2be   : > { %v8644_v31 = vpop.xlane.xlu0 %3188  ;;  %10133 = vst [vmem:[#allocation116_spill] sm:$0xff] %v8662_v2  ;;  %v3603_v39 = vmul.f32 1.442695, %v3445_v56  ;;  %v8666_v29 = vpop.eup %6443  ;;  %v3605_v52 = vmul.f32 1.442695, %v3446_v43  ;;  %v3871_v36 = vsel %vm844_vm0, %v8662_v2, 0.0 }
 0x2bf   : > { %3028 = vst.msk [vmem:[%s7285_s9 + $0x1f4] sm:$0xf] %vm2902_vm1, %v5751_v40  ;;  %10134 = vst [vmem:[#allocation117_spill] sm:$0xff] %v8666_v29  ;;  %v3880_v40 = vsel %vm844_vm0, %v8650_v1, 0.0  ;;  %v3808_v63 = vsel %vm844_vm0, %v8666_v29, 0.0 }
 0x2c0   : > { %3335 = vmax.xlane.f32.xlu1 %v3334_v53  ;;  %v3805_v53 = vsel %vm844_vm0, %v8646_v21, 0.0  ;;  %6451 = vpow2.f32 %v3603_v39  ;;  %v3601_v39 = vmul.f32 1.442695, %v3444_v61 }
 0x2c1   : > { %3878 = vadd.xlane.f32.xlu0 %v3877_v46  ;;  %v8658_v32 = vpop.xlane.xlu1 %3191  ;;  %6453 = vpow2.f32 %v3605_v52  ;;  %v3449_v52 = vsub.f32 %v7584_v7, %v8361_v60  ;;  %v10139_v60 = vld [vmem:[#allocation5_spill] sm:$0xff] }
 0x2c2   : > { %v8660_v26 = vpop.xlane.xlu0 %3206  ;;  %6455 = vpow2.f32 %v3599_v59  ;;  %v3352_v59 = vsel %vm844_vm0, %v8357_v9, -inf  ;;  %v3447_v9 = vsub.f32 %v10139_v60, %v8385_v6 }
 0x2c3   : > { %6457 = vpow2.f32 %v3601_v39  ;;  %v3450_v39 = vsub.f32 %v7602_v22, %v8383_v51  ;;  %v3611_v7 = vmul.f32 1.442695, %v3449_v52  ;;  %v3346_v22 = vsel %vm844_vm0, %v8370_v49, -inf  ;;  %v10141_v52 = vld [vmem:[#allocation6_spill] sm:$0xff] }
 0x2c4   : > { %3881 = vadd.xlane.f32.xlu1 %v3880_v40  ;;  %v3607_v6 = vmul.f32 1.442695, %v3447_v9  ;;  %v3448_v60 = vsub.f32 %v10141_v52, %v8409_v41 }
 0x2c5   : > { %3806 = vadd.xlane.f32.xlu0 %v3805_v53  ;;  %v8674_v46 = vpop.xlane.xlu1 %3209  ;;  %v8684_v42 = vpop.eup %6445  ;;  %v3613_v2 = vmul.f32 1.442695, %v3450_v39  ;;  %6459 = vpow2.f32 %v3611_v7 }
 0x2c6   : > { %v8676_v56 = vpop.xlane.xlu0 %3200  ;;  %10135 = vst [vmem:[#allocation118_spill] sm:$0xff] %v8684_v42  ;;  %v3874_v57 = vsel %vm844_vm0, %v8684_v42, 0.0  ;;  %v8694_v43 = vpop.eup %6447  ;;  %v3609_v49 = vmul.f32 1.442695, %v3448_v60  ;;  %v10145_v60 = vld [vmem:[#allocation91_spill] sm:$0xff] }
 0x2c7   : > { %10136 = vst [vmem:[#allocation119_spill] sm:$0xff] %v8694_v43  ;;  %v3799_v61 = vsel %vm844_vm0, %v8694_v43, 0.0  ;;  %6461 = vpow2.f32 %v3613_v2 }
 0x2c8   : > { %3809 = vadd.xlane.f32.xlu1 %v3808_v63  ;;  %6463 = vpow2.f32 %v3607_v6 }
 0x2c9   : > { %3872 = vadd.xlane.f32.xlu0 %v3871_v36  ;;  %v8686_v40 = vpop.xlane.xlu1 %3203  ;;  %v8706_v36 = vpop.eup %6449  ;;  %6465 = vpow2.f32 %v3609_v49  ;;  %v10147_v49 = vld [vmem:[#allocation8_spill] sm:$0xff] }
 0x2ca   : > { %v8688_v53 = vpop.xlane.xlu0 %3218  ;;  %10137 = vst [vmem:[#allocation120_spill] sm:$0xff] %v8706_v36  ;;  %v3802_v43 = vsel %vm844_vm0, %v8706_v36, 0.0  ;;  %v3451_v29 = vsub.f32 %v10147_v49, %v8437_v25  ;;  %v10152_v49 = vld [vmem:[#allocation10_spill] sm:$0xff] }
 0x2cc   : > { %3875 = vadd.xlane.f32.xlu1 %v3874_v57  ;;  %v3615_v25 = vmul.f32 1.442695, %v3451_v29 }
 0x2cd   : > { %3350 = vmax.xlane.f32.xlu0 %v3349_v47  ;;  %v8696_v15 = vpop.xlane.xlu1 %3221  ;;  %v8714_v48 = vpop.eup %6451 }
 0x2ce   : > { %v8698_v63 = vpop.xlane.xlu0 %3212  ;;  %10138 = vst [vmem:[#allocation121_spill] sm:$0xff] %v8714_v48  ;;  %v8728_v51 = vpop.eup %6453 }
 0x2cf   : > { %10140 = vst [vmem:[#allocation5_spill] sm:$0xff] %v8728_v51  ;;  %v3892_v9 = vsel %vm844_vm0, %v8728_v51, 0.0  ;;  %v3361_v51 = vsel %vm844_vm0, %v10145_v60, -inf }
 0x2d0   : > { %3353 = vmax.xlane.f32.xlu1 %v3352_v59  ;;  %v3343_v59 = vsel %vm844_vm0, %v8346_v20, -inf  ;;  %v3889_v20 = vsel %vm844_vm0, %v8714_v48, 0.0 }
 0x2d1   : > { %3800 = vadd.xlane.f32.xlu0 %v3799_v61  ;;  %v8708_v57 = vpop.xlane.xlu1 %3215 }
 0x2d2   : > { %v8710_v47 = vpop.xlane.xlu0 %3230 }
 0x2d4   : > { %3803 = vadd.xlane.f32.xlu1 %v3802_v43  ;;  %v8734_v43 = vpop.eup %6455 }
 0x2d5   : > { %3344 = vmax.xlane.f32.xlu0 %v3343_v59  ;;  %v8722_v61 = vpop.xlane.xlu1 %3233  ;;  %10142 = vst [vmem:[#allocation6_spill] sm:$0xff] %v8734_v43  ;;  %v3883_v41 = vsel %vm844_vm0, %v8734_v43, 0.0  ;;  %v8744_v7 = vpop.eup %6457 }
 0x2d6   : > { %v8724_v42 = vpop.xlane.xlu0 %3224  ;;  %10143 = vst [vmem:[#allocation122_spill] sm:$0xff] %v8744_v7  ;;  %v3886_v6 = vsel %vm844_vm0, %v8744_v7, 0.0  ;;  %v8768_v60 = vpop.eup %6459 }
 0x2d8   : > { %3347 = vmax.xlane.f32.xlu1 %v3346_v22  ;;  %v10144_v22 = vld [vmem:[#allocation7_spill] sm:$0xff] }
 0x2d9   : > { %3890 = vadd.xlane.f32.xlu0 %v3889_v20  ;;  %v8736_v59 = vpop.xlane.xlu1 %3227  ;;  %v3453_v2 = vsub.f32 %v10144_v22, %v8411_v12  ;;  %v3364_v12 = vsel %vm844_vm0, %v8407_v23, -inf  ;;  %v10148_v22 = vld [vmem:[#allocation92_spill] sm:$0xff]  ;;  %10149 = vst [vmem:[#allocation7_spill] sm:$0xff] %v8768_v60  ;;  %v3452_v23 = vsub.f32 %v10152_v49, %v8463_v54 }
 0x2da   : > { %v8738_v39 = vpop.xlane.xlu0 %3242  ;;  %v3355_v7 = vsel %vm844_vm0, %v10148_v22, -inf  ;;  %v3901_v22 = vsel %vm844_vm0, %v8768_v60, 0.0 }
 0x2db   : > { %v3619_v36 = vmul.f32 1.442695, %v3453_v2 }
 0x2dc   : > { %3893 = vadd.xlane.f32.xlu1 %v3892_v9 }
 0x2dd   : > { %3884 = vadd.xlane.f32.xlu0 %v3883_v41  ;;  %v8746_v52 = vpop.xlane.xlu1 %3245  ;;  %v10146_v41 = vld [vmem:[#allocation9_spill] sm:$0xff]  ;;  %6467 = vpow2.f32 %v3619_v36 }
 0x2de   : > { %v8748_v20 = vpop.xlane.xlu0 %3236  ;;  %v3454_v48 = vsub.f32 %v10146_v41, %v8435_v19  ;;  %v10150_v19 = vld [vmem:[#allocation95_spill] sm:$0xff]  ;;  %v8776_v41 = vpop.eup %6461 }
 0x2df   : > { %v3358_v2 = vsel %vm844_vm0, %v10150_v19, -inf  ;;  %10151 = vst [vmem:[#allocation9_spill] sm:$0xff] %v8776_v41  ;;  %v3617_v19 = vmul.f32 1.442695, %v3452_v23  ;;  %v3904_v29 = vsel %vm844_vm0, %v8776_v41, 0.0 }
 0x2e0   : > { %3887 = vadd.xlane.f32.xlu1 %v3886_v6  ;;  %v3621_v21 = vmul.f32 1.442695, %v3454_v48 }
 0x2e1   : > { %3362 = vmax.xlane.f32.xlu0 %v3361_v51  ;;  %v8756_v43 = vpop.xlane.xlu1 %3239 }
 0x2e2   : > { %v8758_v9 = vpop.xlane.xlu0 %3254  ;;  %6469 = vpow2.f32 %v3621_v21 }
 0x2e3   : > { %6471 = vpow2.f32 %v3615_v25  ;;  %v10156_v25 = vld [vmem:[#allocation96_spill] sm:$0xff] }
 0x2e4   : > { %3365 = vmax.xlane.f32.xlu1 %v3364_v12  ;;  %v8782_v12 = vpop.eup %6463  ;;  %6473 = vpow2.f32 %v3617_v19  ;;  %v3373_v41 = vsel %vm844_vm0, %v10156_v25, -inf  ;;  %v10158_v19 = vld [vmem:[#allocation12_spill] sm:$0xff] }
 0x2e5   : > { %3356 = vmax.xlane.f32.xlu0 %v3355_v7  ;;  %v8770_v51 = vpop.xlane.xlu1 %3257  ;;  %10153 = vst [vmem:[#allocation8_spill] sm:$0xff] %v8782_v12  ;;  %v3895_v54 = vsel %vm844_vm0, %v8782_v12, 0.0  ;;  %v8792_v36 = vpop.eup %6465  ;;  %v3455_v27 = vsub.f32 %v10158_v19, %v8489_v44  ;;  %v3370_v19 = vsel %vm844_vm0, %v8474_v28, -inf }
 0x2e6   : > { %v8772_v6 = vpop.xlane.xlu0 %3248  ;;  %10154 = vst [vmem:[#allocation10_spill] sm:$0xff] %v8792_v36  ;;  %v3898_v23 = vsel %vm844_vm0, %v8792_v36, 0.0 }
 0x2e7   : > { %v3623_v44 = vmul.f32 1.442695, %v3455_v27 }
 0x2e8   : > { %3359 = vmax.xlane.f32.xlu1 %v3358_v2  ;;  %v10155_v2 = vld [vmem:[#allocation11_spill] sm:$0xff] }
 0x2e9   : > { %3902 = vadd.xlane.f32.xlu0 %v3901_v22  ;;  %v8784_v7 = vpop.xlane.xlu1 %3251  ;;  %v3457_v21 = vsub.f32 %v10155_v2, %v8465_v30  ;;  %v3376_v30 = vsel %vm844_vm0, %v8461_v38, -inf  ;;  %v3367_v2 = vsel %vm844_vm0, %v8450_v45, -inf }
 0x2ea   : > { %v8786_v48 = vpop.xlane.xlu0 %3266  ;;  %v8816_v25 = vpop.eup %6467 }
 0x2eb   : > { %v3627_v1 = vmul.f32 1.442695, %v3457_v21  ;;  %10159 = vst [vmem:[#allocation11_spill] sm:$0xff] %v8816_v25  ;;  %v3913_v45 = vsel %vm844_vm0, %v8816_v25, 0.0 }
 0x2ec   : > { %3905 = vadd.xlane.f32.xlu1 %v3904_v29 }
 0x2ed   : > { %3896 = vadd.xlane.f32.xlu0 %v3895_v54  ;;  %v8794_v49 = vpop.xlane.xlu1 %3269  ;;  %v10157_v54 = vld [vmem:[#allocation13_spill] sm:$0xff]  ;;  %6475 = vpow2.f32 %v3627_v1 }
 0x2ee   : > { %v8796_v22 = vpop.xlane.xlu0 %3260  ;;  %v3458_v60 = vsub.f32 %v10157_v54, %v8487_v11  ;;  %v10160_v11 = vld [vmem:[#allocation14_spill] sm:$0xff] }
 0x2ef   : > { %v3456_v21 = vsub.f32 %v10160_v11, %v8513_v16  ;;  %v8824_v54 = vpop.eup %6469 }
 0x2f0   : > { %3899 = vadd.xlane.f32.xlu1 %v3898_v23  ;;  %v3629_v36 = vmul.f32 1.442695, %v3458_v60  ;;  %10161 = vst [vmem:[#allocation13_spill] sm:$0xff] %v8824_v54  ;;  %v3916_v16 = vsel %vm844_vm0, %v8824_v54, 0.0 }
 0x2f1   : > { %3374 = vmax.xlane.f32.xlu0 %v3373_v41  ;;  %v8804_v12 = vpop.xlane.xlu1 %3263  ;;  %v3625_v38 = vmul.f32 1.442695, %v3456_v21  ;;  %v10165_v21 = vld [vmem:[#allocation103_spill] sm:$0xff] }
 0x2f2   : > { %v8806_v29 = vpop.xlane.xlu0 %3278  ;;  %6477 = vpow2.f32 %v3629_v36 }
 0x2f3   : > { %6479 = vpow2.f32 %v3623_v44  ;;  %v3385_v44 = vsel %vm844_vm0, %v10165_v21, -inf }
 0x2f4   : > { %3377 = vmax.xlane.f32.xlu1 %v3376_v30  ;;  %v8830_v30 = vpop.eup %6471 }
 0x2f5   : > { %3368 = vmax.xlane.f32.xlu0 %v3367_v2  ;;  %v8818_v41 = vpop.xlane.xlu1 %3281  ;;  %10162 = vst [vmem:[#allocation12_spill] sm:$0xff] %v8830_v30  ;;  %v3907_v27 = vsel %vm844_vm0, %v8830_v30, 0.0  ;;  %v8838_v1 = vpop.eup %6473 }
 0x2f6   : > { %v8820_v23 = vpop.xlane.xlu0 %3272  ;;  %10163 = vst [vmem:[#allocation14_spill] sm:$0xff] %v8838_v1  ;;  %v3910_v36 = vsel %vm844_vm0, %v8838_v1, 0.0  ;;  %v10168_v1 = vld [vmem:[#allocation104_spill] sm:$0xff] }
 0x2f7   : > { %v3379_v21 = vsel %vm844_vm0, %v10168_v1, -inf }
 0x2f8   : > { %3371 = vmax.xlane.f32.xlu1 %v3370_v19 }
 0x2f9   : > { %3914 = vadd.xlane.f32.xlu0 %v3913_v45  ;;  %v8832_v2 = vpop.xlane.xlu1 %3275  ;;  %v10164_v45 = vld [vmem:[#allocation15_spill] sm:$0xff] }
 0x2fa   : > { %v3819_v60 = vpop.xlane.xlu0 %3818  ;;  %v3461_v28 = vsub.f32 %v10164_v45, %v8515_v50  ;;  %v10167_v50 = vld [vmem:[#allocation16_spill] sm:$0xff]  ;;  %v3388_v45 = vsel %vm844_vm0, %v8511_v18, -inf }
 0x2fb   : > { %6481 = vrcp.f32 %v3819_v60 }
 0x2fc   : > { %3917 = vadd.xlane.f32.xlu1 %v3916_v16  ;;  %6483 = vpow2.f32 %v3625_v38  ;;  %v10166_v16 = vld [vmem:[#allocation17_spill] sm:$0xff]  ;;  %v3635_v38 = vmul.f32 1.442695, %v3461_v28  ;;  %v10170_v28 = vld [vmem:[#allocation18_spill] sm:$0xff] }
 0x2fd   : > { %3908 = vadd.xlane.f32.xlu0 %v3907_v27  ;;  %v3822_v11 = vpop.xlane.xlu1 %3821  ;;  %v3462_v27 = vsub.f32 %v10166_v16, %v8541_v35 }
 0x2fe   : > { %v3813_v19 = vpop.xlane.xlu0 %3812  ;;  %6485 = vrcp.f32 %v3822_v11  ;;  %v3459_v11 = vsub.f32 %v10167_v50, %v8543_v55  ;;  %v3382_v50 = vsel %vm844_vm0, %v8526_v10, -inf  ;;  %v10177_v10 = vld [vmem:[#allocation62_spill] sm:$0xff] }
 0x2ff   : > { %6487 = vrcp.f32 %v3813_v19  ;;  %v8856_v19 = vpop.eup %6475  ;;  %v3637_v35 = vmul.f32 1.442695, %v3462_v27 }
 0x300   : > { %3911 = vadd.xlane.f32.xlu1 %v3910_v36  ;;  %10169 = vst [vmem:[#allocation15_spill] sm:$0xff] %v8856_v19  ;;  %v8864_v16 = vpop.eup %6477  ;;  %v3631_v55 = vmul.f32 1.442695, %v3459_v11 }
 0x301   : > { %3386 = vmax.xlane.f32.xlu0 %v3385_v44  ;;  %v3816_v30 = vpop.xlane.xlu1 %3815  ;;  %10171 = vst [vmem:[#allocation17_spill] sm:$0xff] %v8864_v16  ;;  %v3928_v11 = vsel %vm844_vm0, %v8864_v16, 0.0  ;;  %v10178_v16 = vld [vmem:[#allocation108_spill] sm:$0xff] }
 0x302   : > { %v8846_v60 = vpop.xlane.xlu0 %3290  ;;  %6489 = vrcp.f32 %v3816_v30  ;;  %v3460_v30 = vsub.f32 %v10170_v28, %v8569_v13  ;;  %v10174_v28 = vld [vmem:[#allocation58_spill] sm:$0xff] }
 0x303   : > { %6491 = vpow2.f32 %v3635_v38 }
 0x304   : > { %3389 = vmax.xlane.f32.xlu1 %v3388_v45  ;;  %v3925_v45 = vsel %vm844_vm0, %v8856_v19, 0.0  ;;  %6493 = vpow2.f32 %v3637_v35  ;;  %v3633_v13 = vmul.f32 1.442695, %v3460_v30  ;;  %v10176_v30 = vld [vmem:[#allocation61_spill] sm:$0xff] }
 0x305   : > { %3380 = vmax.xlane.f32.xlu0 %v3379_v21  ;;  %v8858_v36 = vpop.xlane.xlu1 %3293  ;;  %v8870_v21 = vpop.eup %6479  ;;  %6495 = vpow2.f32 %v3631_v55 }
 0x306   : > { %v8860_v44 = vpop.xlane.xlu0 %3284  ;;  %10172 = vst [vmem:[#allocation16_spill] sm:$0xff] %v8870_v21 }
 0x308   : > { %3383 = vmax.xlane.f32.xlu1 %v3382_v50  ;;  %v6482_v1 = vpop.eup %6481  ;;  %v3919_v50 = vsel %vm844_vm0, %v8870_v21, 0.0  ;;  %v3397_v21 = vsel %vm844_vm0, %v10178_v16, -inf }
 0x309   : > { %3926 = vadd.xlane.f32.xlu0 %v3925_v45  ;;  %v8872_v27 = vpop.xlane.xlu1 %3287  ;;  %v4317_v54 = vmul.f32 %v6482_v1, %v10174_v28  ;;  %v8875_v38 = vpop.eup %6483 }
 0x30a   : > { %10173 = vst [vmem:[#allocation18_spill] sm:$0xff] %v8872_v27  ;;  %v3831_v18 = vpop.xlane.xlu0 %3830  ;;  %10175 = vst [vmem:[#allocation58_spill] sm:$0xff] %v8875_v38 }
 0x30b   : > { %v6486_v45 = vpop.eup %6485  ;;  %v5760_v35 = vpack.c.bf16 %v4317_v54, %v4317_v54  ;;  %6497 = vrcp.f32 %v3831_v18  ;;  %v10179_v18 = vld [vmem:[#allocation19_spill] sm:$0xff] }
 0x30c   : > { %3929 = vadd.xlane.f32.xlu1 %v3928_v11  ;;  %v6488_v1 = vpop.eup %6487  ;;  %v4318_v55 = vmul.f32 %v6486_v45, %v10176_v30  ;;  %6499 = vpow2.f32 %v3633_v13  ;;  %v3465_v54 = vsub.f32 %v10179_v18, %v8571_v17  ;;  %v10180_v30 = vld [vmem:[#allocation66_spill] sm:$0xff] }
 0x30d   : > { %3920 = vadd.xlane.f32.xlu0 %v3919_v50  ;;  %v3834_v28 = vpop.xlane.xlu1 %3833  ;;  %4957 = vst.msk [vmem:[%s8881_s13 + $0x18] sm:$0xf] %vm2902_vm1, %v5760_v35  ;;  %v4315_v25 = vmul.f32 %v6488_v1, %v10177_v10  ;;  %v3922_v50 = vsel %vm844_vm0, %v8875_v38, 0.0  ;;  %v10181_v1 = vld [vmem:[#allocation21_spill] sm:$0xff]  ;;  %v10190_v38 = vld [vmem:[#allocation70_spill] sm:$0xff] }
 0x30e   : > { %v3825_v19 = vpop.xlane.xlu0 %3824  ;;  %v5761_v11 = vpack.c.bf16 %v4318_v55, %v4318_v55  ;;  %6501 = vrcp.f32 %v3834_v28  ;;  %v3466_v17 = vsub.f32 %v10181_v1, %v8595_v24  ;;  %v3643_v28 = vmul.f32 1.442695, %v3465_v54  ;;  %v10184_v24 = vld [vmem:[#allocation22_spill] sm:$0xff] }
 0x30f   : > { %v6490_v27 = vpop.eup %6489  ;;  %v5758_v45 = vpack.c.bf16 %v4315_v25, %v4315_v25  ;;  %6503 = vrcp.f32 %v3825_v19  ;;  %v10182_v25 = vld [vmem:[#allocation20_spill] sm:$0xff]  ;;  %v3400_v19 = vsel %vm844_vm0, %v8567_v3, -inf  ;;  %v3394_v1 = vsel %vm844_vm0, %v8584_v62, -inf }
 0x310   : > { %v4316_v13 = vmul.f32 %v6490_v27, %v10180_v30  ;;  %3923 = vadd.xlane.f32.xlu1 %v3922_v50  ;;  %4958 = vst.msk [vmem:[%s8881_s13 + $0x1c] sm:$0xf] %vm2902_vm1, %v5761_v11  ;;  %v3463_v27 = vsub.f32 %v10182_v25, %v8597_v0  ;;  %v8912_v18 = vpop.eup %6491  ;;  %v3464_v11 = vsub.f32 %v10184_v24, %v8619_v14  ;;  %v3645_v0 = vmul.f32 1.442695, %v3466_v17  ;;  %v10188_v17 = vld [vmem:[#allocation25_spill] sm:$0xff] }
 0x311   : > { %3398 = vmax.xlane.f32.xlu0 %v3397_v21  ;;  %v3828_v10 = vpop.xlane.xlu1 %3827  ;;  %4955 = vst.msk [vmem:[%s8881_s13 + $0x10] sm:$0xf] %vm2902_vm1, %v5758_v45  ;;  %v3391_v21 = vsel %vm844_vm0, %v8556_v34, -inf  ;;  %10183 = vst [vmem:[#allocation61_spill] sm:$0xff] %v8912_v18  ;;  %v10185_v45 = vld [vmem:[#allocation23_spill] sm:$0xff] }
 0x312   : > { %v8900_v35 = vpop.xlane.xlu0 %3302  ;;  %v5759_v55 = vpack.c.bf16 %v4316_v13, %v4316_v13  ;;  %6505 = vrcp.f32 %v3828_v10  ;;  %v3469_v30 = vsub.f32 %v10185_v45, %v8621_v4  ;;  %v8924_v13 = vpop.eup %6493  ;;  %v3639_v10 = vmul.f32 1.442695, %v3463_v27  ;;  %v10189_v27 = vld [vmem:[#allocation24_spill] sm:$0xff] }
 0x313   : > { %10186 = vst [vmem:[#allocation62_spill] sm:$0xff] %v8924_v13  ;;  %6507 = vpow2.f32 %v3643_v28  ;;  %v8930_v25 = vpop.eup %6495  ;;  %v3467_v45 = vsub.f32 %v10189_v27, %v8644_v31 }
 0x314   : > { %4956 = vst.msk [vmem:[%s8881_s13 + $0x14] sm:$0xf] %vm2902_vm1, %v5759_v55  ;;  %3401 = vmax.xlane.f32.xlu1 %v3400_v19  ;;  %v3937_v55 = vsel %vm844_vm0, %v8912_v18, 0.0  ;;  %10187 = vst [vmem:[#allocation108_spill] sm:$0xff] %v8930_v25  ;;  %v3641_v19 = vmul.f32 1.442695, %v3464_v11  ;;  %6509 = vpow2.f32 %v3645_v0 }
 0x315   : > { %3392 = vmax.xlane.f32.xlu0 %v3391_v21  ;;  %v8918_v50 = vpop.xlane.xlu1 %3305  ;;  %v3470_v21 = vsub.f32 %v10188_v17, %v8642_v33  ;;  %v3651_v28 = vmul.f32 1.442695, %v3469_v30  ;;  %6511 = vpow2.f32 %v3639_v10  ;;  %v3931_v11 = vsel %vm844_vm0, %v8930_v25, 0.0  ;;  %v10191_v30 = vld [vmem:[#allocation73_spill] sm:$0xff]  ;;  %v10192_v25 = vld [vmem:[#allocation26_spill] sm:$0xff] }
 0x316   : > { %v8920_v54 = vpop.xlane.xlu0 %3296  ;;  %v3409_v10 = vsel %vm844_vm0, %v8593_v8, -inf  ;;  %v3647_v27 = vmul.f32 1.442695, %v3467_v45 }
 0x317   : > { %v3653_v31 = vmul.f32 1.442695, %v3470_v21 }
 0x318   : > { %3395 = vmax.xlane.f32.xlu1 %v3394_v1  ;;  %v6498_v14 = vpop.eup %6497  ;;  %v3940_v1 = vsel %vm844_vm0, %v8924_v13, 0.0  ;;  %v3468_v13 = vsub.f32 %v10192_v25, %v8658_v32 }
 0x319   : > { %3938 = vadd.xlane.f32.xlu0 %v3937_v55  ;;  %v8934_v4 = vpop.xlane.xlu1 %3299  ;;  %v4321_v62 = vmul.f32 %v6498_v14, %v10190_v38  ;;  %v8939_v18 = vpop.eup %6499 }
 0x31a   : > { %v3843_v24 = vpop.xlane.xlu0 %3842 }
 0x31b   : > { %v6502_v33 = vpop.eup %6501  ;;  %v5764_v55 = vpack.c.bf16 %v4321_v62, %v4321_v62  ;;  %6513 = vrcp.f32 %v3843_v24  ;;  %v10193_v62 = vld [vmem:[#allocation74_spill] sm:$0xff] }
 0x31c   : > { %3941 = vadd.xlane.f32.xlu1 %v3940_v1  ;;  %v6504_v0 = vpop.eup %6503  ;;  %6515 = vpow2.f32 %v3641_v19  ;;  %v4322_v38 = vmul.f32 %v6502_v33, %v10191_v30  ;;  %v10194_v19 = vld [vmem:[#allocation27_spill] sm:$0xff]  ;;  %v3934_v33 = vsel %vm844_vm0, %v8939_v18, 0.0  ;;  %v10195_v30 = vld [vmem:[#allocation77_spill] sm:$0xff] }
 0x31d   : > { %3932 = vadd.xlane.f32.xlu0 %v3931_v11  ;;  %v3846_v14 = vpop.xlane.xlu1 %3845  ;;  %6517 = vpow2.f32 %v3651_v28  ;;  %4961 = vst.msk [vmem:[%s8881_s13 + $0x28] sm:$0xf] %vm2902_vm1, %v5764_v55  ;;  %v4319_v24 = vmul.f32 %v6504_v0, %v10193_v62  ;;  %v3473_v21 = vsub.f32 %v10194_v19, %v8660_v26  ;;  %v3403_v26 = vsel %vm844_vm0, %v8608_v5, -inf  ;;  %v10196_v0 = vld [vmem:[#allocation29_spill] sm:$0xff] }
 0x31e   : > { %v3837_v17 = vpop.xlane.xlu0 %3836  ;;  %v5765_v11 = vpack.c.bf16 %v4322_v38, %v4322_v38  ;;  %6519 = vrcp.f32 %v3846_v14  ;;  %v3649_v55 = vmul.f32 1.442695, %v3468_v13  ;;  %v3474_v38 = vsub.f32 %v10196_v0, %v8674_v46  ;;  %v10198_v46 = vld [vmem:[#allocation30_spill] sm:$0xff] }
 0x31f   : > { %v6506_v1 = vpop.eup %6505  ;;  %v5762_v28 = vpack.c.bf16 %v4319_v24, %v4319_v24  ;;  %6521 = vrcp.f32 %v3837_v17  ;;  %v3659_v17 = vmul.f32 1.442695, %v3473_v21  ;;  %v3412_v62 = vsel %vm844_vm0, %v8617_v37, -inf }
 0x320   : > { %v4320_v45 = vmul.f32 %v6506_v1, %v10195_v30  ;;  %3935 = vadd.xlane.f32.xlu1 %v3934_v33  ;;  %6523 = vpow2.f32 %v3653_v31  ;;  %4962 = vst.msk [vmem:[%s8881_s13 + $0x2c] sm:$0xf] %vm2902_vm1, %v5765_v11  ;;  %v10197_v31 = vld [vmem:[#allocation28_spill] sm:$0xff]  ;;  %v8972_v24 = vpop.eup %6507  ;;  %v3472_v13 = vsub.f32 %v10198_v46, %v8686_v40 }
 0x321   : > { %3410 = vmax.xlane.f32.xlu0 %v3409_v10  ;;  %v3840_v32 = vpop.xlane.xlu1 %3839  ;;  %4959 = vst.msk [vmem:[%s8881_s13 + $0x20] sm:$0xf] %vm2902_vm1, %v5762_v28  ;;  %v3471_v10 = vsub.f32 %v10197_v31, %v8676_v56  ;;  %v10199_v56 = vld [vmem:[#allocation31_spill] sm:$0xff]  ;;  %v8984_v11 = vpop.eup %6509  ;;  %v3406_v28 = vsel %vm844_vm0, %v8634_v58, -inf  ;;  %v3949_v30 = vsel %vm844_vm0, %v8972_v24, 0.0 }
 0x322   : > { %v8960_v25 = vpop.xlane.xlu0 %3314  ;;  %v5763_v14 = vpack.c.bf16 %v4320_v45, %v4320_v45  ;;  %6525 = vrcp.f32 %v3840_v32  ;;  %v3477_v21 = vsub.f32 %v10199_v56, %v8688_v53  ;;  %v8990_v40 = vpop.eup %6511  ;;  %v3657_v32 = vmul.f32 1.442695, %v3472_v13 }
 0x323   : > { %6527 = vpow2.f32 %v3647_v27  ;;  %v3661_v27 = vmul.f32 1.442695, %v3474_v38  ;;  %v3655_v33 = vmul.f32 1.442695, %v3471_v10  ;;  %10200 = vst [vmem:[#allocation19_spill] sm:$0xff] %v8990_v40  ;;  %v3952_v13 = vsel %vm844_vm0, %v8984_v11, 0.0 }
 0x324   : > { %4960 = vst.msk [vmem:[%s8881_s13 + $0x24] sm:$0xf] %vm2902_vm1, %v5763_v14  ;;  %3413 = vmax.xlane.f32.xlu1 %v3412_v62  ;;  %6529 = vpow2.f32 %v3649_v55  ;;  %v3667_v14 = vmul.f32 1.442695, %v3477_v21  ;;  %v10204_v62 = vld [vmem:[#allocation32_spill] sm:$0xff] }
 0x325   : > { %3404 = vmax.xlane.f32.xlu0 %v3403_v26  ;;  %v8978_v1 = vpop.xlane.xlu1 %3317  ;;  %6531 = vpow2.f32 %v3659_v17  ;;  %v10201_v26 = vld [vmem:[#allocation33_spill] sm:$0xff]  ;;  %v10203_v17 = vld [vmem:[#allocation82_spill] sm:$0xff]  ;;  %v3475_v46 = vsub.f32 %v10204_v62, %v8698_v63 }
 0x326   : > { %v8980_v19 = vpop.xlane.xlu0 %3308  ;;  %v3478_v55 = vsub.f32 %v10201_v26, %v8696_v15  ;;  %6533 = vpow2.f32 %v3661_v27  ;;  %v3943_v15 = vsel %vm844_vm0, %v8990_v40, 0.0  ;;  %v10206_v62 = vld [vmem:[#allocation34_spill] sm:$0xff] }
 0x327   : > { %6535 = vpow2.f32 %v3655_v33  ;;  %v3476_v40 = vsub.f32 %v10206_v62, %v8708_v57  ;;  %v10209_v57 = vld [vmem:[#allocation89_spill] sm:$0xff] }
 0x328   : > { %3407 = vmax.xlane.f32.xlu1 %v3406_v28  ;;  %v6514_v45 = vpop.eup %6513  ;;  %v3669_v21 = vmul.f32 1.442695, %v3478_v55 }
 0x329   : > { %3950 = vadd.xlane.f32.xlu0 %v3949_v30  ;;  %v8994_v53 = vpop.xlane.xlu1 %3311  ;;  %v8996_v38 = vpop.eup %6515  ;;  %v4325_v31 = vmul.f32 %v6514_v45, %v10203_v17  ;;  %v10205_v30 = vld [vmem:[#allocation85_spill] sm:$0xff] }
 0x32a   : > { %v3855_v0 = vpop.xlane.xlu0 %3854  ;;  %10202 = vst [vmem:[#allocation66_spill] sm:$0xff] %v8996_v38  ;;  %v8999_v10 = vpop.eup %6517  ;;  %v3946_v63 = vsel %vm844_vm0, %v8996_v38, 0.0 }
 0x32b   : > { %v6520_v56 = vpop.eup %6519  ;;  %v5768_v28 = vpack.c.bf16 %v4325_v31, %v4325_v31  ;;  %6537 = vrcp.f32 %v3855_v0  ;;  %v10207_v0 = vld [vmem:[#allocation86_spill] sm:$0xff] }
 0x32c   : > { %3953 = vadd.xlane.f32.xlu1 %v3952_v13  ;;  %v6522_v27 = vpop.eup %6521  ;;  %6539 = vpow2.f32 %v3657_v32  ;;  %v4326_v33 = vmul.f32 %v6520_v56, %v10205_v30  ;;  %v3961_v32 = vsel %vm844_vm0, %v8999_v10, 0.0  ;;  %v3663_v13 = vmul.f32 1.442695, %v3475_v46 }
 0x32d   : > { %3944 = vadd.xlane.f32.xlu0 %v3943_v15  ;;  %v3858_v45 = vpop.xlane.xlu1 %3857  ;;  %v9010_v17 = vpop.eup %6523  ;;  %6541 = vpow2.f32 %v3667_v14  ;;  %4965 = vst.msk [vmem:[%s8881_s13 + $0x38] sm:$0xf] %vm2902_vm1, %v5768_v28  ;;  %v4323_v31 = vmul.f32 %v6522_v27, %v10207_v0  ;;  %v10208_v15 = vld [vmem:[#allocation35_spill] sm:$0xff]  ;;  %v3665_v27 = vmul.f32 1.442695, %v3476_v40 }
 0x32e   : > { %v3849_v26 = vpop.xlane.xlu0 %3848  ;;  %v3481_v56 = vsub.f32 %v10208_v15, %v8710_v47  ;;  %v5769_v30 = vpack.c.bf16 %v4326_v33, %v4326_v33  ;;  %6543 = vrcp.f32 %v3858_v45  ;;  %v3964_v47 = vsel %vm844_vm0, %v9010_v17, 0.0  ;;  %v10210_v33 = vld [vmem:[#allocation37_spill] sm:$0xff] }
 0x32f   : > { %v6526_v55 = vpop.eup %6525  ;;  %v5766_v38 = vpack.c.bf16 %v4323_v31, %v4323_v31  ;;  %6545 = vrcp.f32 %v3849_v26  ;;  %v3482_v45 = vsub.f32 %v10210_v33, %v8722_v61  ;;  %v10213_v61 = vld [vmem:[#allocation38_spill] sm:$0xff]  ;;  %v10217_v33 = vld [vmem:[#allocation41_spill] sm:$0xff] }
 0x330   : > { %v9021_v14 = vpop.eup %6527  ;;  %v4324_v62 = vmul.f32 %v6526_v55, %v10209_v57  ;;  %3947 = vadd.xlane.f32.xlu1 %v3946_v63  ;;  %6547 = vpow2.f32 %v3669_v21  ;;  %4966 = vst.msk [vmem:[%s8881_s13 + $0x3c] sm:$0xf] %vm2902_vm1, %v5769_v30  ;;  %v3675_v21 = vmul.f32 1.442695, %v3481_v56  ;;  %v10211_v63 = vld [vmem:[#allocation36_spill] sm:$0xff]  ;;  %v3480_v40 = vsub.f32 %v10213_v61, %v8736_v59 }
 0x331   : > { %3962 = vadd.xlane.f32.xlu0 %v3961_v32  ;;  %v3852_v28 = vpop.xlane.xlu1 %3851  ;;  %4963 = vst.msk [vmem:[%s8881_s13 + $0x30] sm:$0xf] %vm2902_vm1, %v5766_v38  ;;  %v9034_v26 = vpop.eup %6529  ;;  %v3479_v31 = vsub.f32 %v10211_v63, %v8724_v42  ;;  %v3955_v32 = vsel %vm844_vm0, %v9021_v14, 0.0  ;;  %v10214_v42 = vld [vmem:[#allocation39_spill] sm:$0xff] }
 0x332   : > { %v9026_v46 = vpop.xlane.xlu0 %3326  ;;  %v5767_v0 = vpack.c.bf16 %v4324_v62, %v4324_v62  ;;  %6549 = vrcp.f32 %v3852_v28  ;;  %v9040_v55 = vpop.eup %6531  ;;  %v3485_v56 = vsub.f32 %v10214_v42, %v8738_v39  ;;  %v3958_v62 = vsel %vm844_vm0, %v9034_v26, 0.0  ;;  %v10220_v42 = vld [vmem:[#allocation40_spill] sm:$0xff] }
 0x333   : > { %6551 = vpow2.f32 %v3663_v13  ;;  %10212 = vst [vmem:[#allocation21_spill] sm:$0xff] %v9040_v55  ;;  %v3677_v13 = vmul.f32 1.442695, %v3482_v45  ;;  %v9052_v30 = vpop.eup %6533  ;;  %v3671_v57 = vmul.f32 1.442695, %v3479_v31  ;;  %v3973_v28 = vsel %vm844_vm0, %v9040_v55, 0.0 }
 0x334   : > { %4964 = vst.msk [vmem:[%s8881_s13 + $0x34] sm:$0xf] %vm2902_vm1, %v5767_v0  ;;  %3965 = vadd.xlane.f32.xlu1 %v3964_v47  ;;  %6553 = vpow2.f32 %v3665_v27  ;;  %10215 = vst [vmem:[#allocation20_spill] sm:$0xff] %v9052_v30  ;;  %v9058_v59 = vpop.eup %6535  ;;  %v3673_v27 = vmul.f32 1.442695, %v3480_v40  ;;  %v3486_v45 = vsub.f32 %v10217_v33, %v8746_v52  ;;  %v10219_v31 = vld [vmem:[#allocation94_spill] sm:$0xff] }
 0x335   : > { %3956 = vadd.xlane.f32.xlu0 %v3955_v32  ;;  %v9046_v38 = vpop.xlane.xlu1 %3329  ;;  %6555 = vpow2.f32 %v3675_v21  ;;  %10216 = vst [vmem:[#allocation22_spill] sm:$0xff] %v9058_v59  ;;  %v3683_v63 = vmul.f32 1.442695, %v3485_v56  ;;  %v3976_v40 = vsel %vm844_vm0, %v9052_v30, 0.0  ;;  %v3967_v52 = vsel %vm844_vm0, %v9058_v59, 0.0  ;;  %v10222_v59 = vld [vmem:[#allocation42_spill] sm:$0xff] }
 0x336   : > { %v9048_v15 = vpop.xlane.xlu0 %3320  ;;  %6557 = vpow2.f32 %v3677_v13  ;;  %v3685_v56 = vmul.f32 1.442695, %v3486_v45  ;;  %v3484_v30 = vsub.f32 %v10222_v59, %v8756_v43  ;;  %v10225_v43 = vld [vmem:[#allocation101_spill] sm:$0xff] }
 0x337   : > { %6559 = vpow2.f32 %v3671_v57 }
 0x338   : > { %3959 = vadd.xlane.f32.xlu1 %v3958_v62  ;;  %v6538_v47 = vpop.eup %6537  ;;  %v3483_v62 = vsub.f32 %v10220_v42, %v8748_v20 }
 0x339   : > { %3974 = vadd.xlane.f32.xlu0 %v3973_v28  ;;  %v9062_v39 = vpop.xlane.xlu1 %3323  ;;  %v9064_v21 = vpop.eup %6539  ;;  %v4329_v32 = vmul.f32 %v6538_v47, %v10219_v31  ;;  %v10221_v47 = vld [vmem:[#allocation97_spill] sm:$0xff] }
 0x33a   : > { %v3867_v0 = vpop.xlane.xlu0 %3866  ;;  %10218 = vst [vmem:[#allocation23_spill] sm:$0xff] %v9064_v21  ;;  %v9067_v61 = vpop.eup %6541  ;;  %v3970_v20 = vsel %vm844_vm0, %v9064_v21, 0.0 }
 0x33b   : > { %v6544_v28 = vpop.eup %6543  ;;  %v5772_v33 = vpack.c.bf16 %v4329_v32, %v4329_v32  ;;  %6561 = vrcp.f32 %v3867_v0  ;;  %v10223_v0 = vld [vmem:[#allocation98_spill] sm:$0xff] }
 0x33c   : > { %3977 = vadd.xlane.f32.xlu1 %v3976_v40  ;;  %v6546_v13 = vpop.eup %6545  ;;  %6563 = vpow2.f32 %v3673_v27  ;;  %v4330_v57 = vmul.f32 %v6544_v28, %v10221_v47  ;;  %v3985_v27 = vsel %vm844_vm0, %v9067_v61, 0.0  ;;  %v3679_v40 = vmul.f32 1.442695, %v3483_v62 }
 0x33d   : > { %3968 = vadd.xlane.f32.xlu0 %v3967_v52  ;;  %v3870_v31 = vpop.xlane.xlu1 %3869  ;;  %v9078_v42 = vpop.eup %6547  ;;  %6565 = vpow2.f32 %v3683_v63  ;;  %4969 = vst.msk [vmem:[%s8881_s13 + $0x48] sm:$0xf] %vm2902_vm1, %v5772_v33  ;;  %v4327_v32 = vmul.f32 %v6546_v13, %v10223_v0  ;;  %v10224_v52 = vld [vmem:[#allocation43_spill] sm:$0xff]  ;;  %v10226_v33 = vld [vmem:[#allocation45_spill] sm:$0xff]  ;;  %v10227_v0 = vld [vmem:[#allocation44_spill] sm:$0xff] }
 0x33e   : > { %v3861_v55 = vpop.xlane.xlu0 %3860  ;;  %v3489_v28 = vsub.f32 %v10224_v52, %v8758_v9  ;;  %v5773_v47 = vpack.c.bf16 %v4330_v57, %v4330_v57  ;;  %6567 = vrcp.f32 %v3870_v31  ;;  %v3490_v13 = vsub.f32 %v10226_v33, %v8770_v51 }
 0x33f   : > { %v6550_v45 = vpop.eup %6549  ;;  %v5770_v21 = vpack.c.bf16 %v4327_v32, %v4327_v32  ;;  %6569 = vrcp.f32 %v3861_v55  ;;  %v3988_v57 = vsel %vm844_vm0, %v9078_v42, 0.0  ;;  %v3681_v31 = vmul.f32 1.442695, %v3484_v30  ;;  %v10229_v30 = vld [vmem:[#allocation47_spill] sm:$0xff] }
 0x340   : > { %v9089_v63 = vpop.eup %6551  ;;  %v4328_v59 = vmul.f32 %v6550_v45, %v10225_v43  ;;  %3971 = vadd.xlane.f32.xlu1 %v3970_v20  ;;  %6571 = vpow2.f32 %v3685_v56  ;;  %4970 = vst.msk [vmem:[%s8881_s13 + $0x4c] sm:$0xf] %vm2902_vm1, %v5773_v47  ;;  %v3487_v32 = vsub.f32 %v10227_v0, %v8772_v6  ;;  %v3691_v51 = vmul.f32 1.442695, %v3489_v28  ;;  %v10228_v20 = vld [vmem:[#allocation46_spill] sm:$0xff]  ;;  %v10233_v0 = vld [vmem:[#allocation48_spill] sm:$0xff] }
 0x341   : > { %3986 = vadd.xlane.f32.xlu0 %v3985_v27  ;;  %v3864_v62 = vpop.xlane.xlu1 %3863  ;;  %4967 = vst.msk [vmem:[%s8881_s13 + $0x40] sm:$0xf] %vm2902_vm1, %v5770_v21  ;;  %v9104_v56 = vpop.eup %6553  ;;  %v3488_v27 = vsub.f32 %v10228_v20, %v8784_v7  ;;  %v3979_v45 = vsel %vm844_vm0, %v9089_v63, 0.0  ;;  %v3693_v6 = vmul.f32 1.442695, %v3490_v13  ;;  %v3493_v21 = vsub.f32 %v10229_v30, %v8786_v48  ;;  %v10230_v7 = vld [vmem:[#allocation49_spill] sm:$0xff] }
 0x342   : > { %v9096_v9 = vpop.xlane.xlu0 %3338  ;;  %v5771_v55 = vpack.c.bf16 %v4328_v59, %v4328_v59  ;;  %6573 = vrcp.f32 %v3864_v62  ;;  %v9110_v52 = vpop.eup %6555  ;;  %v3687_v28 = vmul.f32 1.442695, %v3487_v32  ;;  %v3494_v43 = vsub.f32 %v10230_v7, %v8794_v49 }
 0x343   : > { %6575 = vpow2.f32 %v3679_v40  ;;  %v9122_v59 = vpop.eup %6557  ;;  %v3689_v33 = vmul.f32 1.442695, %v3488_v27  ;;  %v3982_v62 = vsel %vm844_vm0, %v9104_v56, 0.0  ;;  %v3997_v13 = vsel %vm844_vm0, %v9110_v52, 0.0  ;;  %v10234_v27 = vld [vmem:[#allocation106_spill] sm:$0xff] }
 0x344   : > { %4968 = vst.msk [vmem:[%s8881_s13 + $0x44] sm:$0xf] %vm2902_vm1, %v5771_v55  ;;  %3989 = vadd.xlane.f32.xlu1 %v3988_v57  ;;  %6577 = vpow2.f32 %v3681_v31  ;;  %10231 = vst [vmem:[#allocation25_spill] sm:$0xff] %v9122_v59  ;;  %v9128_v48 = vpop.eup %6559  ;;  %v3699_v31 = vmul.f32 1.442695, %v3493_v21  ;;  %v3491_v49 = vsub.f32 %v10233_v0, %v8796_v22  ;;  %v4000_v7 = vsel %vm844_vm0, %v9122_v59, 0.0 }
 0x345   : > { %3980 = vadd.xlane.f32.xlu0 %v3979_v45  ;;  %v9116_v47 = vpop.xlane.xlu1 %3341  ;;  %6579 = vpow2.f32 %v3691_v51  ;;  %10232 = vst [vmem:[#allocation24_spill] sm:$0xff] %v9128_v48  ;;  %v3701_v20 = vmul.f32 1.442695, %v3494_v43  ;;  %v10235_v43 = vld [vmem:[#allocation50_spill] sm:$0xff] }
 0x346   : > { %v9118_v40 = vpop.xlane.xlu0 %3332  ;;  %6581 = vpow2.f32 %v3693_v6  ;;  %v3991_v6 = vsel %vm844_vm0, %v9128_v48, 0.0  ;;  %v10237_v48 = vld [vmem:[#allocation110_spill] sm:$0xff] }
 0x347   : > { %6583 = vpow2.f32 %v3687_v28  ;;  %v3695_v28 = vmul.f32 1.442695, %v3491_v49  ;;  %v10238_v49 = vld [vmem:[#allocation51_spill] sm:$0xff] }
 0x348   : > { %3983 = vadd.xlane.f32.xlu1 %v3982_v62  ;;  %v6562_v57 = vpop.eup %6561  ;;  %6585 = vpow2.f32 %v3689_v33 }
 0x349   : > { %3998 = vadd.xlane.f32.xlu0 %v3997_v13  ;;  %v9132_v32 = vpop.xlane.xlu1 %3335  ;;  %v9134_v51 = vpop.eup %6563  ;;  %v4333_v45 = vmul.f32 %v6562_v57, %v10234_v27  ;;  %v3492_v13 = vsub.f32 %v10235_v43, %v8804_v12  ;;  %v10236_v57 = vld [vmem:[#allocation109_spill] sm:$0xff] }
 0x34a   : > { %v3879_v55 = vpop.xlane.xlu0 %3878  ;;  %v9137_v30 = vpop.eup %6565 }
 0x34b   : > { %v6568_v22 = vpop.eup %6567  ;;  %v5776_v21 = vpack.c.bf16 %v4333_v45, %v4333_v45  ;;  %6587 = vrcp.f32 %v3879_v55  ;;  %v3994_v55 = vsel %vm844_vm0, %v9134_v51, 0.0 }
 0x34c   : > { %4001 = vadd.xlane.f32.xlu1 %v4000_v7  ;;  %v6570_v62 = vpop.eup %6569  ;;  %6589 = vpow2.f32 %v3699_v31  ;;  %v4334_v33 = vmul.f32 %v6568_v22, %v10236_v57  ;;  %v3497_v7 = vsub.f32 %v10238_v49, %v8806_v29 }
 0x34d   : > { %3992 = vadd.xlane.f32.xlu0 %v3991_v6  ;;  %v3882_v0 = vpop.xlane.xlu1 %3881  ;;  %v9146_v59 = vpop.eup %6571  ;;  %6591 = vpow2.f32 %v3701_v20  ;;  %4973 = vst.msk [vmem:[%s8881_s13 + $0x58] sm:$0xf] %vm2902_vm1, %v5776_v21  ;;  %v4331_v45 = vmul.f32 %v6570_v62, %v10237_v48  ;;  %v4009_v6 = vsel %vm844_vm0, %v9137_v30, 0.0  ;;  %v10240_v21 = vld [vmem:[#allocation111_spill] sm:$0xff]  ;;  %v3697_v48 = vmul.f32 1.442695, %v3492_v13 }
 0x34e   : > { %v3807_v27 = vpop.xlane.xlu0 %3806  ;;  %v5777_v12 = vpack.c.bf16 %v4334_v33, %v4334_v33  ;;  %6593 = vrcp.f32 %v3882_v0  ;;  %v10241_v62 = vld [vmem:[#allocation53_spill] sm:$0xff]  ;;  %v10242_v0 = vld [vmem:[#allocation52_spill] sm:$0xff] }
 0x34f   : > { %v6574_v31 = vpop.eup %6573  ;;  %v5774_v20 = vpack.c.bf16 %v4331_v45, %v4331_v45  ;;  %6595 = vrcp.f32 %v3807_v27  ;;  %v3498_v29 = vsub.f32 %v10241_v62, %v8818_v41  ;;  %v3495_v49 = vsub.f32 %v10242_v0, %v8820_v23 }
 0x350   : > { %v9157_v22 = vpop.eup %6575  ;;  %v4332_v43 = vmul.f32 %v6574_v31, %v10240_v21  ;;  %3995 = vadd.xlane.f32.xlu1 %v3994_v55  ;;  %6597 = vpow2.f32 %v3695_v28  ;;  %4974 = vst.msk [vmem:[%s8881_s13 + $0x5c] sm:$0xf] %vm2902_vm1, %v5777_v12  ;;  %v3707_v55 = vmul.f32 1.442695, %v3497_v7  ;;  %v4012_v28 = vsel %vm844_vm0, %v9146_v59, 0.0  ;;  %v10245_v31 = vld [vmem:[#allocation54_spill] sm:$0xff] }
 0x351   : > { %10239 = vst [vmem:[#allocation70_spill] sm:$0xff] %v9157_v22  ;;  %4010 = vadd.xlane.f32.xlu0 %v4009_v6  ;;  %v3810_v57 = vpop.xlane.xlu1 %3809  ;;  %4971 = vst.msk [vmem:[%s8881_s13 + $0x50] sm:$0xf] %vm2902_vm1, %v5774_v20  ;;  %v9168_v27 = vpop.eup %6577  ;;  %v4003_v41 = vsel %vm844_vm0, %v9157_v22, 0.0  ;;  %v3709_v23 = vmul.f32 1.442695, %v3498_v29  ;;  %v3496_v12 = vsub.f32 %v10245_v31, %v8832_v2 }
 0x352   : > { %v3873_v33 = vpop.xlane.xlu0 %3872  ;;  %v5775_v45 = vpack.c.bf16 %v4332_v43, %v4332_v43  ;;  %6599 = vrcp.f32 %v3810_v57  ;;  %10243 = vst [vmem:[#allocation73_spill] sm:$0xff] %v9168_v27  ;;  %v9174_v13 = vpop.eup %6579  ;;  %v3703_v21 = vmul.f32 1.442695, %v3495_v49  ;;  %v10247_v43 = vld [vmem:[#allocation55_spill] sm:$0xff]  ;;  %v10249_v49 = vld [vmem:[#allocation57_spill] sm:$0xff]  ;;  %v10251_v31 = vld [vmem:[#allocation56_spill] sm:$0xff] }
 0x353   : > { %6601 = vrcp.f32 %v3873_v33  ;;  %10244 = vst [vmem:[#allocation26_spill] sm:$0xff] %v9174_v13  ;;  %v9182_v20 = vpop.eup %6581  ;;  %v3501_v62 = vsub.f32 %v10247_v43, %v8846_v60  ;;  %v4021_v29 = vsel %vm844_vm0, %v9174_v13, 0.0  ;;  %v3705_v0 = vmul.f32 1.442695, %v3496_v12  ;;  %v10252_v43 = vld [vmem:[#allocation113_spill] sm:$0xff]  ;;  %v10256_v22 = vld [vmem:[#allocation60_spill] sm:$0xff] }
 0x354   : > { %4972 = vst.msk [vmem:[%s8881_s13 + $0x54] sm:$0xf] %vm2902_vm1, %v5775_v45  ;;  %4013 = vadd.xlane.f32.xlu1 %v4012_v28  ;;  %6603 = vpow2.f32 %v3697_v48  ;;  %10246 = vst [vmem:[#allocation74_spill] sm:$0xff] %v9182_v20  ;;  %v9186_v57 = vpop.eup %6583  ;;  %v4006_v48 = vsel %vm844_vm0, %v9168_v27, 0.0  ;;  %v3502_v60 = vsub.f32 %v10249_v49, %v8858_v36  ;;  %v10254_v49 = vld [vmem:[#allocation59_spill] sm:$0xff] }
 0x355   : > { %4004 = vadd.xlane.f32.xlu0 %v4003_v41  ;;  %v3876_v6 = vpop.xlane.xlu1 %3875  ;;  %10248 = vst [vmem:[#allocation27_spill] sm:$0xff] %v9186_v57  ;;  %v9192_v2 = vpop.eup %6585  ;;  %v3715_v41 = vmul.f32 1.442695, %v3501_v62  ;;  %v4015_v36 = vsel %vm844_vm0, %v9186_v57, 0.0 }
 0x356   : > { %v9180_v7 = vpop.xlane.xlu0 %3350  ;;  %6605 = vrcp.f32 %v3876_v6  ;;  %v3499_v6 = vsub.f32 %v10251_v31, %v8860_v44  ;;  %v3717_v62 = vmul.f32 1.442695, %v3502_v60  ;;  %v10253_v44 = vld [vmem:[#allocation18_spill] sm:$0xff]  ;;  %v10255_v31 = vld [vmem:[#allocation115_spill] sm:$0xff] }
 0x357   : > { %6607 = vpow2.f32 %v3707_v55 }
 0x358   : > { %4007 = vadd.xlane.f32.xlu1 %v4006_v48  ;;  %v6588_v33 = vpop.eup %6587  ;;  %6609 = vpow2.f32 %v3709_v23  ;;  %v4024_v23 = vsel %vm844_vm0, %v9182_v20, 0.0  ;;  %v3711_v57 = vmul.f32 1.442695, %v3499_v6 }
 0x359   : > { %4022 = vadd.xlane.f32.xlu0 %v4021_v29  ;;  %v9196_v45 = vpop.xlane.xlu1 %3353  ;;  %v9198_v55 = vpop.eup %6589  ;;  %6611 = vpow2.f32 %v3703_v21  ;;  %v4337_v13 = vmul.f32 %v6588_v33, %v10252_v43  ;;  %v3500_v33 = vsub.f32 %v10254_v49, %v10253_v44  ;;  %v10258_v49 = vld [vmem:[#allocation117_spill] sm:$0xff] }
 0x35a   : > { %v3801_v28 = vpop.xlane.xlu0 %3800  ;;  %10250 = vst [vmem:[#allocation77_spill] sm:$0xff] %v9198_v55  ;;  %v9203_v48 = vpop.eup %6591  ;;  %v4033_v44 = vsel %vm844_vm0, %v9198_v55, 0.0 }
 0x35b   : > { %6613 = vrcp.f32 %v3801_v28  ;;  %v6594_v12 = vpop.eup %6593  ;;  %v5780_v29 = vpack.c.bf16 %v4337_v13, %v4337_v13  ;;  %v3505_v13 = vsub.f32 %v10256_v22, %v8900_v35  ;;  %v3713_v35 = vmul.f32 1.442695, %v3500_v33  ;;  %v10259_v22 = vld [vmem:[#allocation64_spill] sm:$0xff] }
 0x35c   : > { %4025 = vadd.xlane.f32.xlu1 %v4024_v23  ;;  %v6596_v21 = vpop.eup %6595  ;;  %6615 = vpow2.f32 %v3705_v0  ;;  %v4338_v43 = vmul.f32 %v6594_v12, %v10255_v31  ;;  %v10257_v0 = vld [vmem:[#allocation114_spill] sm:$0xff]  ;;  %v4018_v12 = vsel %vm844_vm0, %v9192_v2, 0.0  ;;  %v4036_v33 = vsel %vm844_vm0, %v9203_v48, 0.0 }
 0x35d   : > { %4016 = vadd.xlane.f32.xlu0 %v4015_v36  ;;  %v3804_v28 = vpop.xlane.xlu1 %3803  ;;  %v9214_v20 = vpop.eup %6597  ;;  %6617 = vpow2.f32 %v3715_v41  ;;  %4977 = vst.msk [vmem:[%s8881_s13 + $0x68] sm:$0xf] %vm2902_vm1, %v5780_v29  ;;  %v4313_v60 = vmul.f32 %v6596_v21, %v10257_v0  ;;  %v3506_v29 = vsub.f32 %v10259_v22, %v8918_v50  ;;  %v10260_v21 = vld [vmem:[#allocation116_spill] sm:$0xff]  ;;  %v10263_v22 = vld [vmem:[#allocation65_spill] sm:$0xff] }
 0x35e   : > { %v9212_v27 = vpop.xlane.xlu0 %3344  ;;  %v5781_v36 = vpack.c.bf16 %v4338_v43, %v4338_v43  ;;  %6619 = vrcp.f32 %v3804_v28 }
 0x35f   : > { %v6600_v23 = vpop.eup %6599  ;;  %v5756_v6 = vpack.c.bf16 %v4313_v60, %v4313_v60  ;;  %6621 = vpow2.f32 %v3717_v62  ;;  %v3723_v60 = vmul.f32 1.442695, %v3505_v13 }
 0x360   : > { %v6602_v41 = vpop.eup %6601  ;;  %v4314_v31 = vmul.f32 %v6600_v23, %v10258_v49  ;;  %4019 = vadd.xlane.f32.xlu1 %v4018_v12  ;;  %4978 = vst.msk [vmem:[%s8881_s13 + $0x6c] sm:$0xf] %vm2902_vm1, %v5781_v36  ;;  %6623 = vpow2.f32 %v3711_v57  ;;  %v10261_v23 = vld [vmem:[#allocation63_spill] sm:$0xff]  ;;  %v10262_v57 = vld [vmem:[#allocation118_spill] sm:$0xff] }
 0x361   : > { %4034 = vadd.xlane.f32.xlu0 %v4033_v44  ;;  %v4335_v43 = vmul.f32 %v6602_v41, %v10260_v21  ;;  %v9231_v28 = vpop.xlane.xlu1 %3347  ;;  %v9233_v55 = vpop.eup %6603  ;;  %4953 = vst.msk [vmem:[%s8881_s13 + $0x8] sm:$0xf] %vm2902_vm1, %v5756_v6  ;;  %v3503_v36 = vsub.f32 %v10261_v23, %v8920_v54  ;;  %v4027_v44 = vsel %vm844_vm0, %v9214_v20, 0.0  ;;  %v3725_v6 = vmul.f32 1.442695, %v3506_v29 }
 0x362   : > { %v3891_v0 = vpop.xlane.xlu0 %3890  ;;  %v5757_v62 = vpack.c.bf16 %v4314_v31, %v4314_v31  ;;  %v3504_v21 = vsub.f32 %v10263_v22, %v8934_v4  ;;  %v10266_v4 = vld [vmem:[#allocation119_spill] sm:$0xff] }
 0x363   : > { %v6606_v50 = vpop.eup %6605  ;;  %v5778_v12 = vpack.c.bf16 %v4335_v43, %v4335_v43  ;;  %6625 = vrcp.f32 %v3891_v0  ;;  %v4030_v0 = vsel %vm844_vm0, %v9233_v55, 0.0 }
 0x364   : > { %v9243_v41 = vpop.eup %6607  ;;  %4954 = vst.msk [vmem:[%s8881_s13 + $0xc] sm:$0xf] %vm2902_vm1, %v5757_v62  ;;  %v4336_v13 = vmul.f32 %v6606_v50, %v10262_v57  ;;  %4037 = vadd.xlane.f32.xlu1 %v4036_v33  ;;  %6627 = vpow2.f32 %v3713_v35  ;;  %v3719_v33 = vmul.f32 1.442695, %v3503_v36  ;;  %v10265_v35 = vld [vmem:[#allocation67_spill] sm:$0xff] }
 0x365   : > { %4028 = vadd.xlane.f32.xlu0 %v4027_v44  ;;  %4975 = vst.msk [vmem:[%s8881_s13 + $0x60] sm:$0xf] %vm2902_vm1, %v5778_v12  ;;  %v3894_v49 = vpop.xlane.xlu1 %3893  ;;  %v9250_v31 = vpop.eup %6609  ;;  %6629 = vpow2.f32 %v3723_v60  ;;  %v3509_v29 = vsub.f32 %v10265_v35, %v8960_v25  ;;  %v4045_v50 = vsel %vm844_vm0, %v9243_v41, 0.0  ;;  %v3721_v57 = vmul.f32 1.442695, %v3504_v21  ;;  %v10271_v21 = vld [vmem:[#allocation71_spill] sm:$0xff] }
 0x366   : > { %v3885_v54 = vpop.xlane.xlu0 %3884  ;;  %v5779_v43 = vpack.c.bf16 %v4336_v13, %v4336_v13  ;;  %v9256_v62 = vpop.eup %6611  ;;  %6631 = vrcp.f32 %v3894_v49  ;;  %v4048_v25 = vsel %vm844_vm0, %v9250_v31, 0.0  ;;  %v10268_v13 = vld [vmem:[#allocation69_spill] sm:$0xff] }
 0x367   : > { %10264 = vst [vmem:[#allocation29_spill] sm:$0xff] %v9256_v62  ;;  %6633 = vrcp.f32 %v3885_v54  ;;  %v3510_v49 = vsub.f32 %v10268_v13, %v8978_v1  ;;  %v4039_v54 = vsel %vm844_vm0, %v9256_v62, 0.0  ;;  %v3731_v22 = vmul.f32 1.442695, %v3509_v29  ;;  %v10272_v1 = vld [vmem:[#allocation120_spill] sm:$0xff] }
 0x368   : > { %v6614_v23 = vpop.eup %6613  ;;  %4976 = vst.msk [vmem:[%s8881_s13 + $0x64] sm:$0xf] %vm2902_vm1, %v5779_v43  ;;  %4031 = vadd.xlane.f32.xlu1 %v4030_v0  ;;  %6635 = vpow2.f32 %v3725_v6  ;;  %v10270_v43 = vld [vmem:[#allocation68_spill] sm:$0xff] }
 0x369   : > { %4046 = vadd.xlane.f32.xlu0 %v4045_v50  ;;  %v4311_v60 = vmul.f32 %v6614_v23, %v10266_v4  ;;  %v3888_v12 = vpop.xlane.xlu1 %3887  ;;  %v9269_v36 = vpop.eup %6615  ;;  %v3507_v0 = vsub.f32 %v10270_v43, %v8980_v19  ;;  %v3508_v23 = vsub.f32 %v10271_v21, %v8994_v53  ;;  %v3733_v19 = vmul.f32 1.442695, %v3510_v49  ;;  %v10274_v29 = vld [vmem:[#allocation72_spill] sm:$0xff] }
 0x36a   : > { %v9265_v44 = vpop.xlane.xlu0 %3362  ;;  %10267 = vst [vmem:[#allocation28_spill] sm:$0xff] %v9269_v36  ;;  %6637 = vrcp.f32 %v3888_v12  ;;  %v9275_v6 = vpop.eup %6617 }
 0x36b   : > { %10269 = vst [vmem:[#allocation30_spill] sm:$0xff] %v9275_v6  ;;  %6639 = vpow2.f32 %v3719_v33  ;;  %v5754_v35 = vpack.c.bf16 %v4311_v60, %v4311_v60  ;;  %v6620_v50 = vpop.eup %6619  ;;  %v3513_v60 = vsub.f32 %v10274_v29, %v9026_v46  ;;  %v3729_v21 = vmul.f32 1.442695, %v3508_v23  ;;  %v10277_v46 = vld [vmem:[#allocation121_spill] sm:$0xff] }
 0x36c   : > { %4049 = vadd.xlane.f32.xlu1 %v4048_v25  ;;  %v4312_v4 = vmul.f32 %v6620_v50, %v10272_v1  ;;  %v9288_v33 = vpop.eup %6621  ;;  %6641 = vpow2.f32 %v3721_v57  ;;  %v4042_v25 = vsel %vm844_vm0, %v9269_v36, 0.0  ;;  %v10276_v57 = vld [vmem:[#allocation76_spill] sm:$0xff] }
 0x36d   : > { %4040 = vadd.xlane.f32.xlu0 %v4039_v54  ;;  %4951 = vst.msk [vmem:[%s8881_s13] sm:$0xf] %vm2902_vm1, %v5754_v35  ;;  %v9284_v12 = vpop.xlane.xlu1 %3365  ;;  %10273 = vst [vmem:[#allocation31_spill] sm:$0xff] %v9288_v33  ;;  %v9294_v53 = vpop.eup %6623  ;;  %6643 = vpow2.f32 %v3731_v22  ;;  %v3727_v54 = vmul.f32 1.442695, %v3507_v0  ;;  %v4057_v35 = vsel %vm844_vm0, %v9275_v6, 0.0  ;;  %v3514_v49 = vsub.f32 %v10276_v57, %v9046_v38 }
 0x36e   : > { %v9286_v13 = vpop.xlane.xlu0 %3356  ;;  %10275 = vst [vmem:[#allocation33_spill] sm:$0xff] %v9294_v53  ;;  %v5755_v43 = vpack.c.bf16 %v4312_v4, %v4312_v4  ;;  %6645 = vpow2.f32 %v3733_v19  ;;  %v3739_v0 = vmul.f32 1.442695, %v3513_v60  ;;  %v4060_v4 = vsel %vm844_vm0, %v9288_v33, 0.0  ;;  %v10279_v38 = vld [vmem:[#allocation75_spill] sm:$0xff]  ;;  %v10280_v60 = vld [vmem:[#allocation5_spill] sm:$0xff] }
 0x36f   : > { %6647 = vpow2.f32 %v3727_v54  ;;  %v3511_v23 = vsub.f32 %v10279_v38, %v9048_v15  ;;  %v3741_v19 = vmul.f32 1.442695, %v3514_v49  ;;  %v10281_v38 = vld [vmem:[#allocation78_spill] sm:$0xff] }
 0x370   : > { %v6626_v50 = vpop.eup %6625  ;;  %4043 = vadd.xlane.f32.xlu1 %v4042_v25  ;;  %4952 = vst.msk [vmem:[%s8881_s13 + $0x4] sm:$0xf] %vm2902_vm1, %v5755_v43  ;;  %v10284_v6 = vld [vmem:[#allocation122_spill] sm:$0xff] }
 0x371   : > { %4058 = vadd.xlane.f32.xlu0 %v4057_v35  ;;  %v4341_v1 = vmul.f32 %v6626_v50, %v10277_v46  ;;  %v9303_v29 = vpop.xlane.xlu1 %3359  ;;  %v9305_v22 = vpop.eup %6627  ;;  %v4051_v35 = vsel %vm844_vm0, %v9294_v53, 0.0 }
 0x372   : > { %v3903_v36 = vpop.xlane.xlu0 %3902  ;;  %10278 = vst [vmem:[#allocation82_spill] sm:$0xff] %v9305_v22  ;;  %v9309_v25 = vpop.eup %6629  ;;  %v4054_v15 = vsel %vm844_vm0, %v9305_v22, 0.0 }
 0x373   : > { %v5784_v43 = vpack.c.bf16 %v4341_v1, %v4341_v1  ;;  %v6632_v50 = vpop.eup %6631  ;;  %6649 = vrcp.f32 %v3903_v36  ;;  %v3512_v36 = vsub.f32 %v10281_v38, %v9062_v39 }
 0x374   : > { %4061 = vadd.xlane.f32.xlu1 %v4060_v4  ;;  %v6634_v57 = vpop.eup %6633  ;;  %6651 = vpow2.f32 %v3729_v21  ;;  %v4342_v46 = vmul.f32 %v6632_v50, %v10280_v60  ;;  %v10282_v4 = vld [vmem:[#allocation6_spill] sm:$0xff]  ;;  %v4069_v21 = vsel %vm844_vm0, %v9309_v25, 0.0  ;;  %v10283_v50 = vld [vmem:[#allocation79_spill] sm:$0xff] }
 0x375   : > { %4052 = vadd.xlane.f32.xlu0 %v4051_v35  ;;  %4981 = vst.msk [vmem:[%s8881_s13 + $0x78] sm:$0xf] %vm2902_vm1, %v5784_v43  ;;  %v3906_v33 = vpop.xlane.xlu1 %3905  ;;  %v9320_v1 = vpop.eup %6635  ;;  %6653 = vpow2.f32 %v3739_v0  ;;  %v4339_v35 = vmul.f32 %v6634_v57, %v10282_v4  ;;  %v3735_v43 = vmul.f32 1.442695, %v3511_v23  ;;  %v3517_v60 = vsub.f32 %v10283_v50, %v9096_v9 }
 0x376   : > { %v3897_v54 = vpop.xlane.xlu0 %3896  ;;  %v5785_v53 = vpack.c.bf16 %v4342_v46, %v4342_v46  ;;  %6655 = vrcp.f32 %v3906_v33  ;;  %v4072_v9 = vsel %vm844_vm0, %v9320_v1, 0.0  ;;  %v3737_v57 = vmul.f32 1.442695, %v3512_v36  ;;  %v10285_v33 = vld [vmem:[#allocation81_spill] sm:$0xff] }
 0x377   : > { %v6638_v49 = vpop.eup %6637  ;;  %v5782_v0 = vpack.c.bf16 %v4339_v35, %v4339_v35  ;;  %6657 = vrcp.f32 %v3897_v54  ;;  %v3518_v46 = vsub.f32 %v10285_v33, %v9116_v47  ;;  %v10287_v47 = vld [vmem:[#allocation83_spill] sm:$0xff] }
 0x378   : > { %v9329_v22 = vpop.eup %6639  ;;  %v4340_v62 = vmul.f32 %v6638_v49, %v10284_v6  ;;  %4055 = vadd.xlane.f32.xlu1 %v4054_v15  ;;  %6659 = vpow2.f32 %v3741_v19  ;;  %4982 = vst.msk [vmem:[%s8881_s13 + $0x7c] sm:$0xf] %vm2902_vm1, %v5785_v53  ;;  %v3747_v19 = vmul.f32 1.442695, %v3517_v60  ;;  %v10286_v53 = vld [vmem:[#allocation80_spill] sm:$0xff] }
 0x379   : > { %4070 = vadd.xlane.f32.xlu0 %v4069_v21  ;;  %v3900_v39 = vpop.xlane.xlu1 %3899  ;;  %4979 = vst.msk [vmem:[%s8881_s13 + $0x70] sm:$0xf] %vm2902_vm1, %v5782_v0  ;;  %v9342_v54 = vpop.eup %6641  ;;  %v3515_v15 = vsub.f32 %v10286_v53, %v9118_v40  ;;  %v4063_v38 = vsel %vm844_vm0, %v9329_v22, 0.0  ;;  %v3749_v21 = vmul.f32 1.442695, %v3518_v46  ;;  %v10288_v40 = vld [vmem:[#allocation84_spill] sm:$0xff] }
 0x37a   : > { %v9334_v23 = vpop.xlane.xlu0 %3374  ;;  %v5783_v6 = vpack.c.bf16 %v4340_v62, %v4340_v62  ;;  %6661 = vrcp.f32 %v3900_v39  ;;  %v9348_v4 = vpop.eup %6643  ;;  %v3516_v62 = vsub.f32 %v10287_v47, %v9132_v32  ;;  %v3521_v49 = vsub.f32 %v10288_v40, %v9180_v7  ;;  %v10293_v53 = vld [vmem:[#allocation7_spill] sm:$0xff] }
 0x37b   : > { %6663 = vpow2.f32 %v3735_v43  ;;  %v9360_v43 = vpop.eup %6645  ;;  %v3743_v50 = vmul.f32 1.442695, %v3515_v15  ;;  %v4066_v60 = vsel %vm844_vm0, %v9342_v54, 0.0  ;;  %v4081_v0 = vsel %vm844_vm0, %v9348_v4, 0.0  ;;  %v10294_v47 = vld [vmem:[#allocation87_spill] sm:$0xff] }
 0x37c   : > { %4980 = vst.msk [vmem:[%s8881_s13 + $0x74] sm:$0xf] %vm2902_vm1, %v5783_v6  ;;  %4073 = vadd.xlane.f32.xlu1 %v4072_v9  ;;  %6665 = vpow2.f32 %v3737_v57  ;;  %10289 = vst [vmem:[#allocation32_spill] sm:$0xff] %v9360_v43  ;;  %v9366_v32 = vpop.eup %6647  ;;  %v3745_v9 = vmul.f32 1.442695, %v3516_v62  ;;  %v10291_v57 = vld [vmem:[#allocation88_spill] sm:$0xff]  ;;  %v3519_v40 = vsub.f32 %v10294_v47, %v9212_v27 }
 0x37d   : > { %4064 = vadd.xlane.f32.xlu0 %v4063_v38  ;;  %v9354_v36 = vpop.xlane.xlu1 %3377  ;;  %6667 = vpow2.f32 %v3747_v19  ;;  %10290 = vst [vmem:[#allocation85_spill] sm:$0xff] %v9366_v32  ;;  %v3522_v33 = vsub.f32 %v10291_v57, %v9196_v45  ;;  %v3755_v19 = vmul.f32 1.442695, %v3521_v49  ;;  %v4084_v62 = vsel %vm844_vm0, %v9360_v43, 0.0 }
 0x37e   : > { %v9356_v35 = vpop.xlane.xlu0 %3368  ;;  %6669 = vpow2.f32 %v3749_v21  ;;  %v4075_v45 = vsel %vm844_vm0, %v9366_v32, 0.0  ;;  %v10296_v32 = vld [vmem:[#allocation90_spill] sm:$0xff] }
 0x37f   : > { %6671 = vpow2.f32 %v3743_v50  ;;  %v3757_v49 = vmul.f32 1.442695, %v3522_v33  ;;  %v3520_v43 = vsub.f32 %v10296_v32, %v9231_v28  ;;  %v10299_v28 = vld [vmem:[#allocation10_spill] sm:$0xff] }
 0x380   : > { %4067 = vadd.xlane.f32.xlu1 %v4066_v60  ;;  %v6650_v39 = vpop.eup %6649 }
 0x381   : > { %4082 = vadd.xlane.f32.xlu0 %v4081_v0  ;;  %v9370_v7 = vpop.xlane.xlu1 %3371  ;;  %v9372_v6 = vpop.eup %6651  ;;  %v4345_v15 = vmul.f32 %v6650_v39, %v10293_v53  ;;  %v10295_v39 = vld [vmem:[#allocation9_spill] sm:$0xff] }
 0x382   : > { %v3915_v46 = vpop.xlane.xlu0 %3914  ;;  %10292 = vst [vmem:[#allocation34_spill] sm:$0xff] %v9372_v6  ;;  %v9375_v38 = vpop.eup %6653  ;;  %v4078_v27 = vsel %vm844_vm0, %v9372_v6, 0.0 }
 0x383   : > { %v6656_v60 = vpop.eup %6655  ;;  %v5788_v0 = vpack.c.bf16 %v4345_v15, %v4345_v15  ;;  %6673 = vrcp.f32 %v3915_v46  ;;  %v10297_v46 = vld [vmem:[#allocation8_spill] sm:$0xff] }
 0x384   : > { %4085 = vadd.xlane.f32.xlu1 %v4084_v62  ;;  %v6658_v21 = vpop.eup %6657  ;;  %6675 = vpow2.f32 %v3745_v9  ;;  %v4346_v50 = vmul.f32 %v6656_v60, %v10295_v39  ;;  %v4093_v9 = vsel %vm844_vm0, %v9375_v38, 0.0  ;;  %v3751_v62 = vmul.f32 1.442695, %v3519_v40 }
 0x385   : > { %4076 = vadd.xlane.f32.xlu0 %v4075_v45  ;;  %v3918_v57 = vpop.xlane.xlu1 %3917  ;;  %v9386_v47 = vpop.eup %6659  ;;  %6677 = vpow2.f32 %v3755_v19  ;;  %4985 = vst.msk [vmem:[%s8881_s13 + $0x88] sm:$0xf] %vm2902_vm1, %v5788_v0  ;;  %v4343_v15 = vmul.f32 %v6658_v21, %v10297_v46  ;;  %v10298_v45 = vld [vmem:[#allocation91_spill] sm:$0xff]  ;;  %v3753_v21 = vmul.f32 1.442695, %v3520_v43 }
 0x386   : > { %v3909_v53 = vpop.xlane.xlu0 %3908  ;;  %v3525_v60 = vsub.f32 %v10298_v45, %v9265_v44  ;;  %v5789_v39 = vpack.c.bf16 %v4346_v50, %v4346_v50  ;;  %6679 = vrcp.f32 %v3918_v57  ;;  %v4096_v44 = vsel %vm844_vm0, %v9386_v47, 0.0  ;;  %v10300_v50 = vld [vmem:[#allocation93_spill] sm:$0xff] }
 0x387   : > { %v6662_v33 = vpop.eup %6661  ;;  %v5786_v6 = vpack.c.bf16 %v4343_v15, %v4343_v15  ;;  %6681 = vrcp.f32 %v3909_v53  ;;  %v3526_v57 = vsub.f32 %v10300_v50, %v9284_v12  ;;  %v10303_v12 = vld [vmem:[#allocation95_spill] sm:$0xff]  ;;  %v10307_v50 = vld [vmem:[#allocation100_spill] sm:$0xff] }
 0x388   : > { %v9397_v19 = vpop.eup %6663  ;;  %v4344_v32 = vmul.f32 %v6662_v33, %v10299_v28  ;;  %4079 = vadd.xlane.f32.xlu1 %v4078_v27  ;;  %6683 = vpow2.f32 %v3757_v49  ;;  %4986 = vst.msk [vmem:[%s8881_s13 + $0x8c] sm:$0xf] %vm2902_vm1, %v5789_v39  ;;  %v3763_v49 = vmul.f32 1.442695, %v3525_v60  ;;  %v10301_v27 = vld [vmem:[#allocation92_spill] sm:$0xff]  ;;  %v3524_v43 = vsub.f32 %v10303_v12, %v9303_v29 }
 0x389   : > { %4094 = vadd.xlane.f32.xlu0 %v4093_v9  ;;  %v3912_v0 = vpop.xlane.xlu1 %3911  ;;  %4983 = vst.msk [vmem:[%s8881_s13 + $0x80] sm:$0xf] %vm2902_vm1, %v5786_v6  ;;  %v9410_v53 = vpop.eup %6665  ;;  %v3523_v15 = vsub.f32 %v10301_v27, %v9286_v13  ;;  %v4087_v9 = vsel %vm844_vm0, %v9397_v19, 0.0  ;;  %v10304_v13 = vld [vmem:[#allocation96_spill] sm:$0xff] }
 0x38a   : > { %v9402_v40 = vpop.xlane.xlu0 %3386  ;;  %v5787_v46 = vpack.c.bf16 %v4344_v32, %v4344_v32  ;;  %6685 = vrcp.f32 %v3912_v0  ;;  %v9416_v33 = vpop.eup %6667  ;;  %v3529_v60 = vsub.f32 %v10304_v13, %v9334_v23  ;;  %v4090_v32 = vsel %vm844_vm0, %v9410_v53, 0.0  ;;  %v10310_v13 = vld [vmem:[#allocation99_spill] sm:$0xff] }
 0x38b   : > { %6687 = vpow2.f32 %v3751_v62  ;;  %10302 = vst [vmem:[#allocation86_spill] sm:$0xff] %v9416_v33  ;;  %v3765_v62 = vmul.f32 1.442695, %v3526_v57  ;;  %v9428_v39 = vpop.eup %6669  ;;  %v3759_v28 = vmul.f32 1.442695, %v3523_v15  ;;  %v4105_v0 = vsel %vm844_vm0, %v9416_v33, 0.0 }
 0x38c   : > { %4984 = vst.msk [vmem:[%s8881_s13 + $0x84] sm:$0xf] %vm2902_vm1, %v5787_v46  ;;  %4097 = vadd.xlane.f32.xlu1 %v4096_v44  ;;  %6689 = vpow2.f32 %v3753_v21  ;;  %10305 = vst [vmem:[#allocation35_spill] sm:$0xff] %v9428_v39  ;;  %v9434_v29 = vpop.eup %6671  ;;  %v3761_v21 = vmul.f32 1.442695, %v3524_v43  ;;  %v3530_v57 = vsub.f32 %v10307_v50, %v9354_v36  ;;  %v10309_v15 = vld [vmem:[#allocation11_spill] sm:$0xff] }
 0x38d   : > { %4088 = vadd.xlane.f32.xlu0 %v4087_v9  ;;  %v9422_v6 = vpop.xlane.xlu1 %3389  ;;  %6691 = vpow2.f32 %v3763_v49  ;;  %10306 = vst [vmem:[#allocation89_spill] sm:$0xff] %v9434_v29  ;;  %v3771_v27 = vmul.f32 1.442695, %v3529_v60  ;;  %v4108_v43 = vsel %vm844_vm0, %v9428_v39, 0.0  ;;  %v4099_v36 = vsel %vm844_vm0, %v9434_v29, 0.0  ;;  %v10312_v29 = vld [vmem:[#allocation102_spill] sm:$0xff] }
 0x38e   : > { %v9424_v45 = vpop.xlane.xlu0 %3380  ;;  %6693 = vpow2.f32 %v3765_v62  ;;  %v3773_v60 = vmul.f32 1.442695, %v3530_v57  ;;  %v3528_v39 = vsub.f32 %v10312_v29, %v9370_v7  ;;  %v10315_v7 = vld [vmem:[#allocation14_spill] sm:$0xff] }
 0x38f   : > { %6695 = vpow2.f32 %v3759_v28 }
 0x390   : > { %4091 = vadd.xlane.f32.xlu1 %v4090_v32  ;;  %v6674_v44 = vpop.eup %6673  ;;  %v3527_v32 = vsub.f32 %v10310_v13, %v9356_v35 }
 0x391   : > { %4106 = vadd.xlane.f32.xlu0 %v4105_v0  ;;  %v9438_v23 = vpop.xlane.xlu1 %3383  ;;  %v9440_v49 = vpop.eup %6675  ;;  %v4349_v9 = vmul.f32 %v6674_v44, %v10309_v15  ;;  %v10311_v44 = vld [vmem:[#allocation13_spill] sm:$0xff] }
 0x392   : > { %v3927_v46 = vpop.xlane.xlu0 %3926  ;;  %10308 = vst [vmem:[#allocation37_spill] sm:$0xff] %v9440_v49  ;;  %v9443_v12 = vpop.eup %6677  ;;  %v4102_v35 = vsel %vm844_vm0, %v9440_v49, 0.0 }
 0x393   : > { %v6680_v0 = vpop.eup %6679  ;;  %v5792_v50 = vpack.c.bf16 %v4349_v9, %v4349_v9  ;;  %6697 = vrcp.f32 %v3927_v46  ;;  %v10313_v46 = vld [vmem:[#allocation12_spill] sm:$0xff] }
 0x394   : > { %4109 = vadd.xlane.f32.xlu1 %v4108_v43  ;;  %v6682_v62 = vpop.eup %6681  ;;  %6699 = vpow2.f32 %v3761_v21  ;;  %v4350_v28 = vmul.f32 %v6680_v0, %v10311_v44  ;;  %v4117_v21 = vsel %vm844_vm0, %v9443_v12, 0.0  ;;  %v3767_v43 = vmul.f32 1.442695, %v3527_v32  ;;  %v10314_v0 = vld [vmem:[#allocation103_spill] sm:$0xff] }
 0x395   : > { %4100 = vadd.xlane.f32.xlu0 %v4099_v36  ;;  %v3930_v15 = vpop.xlane.xlu1 %3929  ;;  %v9454_v13 = vpop.eup %6683  ;;  %6701 = vpow2.f32 %v3771_v27  ;;  %4989 = vst.msk [vmem:[%s8881_s13 + $0x98] sm:$0xf] %vm2902_vm1, %v5792_v50  ;;  %v4347_v9 = vmul.f32 %v6682_v62, %v10313_v46  ;;  %v3533_v44 = vsub.f32 %v10314_v0, %v9402_v40 }
 0x396   : > { %v3921_v33 = vpop.xlane.xlu0 %3920  ;;  %v5793_v36 = vpack.c.bf16 %v4350_v28, %v4350_v28  ;;  %6703 = vrcp.f32 %v3930_v15  ;;  %v4120_v62 = vsel %vm844_vm0, %v9454_v13, 0.0  ;;  %v3769_v28 = vmul.f32 1.442695, %v3528_v39  ;;  %v10316_v15 = vld [vmem:[#allocation105_spill] sm:$0xff]  ;;  %v10318_v39 = vld [vmem:[#allocation107_spill] sm:$0xff] }
 0x397   : > { %v6686_v57 = vpop.eup %6685  ;;  %v5790_v49 = vpack.c.bf16 %v4347_v9, %v4347_v9  ;;  %6705 = vrcp.f32 %v3921_v33  ;;  %v3534_v46 = vsub.f32 %v10316_v15, %v9422_v6  ;;  %v3532_v6 = vsub.f32 %v10318_v39, %v9438_v23  ;;  %v10320_v15 = vld [vmem:[#allocation15_spill] sm:$0xff] }
 0x398   : > { %v9465_v27 = vpop.eup %6687  ;;  %v4348_v29 = vmul.f32 %v6686_v57, %v10315_v7  ;;  %4103 = vadd.xlane.f32.xlu1 %v4102_v35  ;;  %6707 = vpow2.f32 %v3773_v60  ;;  %4990 = vst.msk [vmem:[%s8881_s13 + $0x9c] sm:$0xf] %vm2902_vm1, %v5793_v36  ;;  %v3779_v60 = vmul.f32 1.442695, %v3533_v44  ;;  %v10317_v35 = vld [vmem:[#allocation104_spill] sm:$0xff] }
 0x399   : > { %4118 = vadd.xlane.f32.xlu0 %v4117_v21  ;;  %v3924_v50 = vpop.xlane.xlu1 %3923  ;;  %4987 = vst.msk [vmem:[%s8881_s13 + $0x90] sm:$0xf] %vm2902_vm1, %v5790_v49  ;;  %v9476_v33 = vpop.eup %6689  ;;  %v3531_v9 = vsub.f32 %v10317_v35, %v9424_v45  ;;  %v4111_v21 = vsel %vm844_vm0, %v9465_v27, 0.0 }
 0x39a   : > { %v3399_v32 = vpop.xlane.xlu0 %3398  ;;  %v5791_v40 = vpack.c.bf16 %v4348_v29, %v4348_v29  ;;  %6709 = vrcp.f32 %v3924_v50  ;;  %v9482_v57 = vpop.eup %6691  ;;  %v4114_v7 = vsel %vm844_vm0, %v9476_v33, 0.0 }
 0x39b   : > { %6711 = vpow2.f32 %v3767_v43  ;;  %v3781_v43 = vmul.f32 1.442695, %v3534_v46  ;;  %v3537_v0 = vsub.f32 %v10178_v16, %v3399_v32  ;;  %v9489_v44 = vpop.eup %6693  ;;  %v3775_v45 = vmul.f32 1.442695, %v3531_v9 }
 0x39c   : > { %4988 = vst.msk [vmem:[%s8881_s13 + $0x94] sm:$0xf] %vm2902_vm1, %v5791_v40  ;;  %4121 = vadd.xlane.f32.xlu1 %v4120_v62  ;;  %6713 = vpow2.f32 %v3769_v28  ;;  %v4129_v29 = vsel %vm844_vm0, %v9482_v57, 0.0  ;;  %v9495_v50 = vpop.eup %6695  ;;  %v3777_v62 = vmul.f32 1.442695, %v3532_v6 }
 0x39d   : > { %4112 = vadd.xlane.f32.xlu0 %v4111_v21  ;;  %v3402_v49 = vpop.xlane.xlu1 %3401  ;;  %6715 = vpow2.f32 %v3779_v60  ;;  %10319 = vst [vmem:[#allocation36_spill] sm:$0xff] %v9495_v50  ;;  %v3787_v60 = vmul.f32 1.442695, %v3537_v0  ;;  %v4132_v21 = vsel %vm844_vm0, %v9489_v44, 0.0 }
 0x39e   : > { %v3393_v36 = vpop.xlane.xlu0 %3392  ;;  %v3538_v28 = vsub.f32 %v8567_v3, %v3402_v49  ;;  %6717 = vpow2.f32 %v3781_v43  ;;  %v4123_v3 = vsel %vm844_vm0, %v9495_v50, 0.0  ;;  %v10321_v43 = vld [vmem:[#allocation17_spill] sm:$0xff] }
 0x39f   : > { %6719 = vpow2.f32 %v3775_v45  ;;  %v3535_v9 = vsub.f32 %v8556_v34, %v3393_v36  ;;  %v10322_v34 = vld [vmem:[#allocation16_spill] sm:$0xff] }
 0x3a0   : > { %4115 = vadd.xlane.f32.xlu1 %v4114_v7  ;;  %v6698_v23 = vpop.eup %6697  ;;  %v3789_v7 = vmul.f32 1.442695, %v3538_v28 }
 0x3a1   : > { %4130 = vadd.xlane.f32.xlu0 %v4129_v29  ;;  %v3396_v40 = vpop.xlane.xlu1 %3395  ;;  %v9498_v32 = vpop.eup %6699  ;;  %v4353_v46 = vmul.f32 %v6698_v23, %v10320_v15  ;;  %v3783_v28 = vmul.f32 1.442695, %v3535_v9 }
 0x3a2   : > { %v3939_v16 = vpop.xlane.xlu0 %3938  ;;  %v9501_v35 = vpop.eup %6701 }
 0x3a3   : > { %v6704_v39 = vpop.eup %6703  ;;  %v5796_v6 = vpack.c.bf16 %v4353_v46, %v4353_v46  ;;  %6721 = vrcp.f32 %v3939_v16  ;;  %v4126_v16 = vsel %vm844_vm0, %v9498_v32, 0.0  ;;  %v4141_v15 = vsel %vm844_vm0, %v9501_v35, 0.0 }
 0x3a4   : > { %4133 = vadd.xlane.f32.xlu1 %v4132_v21  ;;  %v6706_v49 = vpop.eup %6705  ;;  %6723 = vpow2.f32 %v3777_v62  ;;  %v4354_v0 = vmul.f32 %v6704_v39, %v10321_v43  ;;  %v10323_v21 = vld [vmem:[#allocation112_spill] sm:$0xff]  ;;  %v10324_v43 = vld [vmem:[#allocation58_spill] sm:$0xff] }
 0x3a5   : > { %4124 = vadd.xlane.f32.xlu0 %v4123_v3  ;;  %v3942_v45 = vpop.xlane.xlu1 %3941  ;;  %v9509_v23 = vpop.eup %6707  ;;  %4993 = vst.msk [vmem:[%s8881_s13 + $0xa8] sm:$0xf] %vm2902_vm1, %v5796_v6  ;;  %v4351_v36 = vmul.f32 %v6706_v49, %v10322_v34  ;;  %6725 = vpow2.f32 %v3787_v60  ;;  %v3536_v3 = vsub.f32 %v10323_v21, %v3396_v40 }
 0x3a6   : > { %v3933_v29 = vpop.xlane.xlu0 %3932  ;;  %v5797_v46 = vpack.c.bf16 %v4354_v0, %v4354_v0  ;;  %6727 = vrcp.f32 %v3942_v45 }
 0x3a7   : > { %v6710_v62 = vpop.eup %6709  ;;  %v5794_v6 = vpack.c.bf16 %v4351_v36, %v4351_v36  ;;  %6729 = vrcp.f32 %v3933_v29  ;;  %v3785_v45 = vmul.f32 1.442695, %v3536_v3  ;;  %v4144_v29 = vsel %vm844_vm0, %v9509_v23, 0.0 }
 0x3a8   : > { %v9519_v39 = vpop.eup %6711  ;;  %v4352_v50 = vmul.f32 %v6710_v62, %v10324_v43  ;;  %4127 = vadd.xlane.f32.xlu1 %v4126_v16  ;;  %4994 = vst.msk [vmem:[%s8881_s13 + $0xac] sm:$0xf] %vm2902_vm1, %v5797_v46  ;;  %6731 = vpow2.f32 %v3789_v7 }
 0x3a9   : > { %4142 = vadd.xlane.f32.xlu0 %v4141_v15  ;;  %v3936_v60 = vpop.xlane.xlu1 %3935  ;;  %4991 = vst.msk [vmem:[%s8881_s13 + $0xa0] sm:$0xf] %vm2902_vm1, %v5794_v6  ;;  %v9527_v0 = vpop.eup %6713  ;;  %v4135_v34 = vsel %vm844_vm0, %v9519_v39, 0.0 }
 0x3aa   : > { %v3411_v49 = vpop.xlane.xlu0 %3410  ;;  %v5795_v9 = vpack.c.bf16 %v4352_v50, %v4352_v50  ;;  %6733 = vrcp.f32 %v3936_v60  ;;  %v9533_v36 = vpop.eup %6715  ;;  %v4138_v46 = vsel %vm844_vm0, %v9527_v0, 0.0 }
 0x3ab   : > { %v3541_v40 = vsub.f32 %v8593_v8, %v3411_v49  ;;  %6735 = vpow2.f32 %v3783_v28  ;;  %v9539_v62 = vpop.eup %6717  ;;  %v4153_v28 = vsel %vm844_vm0, %v9533_v36, 0.0 }
 0x3ac   : > { %4992 = vst.msk [vmem:[%s8881_s13 + $0xa4] sm:$0xf] %vm2902_vm1, %v5795_v9  ;;  %4145 = vadd.xlane.f32.xlu1 %v4144_v29  ;;  %6737 = vpow2.f32 %v3785_v45  ;;  %v9545_v21 = vpop.eup %6719  ;;  %v4156_v29 = vsel %vm844_vm0, %v9539_v62, 0.0 }
 0x3ad   : > { %4136 = vadd.xlane.f32.xlu0 %v4135_v34  ;;  %v3414_v50 = vpop.xlane.xlu1 %3413  ;;  %v3795_v16 = vmul.f32 1.442695, %v3541_v40  ;;  %v4147_v34 = vsel %vm844_vm0, %v9545_v21, 0.0 }
 0x3ae   : > { %v3405_v7 = vpop.xlane.xlu0 %3404  ;;  %v3542_v8 = vsub.f32 %v8617_v37, %v3414_v50 }
 0x3af   : > { %v3539_v15 = vsub.f32 %v8608_v5, %v3405_v7  ;;  %v10325_v5 = vld [vmem:[#allocation61_spill] sm:$0xff]  ;;  %6739 = vpow2.f32 %v3795_v16  ;;  %v10326_v16 = vld [vmem:[#allocation62_spill] sm:$0xff] }
 0x3b0   : > { %4139 = vadd.xlane.f32.xlu1 %v4138_v46  ;;  %v6722_v6 = vpop.eup %6721  ;;  %v3797_v43 = vmul.f32 1.442695, %v3542_v8 }
 0x3b1   : > { %v3791_v3 = vmul.f32 1.442695, %v3539_v15  ;;  %4154 = vadd.xlane.f32.xlu0 %v4153_v28  ;;  %v3408_v60 = vpop.xlane.xlu1 %3407  ;;  %v9547_v49 = vpop.eup %6723  ;;  %v4357_v9 = vmul.f32 %v6722_v6, %v10325_v5  ;;  %v10327_v6 = vld [vmem:[#allocation108_spill] sm:$0xff] }
 0x3b2   : > { %v3951_v37 = vpop.xlane.xlu0 %3950  ;;  %v3540_v40 = vsub.f32 %v8634_v58, %v3408_v60  ;;  %v9551_v45 = vpop.eup %6725 }
 0x3b3   : > { %6741 = vpow2.f32 %v3791_v3  ;;  %v6728_v50 = vpop.eup %6727  ;;  %v5800_v7 = vpack.c.bf16 %v4357_v9, %v4357_v9 }
 0x3b4   : > { %v3793_v8 = vmul.f32 1.442695, %v3540_v40  ;;  %6743 = vrcp.f32 %v3951_v37  ;;  %4157 = vadd.xlane.f32.xlu1 %v4156_v29  ;;  %v6730_v15 = vpop.eup %6729  ;;  %v4358_v46 = vmul.f32 %v6728_v50, %v10326_v16  ;;  %v4150_v37 = vsel %vm844_vm0, %v9547_v49, 0.0 }
 0x3b5   : > { %4148 = vadd.xlane.f32.xlu0 %v4147_v34  ;;  %6745 = vpow2.f32 %v3797_v43  ;;  %v3954_v58 = vpop.xlane.xlu1 %3953  ;;  %v9558_v3 = vpop.eup %6731  ;;  %4997 = vst.msk [vmem:[%s8881_s13 + $0xb8] sm:$0xf] %vm2902_vm1, %v5800_v7  ;;  %v4355_v60 = vmul.f32 %v6730_v15, %v10327_v6  ;;  %v4165_v43 = vsel %vm844_vm0, %v9551_v45, 0.0 }
 0x3b6   : > { %v3945_v28 = vpop.xlane.xlu0 %3944  ;;  %6747 = vpow2.f32 %v3793_v8  ;;  %v5801_v9 = vpack.c.bf16 %v4358_v46, %v4358_v46  ;;  %v4168_v15 = vsel %vm844_vm0, %v9558_v3, 0.0 }
 0x3b7   : > { %v6734_v5 = vpop.eup %6733  ;;  %6749 = vrcp.f32 %v3954_v58  ;;  %v5798_v29 = vpack.c.bf16 %v4355_v60, %v4355_v60 }
 0x3b8   : > { %v9567_v40 = vpop.eup %6735  ;;  %v4356_v34 = vmul.f32 %v6734_v5, %v8939_v18  ;;  %6751 = vrcp.f32 %v3945_v28  ;;  %4151 = vadd.xlane.f32.xlu1 %v4150_v37  ;;  %4998 = vst.msk [vmem:[%s8881_s13 + $0xbc] sm:$0xf] %vm2902_vm1, %v5801_v9 }
 0x3b9   : > { %4166 = vadd.xlane.f32.xlu0 %v4165_v43  ;;  %v3948_v50 = vpop.xlane.xlu1 %3947  ;;  %4995 = vst.msk [vmem:[%s8881_s13 + $0xb0] sm:$0xf] %vm2902_vm1, %v5798_v29  ;;  %v4159_v16 = vsel %vm844_vm0, %v9567_v40, 0.0  ;;  %v9578_v46 = vpop.eup %6737 }
 0x3ba   : > { %v3963_v7 = vpop.xlane.xlu0 %3962  ;;  %v5799_v8 = vpack.c.bf16 %v4356_v34, %v4356_v34  ;;  %6753 = vrcp.f32 %v3948_v50  ;;  %v4162_v6 = vsel %vm844_vm0, %v9578_v46, 0.0 }
 0x3bb   : > { %6755 = vrcp.f32 %v3963_v7 }
 0x3bc   : > { %4996 = vst.msk [vmem:[%s8881_s13 + $0xb4] sm:$0xf] %vm2902_vm1, %v5799_v8  ;;  %4169 = vadd.xlane.f32.xlu1 %v4168_v15  ;;  %v9582_v28 = vpop.eup %6739 }
 0x3bd   : > { %4160 = vadd.xlane.f32.xlu0 %v4159_v16  ;;  %v3966_v18 = vpop.xlane.xlu1 %3965  ;;  %10328 = vst [vmem:[#allocation38_spill] sm:$0xff] %v9582_v28 }
 0x3be   : > { %v3957_v58 = vpop.xlane.xlu0 %3956  ;;  %6757 = vrcp.f32 %v3966_v18 }
 0x3bf   : > { %6759 = vrcp.f32 %v3957_v58 }
 0x3c0   : > { %v9586_v60 = vpop.eup %6741  ;;  %4163 = vadd.xlane.f32.xlu1 %v4162_v6  ;;  %v4177_v6 = vsel %vm844_vm0, %v9582_v28, 0.0 }
 0x3c1   : > { %v6744_v5 = vpop.eup %6743  ;;  %v3960_v9 = vpop.xlane.xlu1 %3959  ;;  %v4171_v37 = vsel %vm844_vm0, %v9586_v60, 0.0 }
 0x3c2   : > { %v3975_v43 = vpop.xlane.xlu0 %3974  ;;  %v9590_v29 = vpop.eup %6745  ;;  %v4361_v34 = vmul.f32 %v6744_v5, %v8972_v24  ;;  %6761 = vrcp.f32 %v3960_v9  ;;  %4172 = vadd.xlane.f32.xlu0 %v4171_v37  ;;  %v10329_v5 = vld [vmem:[#allocation19_spill] sm:$0xff] }
 0x3c3   : > { %v9593_v50 = vpop.eup %6747  ;;  %6763 = vrcp.f32 %v3975_v43  ;;  %v4180_v28 = vsel %vm844_vm0, %v9590_v29, 0.0 }
 0x3c4   : > { %v6750_v7 = vpop.eup %6749  ;;  %v5804_v8 = vpack.c.bf16 %v4361_v34, %v4361_v34  ;;  %v4174_v15 = vsel %vm844_vm0, %v9593_v50, 0.0 }
 0x3c5   : > { %v6752_v16 = vpop.eup %6751  ;;  %v4362_v18 = vmul.f32 %v6750_v7, %v8984_v11  ;;  %4175 = vadd.xlane.f32.xlu1 %v4174_v15  ;;  %v3978_v58 = vpop.xlane.xlu1 %3977  ;;  %v10330_v7 = vld [vmem:[#allocation66_spill] sm:$0xff] }
 0x3c6   : > { %v3969_v24 = vpop.xlane.xlu0 %3968  ;;  %5001 = vst.msk [vmem:[%s8881_s13 + $0xc8] sm:$0xf] %vm2902_vm1, %v5804_v8  ;;  %v4359_v9 = vmul.f32 %v6752_v16, %v10329_v5  ;;  %6765 = vrcp.f32 %v3978_v58  ;;  %4178 = vadd.xlane.f32.xlu0 %v4177_v6 }
 0x3c7   : > { %v6754_v37 = vpop.eup %6753  ;;  %v5805_v43 = vpack.c.bf16 %v4362_v18, %v4362_v18  ;;  %6767 = vrcp.f32 %v3969_v24 }
 0x3c8   : > { %v6756_v34 = vpop.eup %6755  ;;  %v5802_v11 = vpack.c.bf16 %v4359_v9, %v4359_v9  ;;  %v4360_v15 = vmul.f32 %v6754_v37, %v10330_v7 }
 0x3c9   : > { %5002 = vst.msk [vmem:[%s8881_s13 + $0xcc] sm:$0xf] %vm2902_vm1, %v5805_v43  ;;  %v4365_v8 = vmul.f32 %v6756_v34, %v8999_v10  ;;  %4181 = vadd.xlane.f32.xlu1 %v4180_v28  ;;  %v3972_v16 = vpop.xlane.xlu1 %3971 }
 0x3ca   : > { %v3987_v58 = vpop.xlane.xlu0 %3986  ;;  %4999 = vst.msk [vmem:[%s8881_s13 + $0xc0] sm:$0xf] %vm2902_vm1, %v5802_v11  ;;  %v5803_v18 = vpack.c.bf16 %v4360_v15, %v4360_v15  ;;  %6769 = vrcp.f32 %v3972_v16 }
 0x3cb   : > { %v6758_v6 = vpop.eup %6757  ;;  %v5808_v24 = vpack.c.bf16 %v4365_v8, %v4365_v8  ;;  %6771 = vrcp.f32 %v3987_v58 }
 0x3cc   : > { %v6760_v5 = vpop.eup %6759  ;;  %5000 = vst.msk [vmem:[%s8881_s13 + $0xc4] sm:$0xf] %vm2902_vm1, %v5803_v18  ;;  %v4366_v9 = vmul.f32 %v6758_v6, %v9010_v17  ;;  %v10331_v17 = vld [vmem:[#allocation21_spill] sm:$0xff] }
 0x3cd   : > { %5005 = vst.msk [vmem:[%s8881_s13 + $0xd8] sm:$0xf] %vm2902_vm1, %v5808_v24  ;;  %v4363_v10 = vmul.f32 %v6760_v5, %v9021_v14  ;;  %v3990_v28 = vpop.xlane.xlu1 %3989  ;;  %v10332_v5 = vld [vmem:[#allocation20_spill] sm:$0xff] }
 0x3ce   : > { %v3981_v37 = vpop.xlane.xlu0 %3980  ;;  %v5809_v43 = vpack.c.bf16 %v4366_v9, %v4366_v9  ;;  %6773 = vrcp.f32 %v3990_v28 }
 0x3cf   : > { %v6762_v34 = vpop.eup %6761  ;;  %v5806_v11 = vpack.c.bf16 %v4363_v10, %v4363_v10  ;;  %6775 = vrcp.f32 %v3981_v37 }
 0x3d0   : > { %v6764_v7 = vpop.eup %6763  ;;  %5006 = vst.msk [vmem:[%s8881_s13 + $0xdc] sm:$0xf] %vm2902_vm1, %v5809_v43  ;;  %v4364_v15 = vmul.f32 %v6762_v34, %v9034_v26  ;;  %v10333_v26 = vld [vmem:[#allocation22_spill] sm:$0xff] }
 0x3d1   : > { %5003 = vst.msk [vmem:[%s8881_s13 + $0xd0] sm:$0xf] %vm2902_vm1, %v5806_v11  ;;  %v4369_v8 = vmul.f32 %v6764_v7, %v10331_v17  ;;  %v3984_v16 = vpop.xlane.xlu1 %3983 }
 0x3d2   : > { %v3999_v14 = vpop.xlane.xlu0 %3998  ;;  %v5807_v58 = vpack.c.bf16 %v4364_v15, %v4364_v15  ;;  %6777 = vrcp.f32 %v3984_v16  ;;  %v10334_v15 = vld [vmem:[#allocation23_spill] sm:$0xff] }
 0x3d3   : > { %v6766_v18 = vpop.eup %6765  ;;  %v5812_v6 = vpack.c.bf16 %v4369_v8, %v4369_v8  ;;  %6779 = vrcp.f32 %v3999_v14 }
 0x3d4   : > { %v6768_v24 = vpop.eup %6767  ;;  %5004 = vst.msk [vmem:[%s8881_s13 + $0xd4] sm:$0xf] %vm2902_vm1, %v5807_v58  ;;  %v4370_v9 = vmul.f32 %v6766_v18, %v10332_v5 }
 0x3d5   : > { %5009 = vst.msk [vmem:[%s8881_s13 + $0xe8] sm:$0xf] %vm2902_vm1, %v5812_v6  ;;  %v4367_v10 = vmul.f32 %v6768_v24, %v10333_v26  ;;  %v4002_v28 = vpop.xlane.xlu1 %4001 }
 0x3d6   : > { %v3993_v37 = vpop.xlane.xlu0 %3992  ;;  %v5813_v43 = vpack.c.bf16 %v4370_v9, %v4370_v9  ;;  %6781 = vrcp.f32 %v4002_v28 }
 0x3d7   : > { %v6770_v34 = vpop.eup %6769  ;;  %v5810_v11 = vpack.c.bf16 %v4367_v10, %v4367_v10  ;;  %6783 = vrcp.f32 %v3993_v37 }
 0x3d8   : > { %v6772_v7 = vpop.eup %6771  ;;  %5010 = vst.msk [vmem:[%s8881_s13 + $0xec] sm:$0xf] %vm2902_vm1, %v5813_v43  ;;  %v4368_v17 = vmul.f32 %v6770_v34, %v10334_v15 }
 0x3d9   : > { %5007 = vst.msk [vmem:[%s8881_s13 + $0xe0] sm:$0xf] %vm2902_vm1, %v5810_v11  ;;  %v4373_v8 = vmul.f32 %v6772_v7, %v9067_v61  ;;  %v3996_v16 = vpop.xlane.xlu1 %3995 }
 0x3da   : > { %v4011_v14 = vpop.xlane.xlu0 %4010  ;;  %v5811_v58 = vpack.c.bf16 %v4368_v17, %v4368_v17  ;;  %6785 = vrcp.f32 %v3996_v16  ;;  %v10335_v16 = vld [vmem:[#allocation25_spill] sm:$0xff] }
 0x3db   : > { %v6774_v18 = vpop.eup %6773  ;;  %v5816_v6 = vpack.c.bf16 %v4373_v8, %v4373_v8  ;;  %6787 = vrcp.f32 %v4011_v14 }
 0x3dc   : > { %v6776_v24 = vpop.eup %6775  ;;  %5008 = vst.msk [vmem:[%s8881_s13 + $0xe4] sm:$0xf] %vm2902_vm1, %v5811_v58  ;;  %v4374_v5 = vmul.f32 %v6774_v18, %v9078_v42 }
 0x3dd   : > { %5013 = vst.msk [vmem:[%s8881_s13 + $0xf8] sm:$0xf] %vm2902_vm1, %v5816_v6  ;;  %v4371_v9 = vmul.f32 %v6776_v24, %v9089_v63  ;;  %v4014_v26 = vpop.xlane.xlu1 %4013 }
 0x3de   : > { %v4005_v61 = vpop.xlane.xlu0 %4004  ;;  %v5817_v10 = vpack.c.bf16 %v4374_v5, %v4374_v5  ;;  %6789 = vrcp.f32 %v4014_v26 }
 0x3df   : > { %v6778_v28 = vpop.eup %6777  ;;  %v5814_v37 = vpack.c.bf16 %v4371_v9, %v4371_v9  ;;  %6791 = vrcp.f32 %v4005_v61 }
 0x3e0   : > { %v6780_v43 = vpop.eup %6779  ;;  %5014 = vst.msk [vmem:[%s8881_s13 + $0xfc] sm:$0xf] %vm2902_vm1, %v5817_v10  ;;  %v4372_v34 = vmul.f32 %v6778_v28, %v9104_v56  ;;  %v10336_v56 = vld [vmem:[#allocation24_spill] sm:$0xff] }
 0x3e1   : > { %5011 = vst.msk [vmem:[%s8881_s13 + $0xf0] sm:$0xf] %vm2902_vm1, %v5814_v37  ;;  %v4377_v42 = vmul.f32 %v6780_v43, %v9110_v52  ;;  %v4008_v11 = vpop.xlane.xlu1 %4007 }
 0x3e2   : > { %v4023_v63 = vpop.xlane.xlu0 %4022  ;;  %v5815_v7 = vpack.c.bf16 %v4372_v34, %v4372_v34  ;;  %6793 = vrcp.f32 %v4008_v11 }
 0x3e3   : > { %v6782_v15 = vpop.eup %6781  ;;  %v5820_v17 = vpack.c.bf16 %v4377_v42, %v4377_v42  ;;  %6795 = vrcp.f32 %v4023_v63 }
 0x3e4   : > { %v6784_v8 = vpop.eup %6783  ;;  %5012 = vst.msk [vmem:[%s8881_s13 + $0xf4] sm:$0xf] %vm2902_vm1, %v5815_v7  ;;  %v4378_v14 = vmul.f32 %v6782_v15, %v10335_v16 }
 0x3e5   : > { %5017 = vst.msk [vmem:[%s8881_s13 + $0x108] sm:$0xf] %vm2902_vm1, %v5820_v17  ;;  %v4375_v58 = vmul.f32 %v6784_v8, %v10336_v56  ;;  %v4026_v18 = vpop.xlane.xlu1 %4025 }
 0x3e6   : > { %v4017_v52 = vpop.xlane.xlu0 %4016  ;;  %v5821_v6 = vpack.c.bf16 %v4378_v14, %v4378_v14  ;;  %6797 = vrcp.f32 %v4026_v18  ;;  %v10338_v14 = vld [vmem:[#allocation73_spill] sm:$0xff] }
 0x3e7   : > { %v6786_v24 = vpop.eup %6785  ;;  %v5818_v5 = vpack.c.bf16 %v4375_v58, %v4375_v58  ;;  %6799 = vrcp.f32 %v4017_v52 }
 0x3e8   : > { %v6788_v9 = vpop.eup %6787  ;;  %5018 = vst.msk [vmem:[%s8881_s13 + $0x10c] sm:$0xf] %vm2902_vm1, %v5821_v6  ;;  %v4376_v26 = vmul.f32 %v6786_v24, %v9134_v51  ;;  %v10337_v51 = vld [vmem:[#allocation70_spill] sm:$0xff] }
 0x3e9   : > { %5015 = vst.msk [vmem:[%s8881_s13 + $0x100] sm:$0xf] %vm2902_vm1, %v5818_v5  ;;  %v4381_v61 = vmul.f32 %v6788_v9, %v9137_v30  ;;  %v4020_v10 = vpop.xlane.xlu1 %4019 }
 0x3ea   : > { %v4035_v28 = vpop.xlane.xlu0 %4034  ;;  %v5819_v37 = vpack.c.bf16 %v4376_v26, %v4376_v26  ;;  %6801 = vrcp.f32 %v4020_v10  ;;  %v10340_v26 = vld [vmem:[#allocation74_spill] sm:$0xff]  ;;  %v10341_v10 = vld [vmem:[#allocation27_spill] sm:$0xff] }
 0x3eb   : > { %v6790_v43 = vpop.eup %6789  ;;  %v5824_v34 = vpack.c.bf16 %v4381_v61, %v4381_v61  ;;  %6803 = vrcp.f32 %v4035_v28 }
 0x3ec   : > { %v6792_v42 = vpop.eup %6791  ;;  %5016 = vst.msk [vmem:[%s8881_s13 + $0x104] sm:$0xf] %vm2902_vm1, %v5819_v37  ;;  %v4382_v11 = vmul.f32 %v6790_v43, %v9146_v59  ;;  %v10339_v59 = vld [vmem:[#allocation26_spill] sm:$0xff] }
 0x3ed   : > { %5021 = vst.msk [vmem:[%s8881_s13 + $0x118] sm:$0xf] %vm2902_vm1, %v5824_v34  ;;  %v4379_v63 = vmul.f32 %v6792_v42, %v10337_v51  ;;  %v4038_v7 = vpop.xlane.xlu1 %4037 }
 0x3ee   : > { %v4029_v30 = vpop.xlane.xlu0 %4028  ;;  %v5825_v15 = vpack.c.bf16 %v4382_v11, %v4382_v11  ;;  %6805 = vrcp.f32 %v4038_v7  ;;  %v10342_v7 = vld [vmem:[#allocation77_spill] sm:$0xff] }
 0x3ef   : > { %v6794_v17 = vpop.eup %6793  ;;  %v5822_v8 = vpack.c.bf16 %v4379_v63, %v4379_v63  ;;  %6807 = vrcp.f32 %v4029_v30 }
 0x3f0   : > { %v6796_v16 = vpop.eup %6795  ;;  %5022 = vst.msk [vmem:[%s8881_s13 + $0x11c] sm:$0xf] %vm2902_vm1, %v5825_v15  ;;  %v4380_v56 = vmul.f32 %v6794_v17, %v10338_v14 }
 0x3f1   : > { %5019 = vst.msk [vmem:[%s8881_s13 + $0x110] sm:$0xf] %vm2902_vm1, %v5822_v8  ;;  %v4385_v58 = vmul.f32 %v6796_v16, %v10339_v59  ;;  %v4032_v18 = vpop.xlane.xlu1 %4031 }
 0x3f2   : > { %v4047_v52 = vpop.xlane.xlu0 %4046  ;;  %v5823_v6 = vpack.c.bf16 %v4380_v56, %v4380_v56  ;;  %6809 = vrcp.f32 %v4032_v18 }
 0x3f3   : > { %v6798_v24 = vpop.eup %6797  ;;  %v5828_v5 = vpack.c.bf16 %v4385_v58, %v4385_v58  ;;  %6811 = vrcp.f32 %v4047_v52 }
 0x3f4   : > { %v6800_v9 = vpop.eup %6799  ;;  %5020 = vst.msk [vmem:[%s8881_s13 + $0x114] sm:$0xf] %vm2902_vm1, %v5823_v6  ;;  %v4386_v61 = vmul.f32 %v6798_v24, %v10340_v26 }
 0x3f5   : > { %5025 = vst.msk [vmem:[%s8881_s13 + $0x128] sm:$0xf] %vm2902_vm1, %v5828_v5  ;;  %v4383_v28 = vmul.f32 %v6800_v9, %v10341_v10  ;;  %v4050_v37 = vpop.xlane.xlu1 %4049 }
 0x3f6   : > { %v4041_v43 = vpop.xlane.xlu0 %4040  ;;  %v5829_v34 = vpack.c.bf16 %v4386_v61, %v4386_v61  ;;  %6813 = vrcp.f32 %v4050_v37 }
 0x3f7   : > { %v6802_v42 = vpop.eup %6801  ;;  %v5826_v11 = vpack.c.bf16 %v4383_v28, %v4383_v28  ;;  %6815 = vrcp.f32 %v4041_v43 }
 0x3f8   : > { %v6804_v51 = vpop.eup %6803  ;;  %5026 = vst.msk [vmem:[%s8881_s13 + $0x12c] sm:$0xf] %vm2902_vm1, %v5829_v34  ;;  %v4384_v63 = vmul.f32 %v6802_v42, %v9192_v2 }
 0x3f9   : > { %5023 = vst.msk [vmem:[%s8881_s13 + $0x120] sm:$0xf] %vm2902_vm1, %v5826_v11  ;;  %v4389_v30 = vmul.f32 %v6804_v51, %v10342_v7  ;;  %v4044_v15 = vpop.xlane.xlu1 %4043 }
 0x3fa   : > { %v4059_v17 = vpop.xlane.xlu0 %4058  ;;  %v5827_v8 = vpack.c.bf16 %v4384_v63, %v4384_v63  ;;  %6817 = vrcp.f32 %v4044_v15 }
 0x3fb   : > { %v6806_v16 = vpop.eup %6805  ;;  %v5832_v14 = vpack.c.bf16 %v4389_v30, %v4389_v30  ;;  %6819 = vrcp.f32 %v4059_v17  ;;  %v10344_v30 = vld [vmem:[#allocation28_spill] sm:$0xff] }
 0x3fc   : > { %v6808_v56 = vpop.eup %6807  ;;  %5024 = vst.msk [vmem:[%s8881_s13 + $0x124] sm:$0xf] %vm2902_vm1, %v5827_v8  ;;  %v4390_v59 = vmul.f32 %v6806_v16, %v9203_v48 }
 0x3fd   : > { %5029 = vst.msk [vmem:[%s8881_s13 + $0x138] sm:$0xf] %vm2902_vm1, %v5832_v14  ;;  %v4387_v2 = vmul.f32 %v6808_v56, %v9214_v20  ;;  %v4062_v58 = vpop.xlane.xlu1 %4061 }
 0x3fe   : > { %v4053_v18 = vpop.xlane.xlu0 %4052  ;;  %v5833_v52 = vpack.c.bf16 %v4390_v59, %v4390_v59  ;;  %6821 = vrcp.f32 %v4062_v58  ;;  %v10346_v58 = vld [vmem:[#allocation31_spill] sm:$0xff] }
 0x3ff   : > { %v6810_v6 = vpop.eup %6809  ;;  %v5830_v24 = vpack.c.bf16 %v4387_v2, %v4387_v2  ;;  %6823 = vrcp.f32 %v4053_v18 }
 0x400   : > { %v6812_v5 = vpop.eup %6811  ;;  %5030 = vst.msk [vmem:[%s8881_s13 + $0x13c] sm:$0xf] %vm2902_vm1, %v5833_v52  ;;  %v4388_v9 = vmul.f32 %v6810_v6, %v9233_v55  ;;  %v10343_v55 = vld [vmem:[#allocation29_spill] sm:$0xff] }
 0x401   : > { %5027 = vst.msk [vmem:[%s8881_s13 + $0x130] sm:$0xf] %vm2902_vm1, %v5830_v24  ;;  %v4393_v48 = vmul.f32 %v6812_v5, %v9243_v41  ;;  %v4056_v26 = vpop.xlane.xlu1 %4055  ;;  %v10347_v52 = vld [vmem:[#allocation33_spill] sm:$0xff] }
 0x402   : > { %v4071_v20 = vpop.xlane.xlu0 %4070  ;;  %v5831_v61 = vpack.c.bf16 %v4388_v9, %v4388_v9  ;;  %6825 = vrcp.f32 %v4056_v26 }
 0x403   : > { %v6814_v10 = vpop.eup %6813  ;;  %v5836_v28 = vpack.c.bf16 %v4393_v48, %v4393_v48  ;;  %6827 = vrcp.f32 %v4071_v20 }
 0x404   : > { %v6816_v37 = vpop.eup %6815  ;;  %5028 = vst.msk [vmem:[%s8881_s13 + $0x134] sm:$0xf] %vm2902_vm1, %v5831_v61  ;;  %v4394_v43 = vmul.f32 %v6814_v10, %v9250_v31  ;;  %v10345_v31 = vld [vmem:[#allocation30_spill] sm:$0xff] }
 0x405   : > { %5033 = vst.msk [vmem:[%s8881_s13 + $0x148] sm:$0xf] %vm2902_vm1, %v5836_v28  ;;  %v4391_v34 = vmul.f32 %v6816_v37, %v10343_v55  ;;  %v4074_v42 = vpop.xlane.xlu1 %4073  ;;  %v10348_v61 = vld [vmem:[#allocation82_spill] sm:$0xff] }
 0x406   : > { %v4065_v41 = vpop.xlane.xlu0 %4064  ;;  %v5837_v11 = vpack.c.bf16 %v4394_v43, %v4394_v43  ;;  %6829 = vrcp.f32 %v4074_v42 }
 0x407   : > { %v6818_v51 = vpop.eup %6817  ;;  %v5834_v63 = vpack.c.bf16 %v4391_v34, %v4391_v34  ;;  %6831 = vrcp.f32 %v4065_v41 }
 0x408   : > { %v6820_v7 = vpop.eup %6819  ;;  %5034 = vst.msk [vmem:[%s8881_s13 + $0x14c] sm:$0xf] %vm2902_vm1, %v5837_v11  ;;  %v4392_v15 = vmul.f32 %v6818_v51, %v10344_v30 }
 0x409   : > { %5031 = vst.msk [vmem:[%s8881_s13 + $0x140] sm:$0xf] %vm2902_vm1, %v5834_v63  ;;  %v4397_v17 = vmul.f32 %v6820_v7, %v10345_v31  ;;  %v4068_v8 = vpop.xlane.xlu1 %4067 }
 0x40a   : > { %v4083_v16 = vpop.xlane.xlu0 %4082  ;;  %v5835_v14 = vpack.c.bf16 %v4392_v15, %v4392_v15  ;;  %6833 = vrcp.f32 %v4068_v8 }
 0x40b   : > { %v6822_v56 = vpop.eup %6821  ;;  %v5840_v59 = vpack.c.bf16 %v4397_v17, %v4397_v17  ;;  %6835 = vrcp.f32 %v4083_v16 }
 0x40c   : > { %v6824_v2 = vpop.eup %6823  ;;  %5032 = vst.msk [vmem:[%s8881_s13 + $0x144] sm:$0xf] %vm2902_vm1, %v5835_v14  ;;  %v4398_v18 = vmul.f32 %v6822_v56, %v10346_v58 }
 0x40d   : > { %5037 = vst.msk [vmem:[%s8881_s13 + $0x158] sm:$0xf] %vm2902_vm1, %v5840_v59  ;;  %v4395_v6 = vmul.f32 %v6824_v2, %v10347_v52  ;;  %v4086_v24 = vpop.xlane.xlu1 %4085  ;;  %v10349_v2 = vld [vmem:[#allocation32_spill] sm:$0xff] }
 0x40e   : > { %v4077_v5 = vpop.xlane.xlu0 %4076  ;;  %v5841_v9 = vpack.c.bf16 %v4398_v18, %v4398_v18  ;;  %6837 = vrcp.f32 %v4086_v24 }
 0x40f   : > { %v6826_v48 = vpop.eup %6825  ;;  %v5838_v26 = vpack.c.bf16 %v4395_v6, %v4395_v6  ;;  %6839 = vrcp.f32 %v4077_v5 }
 0x410   : > { %v6828_v20 = vpop.eup %6827  ;;  %5038 = vst.msk [vmem:[%s8881_s13 + $0x15c] sm:$0xf] %vm2902_vm1, %v5841_v9  ;;  %v4396_v10 = vmul.f32 %v6826_v48, %v10348_v61  ;;  %v10351_v48 = vld [vmem:[#allocation34_spill] sm:$0xff] }
 0x411   : > { %5035 = vst.msk [vmem:[%s8881_s13 + $0x150] sm:$0xf] %vm2902_vm1, %v5838_v26  ;;  %v4401_v28 = vmul.f32 %v6828_v20, %v9309_v25  ;;  %v4080_v37 = vpop.xlane.xlu1 %4079 }
 0x412   : > { %v4095_v43 = vpop.xlane.xlu0 %4094  ;;  %v5839_v55 = vpack.c.bf16 %v4396_v10, %v4396_v10  ;;  %6841 = vrcp.f32 %v4080_v37 }
 0x413   : > { %v6830_v34 = vpop.eup %6829  ;;  %v5844_v42 = vpack.c.bf16 %v4401_v28, %v4401_v28  ;;  %6843 = vrcp.f32 %v4095_v43 }
 0x414   : > { %v6832_v41 = vpop.eup %6831  ;;  %5036 = vst.msk [vmem:[%s8881_s13 + $0x154] sm:$0xf] %vm2902_vm1, %v5839_v55  ;;  %v4402_v11 = vmul.f32 %v6830_v34, %v9320_v1 }
 0x415   : > { %5041 = vst.msk [vmem:[%s8881_s13 + $0x168] sm:$0xf] %vm2902_vm1, %v5844_v42  ;;  %v4399_v51 = vmul.f32 %v6832_v41, %v9329_v22  ;;  %v4098_v63 = vpop.xlane.xlu1 %4097 }
 0x416   : > { %v4089_v25 = vpop.xlane.xlu0 %4088  ;;  %v5845_v7 = vpack.c.bf16 %v4402_v11, %v4402_v11  ;;  %6845 = vrcp.f32 %v4098_v63 }
 0x417   : > { %v6834_v30 = vpop.eup %6833  ;;  %v5842_v15 = vpack.c.bf16 %v4399_v51, %v4399_v51  ;;  %6847 = vrcp.f32 %v4089_v25 }
 0x418   : > { %v6836_v31 = vpop.eup %6835  ;;  %5042 = vst.msk [vmem:[%s8881_s13 + $0x16c] sm:$0xf] %vm2902_vm1, %v5845_v7  ;;  %v4400_v17 = vmul.f32 %v6834_v30, %v9342_v54  ;;  %v10350_v54 = vld [vmem:[#allocation85_spill] sm:$0xff] }
 0x419   : > { %5039 = vst.msk [vmem:[%s8881_s13 + $0x160] sm:$0xf] %vm2902_vm1, %v5842_v15  ;;  %v4405_v1 = vmul.f32 %v6836_v31, %v9348_v4  ;;  %v4092_v8 = vpop.xlane.xlu1 %4091 }
 0x41a   : > { %v4107_v22 = vpop.xlane.xlu0 %4106  ;;  %v5843_v16 = vpack.c.bf16 %v4400_v17, %v4400_v17  ;;  %6849 = vrcp.f32 %v4092_v8 }
 0x41b   : > { %v6838_v14 = vpop.eup %6837  ;;  %v5848_v56 = vpack.c.bf16 %v4405_v1, %v4405_v1  ;;  %6851 = vrcp.f32 %v4107_v22  ;;  %v10353_v22 = vld [vmem:[#allocation35_spill] sm:$0xff] }
 0x41c   : > { %v6840_v59 = vpop.eup %6839  ;;  %5040 = vst.msk [vmem:[%s8881_s13 + $0x164] sm:$0xf] %vm2902_vm1, %v5843_v16  ;;  %v4406_v58 = vmul.f32 %v6838_v14, %v10349_v2 }
 0x41d   : > { %5045 = vst.msk [vmem:[%s8881_s13 + $0x178] sm:$0xf] %vm2902_vm1, %v5848_v56  ;;  %v4403_v18 = vmul.f32 %v6840_v59, %v10350_v54  ;;  %v4110_v52 = vpop.xlane.xlu1 %4109 }
 0x41e   : > { %v4101_v4 = vpop.xlane.xlu0 %4100  ;;  %v5849_v6 = vpack.c.bf16 %v4406_v58, %v4406_v58  ;;  %6853 = vrcp.f32 %v4110_v52  ;;  %v10355_v52 = vld [vmem:[#allocation37_spill] sm:$0xff] }
 0x41f   : > { %v6842_v24 = vpop.eup %6841  ;;  %v5846_v5 = vpack.c.bf16 %v4403_v18, %v4403_v18  ;;  %6855 = vrcp.f32 %v4101_v4 }
 0x420   : > { %v6844_v9 = vpop.eup %6843  ;;  %5046 = vst.msk [vmem:[%s8881_s13 + $0x17c] sm:$0xf] %vm2902_vm1, %v5849_v6  ;;  %v4404_v26 = vmul.f32 %v6842_v24, %v10351_v48 }
 0x421   : > { %5043 = vst.msk [vmem:[%s8881_s13 + $0x170] sm:$0xf] %vm2902_vm1, %v5846_v5  ;;  %v4409_v20 = vmul.f32 %v6844_v9, %v9375_v38  ;;  %v4104_v61 = vpop.xlane.xlu1 %4103 }
 0x422   : > { %v4119_v10 = vpop.xlane.xlu0 %4118  ;;  %v5847_v28 = vpack.c.bf16 %v4404_v26, %v4404_v26  ;;  %6857 = vrcp.f32 %v4104_v61 }
 0x423   : > { %v6846_v37 = vpop.eup %6845  ;;  %v5852_v43 = vpack.c.bf16 %v4409_v20, %v4409_v20  ;;  %6859 = vrcp.f32 %v4119_v10 }
 0x424   : > { %v6848_v55 = vpop.eup %6847  ;;  %5044 = vst.msk [vmem:[%s8881_s13 + $0x174] sm:$0xf] %vm2902_vm1, %v5847_v28  ;;  %v4410_v34 = vmul.f32 %v6846_v37, %v9386_v47  ;;  %v10352_v47 = vld [vmem:[#allocation86_spill] sm:$0xff] }
 0x425   : > { %5049 = vst.msk [vmem:[%s8881_s13 + $0x188] sm:$0xf] %vm2902_vm1, %v5852_v43  ;;  %v4407_v42 = vmul.f32 %v6848_v55, %v9397_v19  ;;  %v4122_v41 = vpop.xlane.xlu1 %4121 }
 0x426   : > { %v4113_v38 = vpop.xlane.xlu0 %4112  ;;  %v5853_v11 = vpack.c.bf16 %v4410_v34, %v4410_v34  ;;  %6861 = vrcp.f32 %v4122_v41 }
 0x427   : > { %v6850_v51 = vpop.eup %6849  ;;  %v5850_v63 = vpack.c.bf16 %v4407_v42, %v4407_v42  ;;  %6863 = vrcp.f32 %v4113_v38 }
 0x428   : > { %v6852_v25 = vpop.eup %6851  ;;  %5050 = vst.msk [vmem:[%s8881_s13 + $0x18c] sm:$0xf] %vm2902_vm1, %v5853_v11  ;;  %v4408_v7 = vmul.f32 %v6850_v51, %v9410_v53  ;;  %v10354_v53 = vld [vmem:[#allocation89_spill] sm:$0xff] }
 0x429   : > { %5047 = vst.msk [vmem:[%s8881_s13 + $0x180] sm:$0xf] %vm2902_vm1, %v5850_v63  ;;  %v4413_v30 = vmul.f32 %v6852_v25, %v10352_v47  ;;  %v4116_v15 = vpop.xlane.xlu1 %4115 }
 0x42a   : > { %v4131_v19 = vpop.xlane.xlu0 %4130  ;;  %v5851_v31 = vpack.c.bf16 %v4408_v7, %v4408_v7  ;;  %6865 = vrcp.f32 %v4116_v15 }
 0x42b   : > { %v6854_v17 = vpop.eup %6853  ;;  %v5856_v1 = vpack.c.bf16 %v4413_v30, %v4413_v30  ;;  %6867 = vrcp.f32 %v4131_v19 }
 0x42c   : > { %v6856_v8 = vpop.eup %6855  ;;  %5048 = vst.msk [vmem:[%s8881_s13 + $0x184] sm:$0xf] %vm2902_vm1, %v5851_v31  ;;  %v4414_v16 = vmul.f32 %v6854_v17, %v10353_v22 }
 0x42d   : > { %5053 = vst.msk [vmem:[%s8881_s13 + $0x198] sm:$0xf] %vm2902_vm1, %v5856_v1  ;;  %v4411_v14 = vmul.f32 %v6856_v8, %v10354_v53  ;;  %v4134_v56 = vpop.xlane.xlu1 %4133 }
 0x42e   : > { %v4125_v59 = vpop.xlane.xlu0 %4124  ;;  %v5857_v2 = vpack.c.bf16 %v4414_v16, %v4414_v16  ;;  %6869 = vrcp.f32 %v4134_v56 }
 0x42f   : > { %v6858_v58 = vpop.eup %6857  ;;  %v5854_v54 = vpack.c.bf16 %v4411_v14, %v4411_v14  ;;  %6871 = vrcp.f32 %v4125_v59 }
 0x430   : > { %v6860_v18 = vpop.eup %6859  ;;  %5054 = vst.msk [vmem:[%s8881_s13 + $0x19c] sm:$0xf] %vm2902_vm1, %v5857_v2  ;;  %v4412_v4 = vmul.f32 %v6858_v58, %v10355_v52 }
 0x431   : > { %5051 = vst.msk [vmem:[%s8881_s13 + $0x190] sm:$0xf] %vm2902_vm1, %v5854_v54  ;;  %v4417_v6 = vmul.f32 %v6860_v18, %v9443_v12  ;;  %v4128_v24 = vpop.xlane.xlu1 %4127 }
 0x432   : > { %v4143_v5 = vpop.xlane.xlu0 %4142  ;;  %v5855_v9 = vpack.c.bf16 %v4412_v4, %v4412_v4  ;;  %6873 = vrcp.f32 %v4128_v24 }
 0x433   : > { %v6862_v48 = vpop.eup %6861  ;;  %v5860_v26 = vpack.c.bf16 %v4417_v6, %v4417_v6  ;;  %6875 = vrcp.f32 %v4143_v5 }
 0x434   : > { %v6864_v20 = vpop.eup %6863  ;;  %5052 = vst.msk [vmem:[%s8881_s13 + $0x194] sm:$0xf] %vm2902_vm1, %v5855_v9  ;;  %v4418_v61 = vmul.f32 %v6862_v48, %v9454_v13 }
 0x435   : > { %5057 = vst.msk [vmem:[%s8881_s13 + $0x1a8] sm:$0xf] %vm2902_vm1, %v5860_v26  ;;  %v4415_v10 = vmul.f32 %v6864_v20, %v9465_v27  ;;  %v4146_v28 = vpop.xlane.xlu1 %4145 }
 0x436   : > { %v4137_v12 = vpop.xlane.xlu0 %4136  ;;  %v5861_v37 = vpack.c.bf16 %v4418_v61, %v4418_v61  ;;  %6877 = vrcp.f32 %v4146_v28 }
 0x437   : > { %v6866_v43 = vpop.eup %6865  ;;  %v5858_v55 = vpack.c.bf16 %v4415_v10, %v4415_v10  ;;  %6879 = vrcp.f32 %v4137_v12 }
 0x438   : > { %v6868_v34 = vpop.eup %6867  ;;  %5058 = vst.msk [vmem:[%s8881_s13 + $0x1ac] sm:$0xf] %vm2902_vm1, %v5861_v37  ;;  %v4416_v42 = vmul.f32 %v6866_v43, %v9476_v33  ;;  %v10356_v33 = vld [vmem:[#allocation36_spill] sm:$0xff] }
 0x439   : > { %5055 = vst.msk [vmem:[%s8881_s13 + $0x1a0] sm:$0xf] %vm2902_vm1, %v5858_v55  ;;  %v4421_v13 = vmul.f32 %v6868_v34, %v9482_v57  ;;  %v4140_v41 = vpop.xlane.xlu1 %4139 }
 0x43a   : > { %v4155_v27 = vpop.xlane.xlu0 %4154  ;;  %v5859_v38 = vpack.c.bf16 %v4416_v42, %v4416_v42  ;;  %6881 = vrcp.f32 %v4140_v41 }
 0x43b   : > { %v6870_v11 = vpop.eup %6869  ;;  %v5864_v51 = vpack.c.bf16 %v4421_v13, %v4421_v13  ;;  %6883 = vrcp.f32 %v4155_v27 }
 0x43c   : > { %v6872_v63 = vpop.eup %6871  ;;  %5056 = vst.msk [vmem:[%s8881_s13 + $0x1a4] sm:$0xf] %vm2902_vm1, %v5859_v38  ;;  %v4422_v25 = vmul.f32 %v6870_v11, %v9489_v44 }
 0x43d   : > { %5061 = vst.msk [vmem:[%s8881_s13 + $0x1b8] sm:$0xf] %vm2902_vm1, %v5864_v51  ;;  %v4419_v7 = vmul.f32 %v6872_v63, %v10356_v33  ;;  %v4158_v47 = vpop.xlane.xlu1 %4157  ;;  %v10357_v33 = vld [vmem:[#allocation38_spill] sm:$0xff] }
 0x43e   : > { %v4149_v57 = vpop.xlane.xlu0 %4148  ;;  %v5865_v30 = vpack.c.bf16 %v4422_v25, %v4422_v25  ;;  %6885 = vrcp.f32 %v4158_v47 }
 0x43f   : > { %v6874_v15 = vpop.eup %6873  ;;  %v5862_v19 = vpack.c.bf16 %v4419_v7, %v4419_v7  ;;  %6887 = vrcp.f32 %v4149_v57 }
 0x440   : > { %v6876_v31 = vpop.eup %6875  ;;  %5062 = vst.msk [vmem:[%s8881_s13 + $0x1bc] sm:$0xf] %vm2902_vm1, %v5865_v30  ;;  %v4420_v17 = vmul.f32 %v6874_v15, %v9498_v32 }
 0x441   : > { %5059 = vst.msk [vmem:[%s8881_s13 + $0x1b0] sm:$0xf] %vm2902_vm1, %v5862_v19  ;;  %v4425_v44 = vmul.f32 %v6876_v31, %v9501_v35  ;;  %v4152_v1 = vpop.xlane.xlu1 %4151 }
 0x442   : > { %v4167_v8 = vpop.xlane.xlu0 %4166  ;;  %v5863_v22 = vpack.c.bf16 %v4420_v17, %v4420_v17  ;;  %6889 = vrcp.f32 %v4152_v1 }
 0x443   : > { %v6878_v16 = vpop.eup %6877  ;;  %v5868_v53 = vpack.c.bf16 %v4425_v44, %v4425_v44  ;;  %6891 = vrcp.f32 %v4167_v8 }
 0x444   : > { %v6880_v14 = vpop.eup %6879  ;;  %5060 = vst.msk [vmem:[%s8881_s13 + $0x1b4] sm:$0xf] %vm2902_vm1, %v5863_v22  ;;  %v4426_v56 = vmul.f32 %v6878_v16, %v9509_v23 }
 0x445   : > { %5065 = vst.msk [vmem:[%s8881_s13 + $0x1c8] sm:$0xf] %vm2902_vm1, %v5868_v53  ;;  %v4423_v32 = vmul.f32 %v6880_v14, %v9519_v39  ;;  %v4170_v59 = vpop.xlane.xlu1 %4169 }
 0x446   : > { %v4161_v35 = vpop.xlane.xlu0 %4160  ;;  %v5869_v2 = vpack.c.bf16 %v4426_v56, %v4426_v56  ;;  %6893 = vrcp.f32 %v4170_v59 }
 0x447   : > { %v6882_v58 = vpop.eup %6881  ;;  %v5866_v54 = vpack.c.bf16 %v4423_v32, %v4423_v32  ;;  %6895 = vrcp.f32 %v4161_v35 }
 0x448   : > { %v6884_v18 = vpop.eup %6883  ;;  %5066 = vst.msk [vmem:[%s8881_s13 + $0x1cc] sm:$0xf] %vm2902_vm1, %v5869_v2  ;;  %v4424_v52 = vmul.f32 %v6882_v58, %v9527_v0 }
 0x449   : > { %5063 = vst.msk [vmem:[%s8881_s13 + $0x1c0] sm:$0xf] %vm2902_vm1, %v5866_v54  ;;  %v4429_v23 = vmul.f32 %v6884_v18, %v9533_v36  ;;  %v4164_v4 = vpop.xlane.xlu1 %4163 }
 0x44a   : > { %v5867_v39 = vpack.c.bf16 %v4424_v52, %v4424_v52  ;;  %6897 = vrcp.f32 %v4164_v4 }
 0x44b   : > { %v6886_v6 = vpop.eup %6885  ;;  %v5872_v24 = vpack.c.bf16 %v4429_v23, %v4429_v23  ;;  %v4173_v5 = vpop.xlane.xlu0 %4172 }
 0x44c   : > { %v6888_v9 = vpop.eup %6887  ;;  %5064 = vst.msk [vmem:[%s8881_s13 + $0x1c4] sm:$0xf] %vm2902_vm1, %v5867_v39  ;;  %v4430_v48 = vmul.f32 %v6886_v6, %v9539_v62  ;;  %6899 = vrcp.f32 %v4173_v5 }
 0x44d   : > { %5069 = vst.msk [vmem:[%s8881_s13 + $0x1d8] sm:$0xf] %vm2902_vm1, %v5872_v24  ;;  %v4427_v0 = vmul.f32 %v6888_v9, %v9545_v21 }
 0x44e   : > { %v5873_v26 = vpack.c.bf16 %v4430_v48, %v4430_v48  ;;  %v4176_v36 = vpop.xlane.xlu1 %4175 }
 0x44f   : > { %v6890_v20 = vpop.eup %6889  ;;  %v5870_v61 = vpack.c.bf16 %v4427_v0, %v4427_v0  ;;  %6901 = vrcp.f32 %v4176_v36  ;;  %v4179_v10 = vpop.xlane.xlu0 %4178 }
 0x450   : > { %v6892_v28 = vpop.eup %6891  ;;  %5070 = vst.msk [vmem:[%s8881_s13 + $0x1dc] sm:$0xf] %vm2902_vm1, %v5873_v26  ;;  %v4428_v12 = vmul.f32 %v6890_v20, %v9547_v49  ;;  %6903 = vrcp.f32 %v4179_v10 }
 0x451   : > { %5067 = vst.msk [vmem:[%s8881_s13 + $0x1d0] sm:$0xf] %vm2902_vm1, %v5870_v61  ;;  %v4433_v62 = vmul.f32 %v6892_v28, %v9551_v45 }
 0x452   : > { %v5871_v21 = vpack.c.bf16 %v4428_v12, %v4428_v12  ;;  %v4182_v37 = vpop.xlane.xlu1 %4181 }
 0x453   : > { %v6894_v43 = vpop.eup %6893  ;;  %v5876_v55 = vpack.c.bf16 %v4433_v62, %v4433_v62  ;;  %6905 = vrcp.f32 %v4182_v37 }
 0x454   : > { %v6896_v34 = vpop.eup %6895  ;;  %5068 = vst.msk [vmem:[%s8881_s13 + $0x1d4] sm:$0xf] %vm2902_vm1, %v5871_v21  ;;  %v4434_v42 = vmul.f32 %v6894_v43, %v9558_v3 }
 0x455   : > { %5073 = vst.msk [vmem:[%s8881_s13 + $0x1e8] sm:$0xf] %vm2902_vm1, %v5876_v55  ;;  %v4431_v49 = vmul.f32 %v6896_v34, %v9567_v40 }
 0x456   : > { %v5877_v13 = vpack.c.bf16 %v4434_v42, %v4434_v42 }
 0x457   : > { %v6898_v41 = vpop.eup %6897  ;;  %v5874_v45 = vpack.c.bf16 %v4431_v49, %v4431_v49 }
 0x458   : > { %5074 = vst.msk [vmem:[%s8881_s13 + $0x1ec] sm:$0xf] %vm2902_vm1, %v5877_v13  ;;  %v4432_v27 = vmul.f32 %v6898_v41, %v9578_v46 }
 0x459   : > { %v6900_v38 = vpop.eup %6899  ;;  %5071 = vst.msk [vmem:[%s8881_s13 + $0x1e0] sm:$0xf] %vm2902_vm1, %v5874_v45 }
 0x45a   : > { %v5875_v11 = vpack.c.bf16 %v4432_v27, %v4432_v27  ;;  %v4435_v3 = vmul.f32 %v6900_v38, %v9586_v60 }
 0x45c   : > { %v6902_v51 = vpop.eup %6901  ;;  %5072 = vst.msk [vmem:[%s8881_s13 + $0x1e4] sm:$0xf] %vm2902_vm1, %v5875_v11  ;;  %v5878_v40 = vpack.c.bf16 %v4435_v3, %v4435_v3 }
 0x45d   : > { %v6904_v63 = vpop.eup %6903  ;;  %v4436_v25 = vmul.f32 %v6902_v51, %v9593_v50 }
 0x45e   : > { %5075 = vst.msk [vmem:[%s8881_s13 + $0x1f0] sm:$0xf] %vm2902_vm1, %v5878_v40  ;;  %v4437_v7 = vmul.f32 %v6904_v63, %v10357_v33 }
 0x45f   : > { %v5879_v46 = vpack.c.bf16 %v4436_v25, %v4436_v25 }
 0x460   : > { %v6906_v47 = vpop.eup %6905  ;;  %v5880_v57 = vpack.c.bf16 %v4437_v7, %v4437_v7 }
 0x461   : > { %5076 = vst.msk [vmem:[%s8881_s13 + $0x1f4] sm:$0xf] %vm2902_vm1, %v5879_v46  ;;  %v4438_v30 = vmul.f32 %v6906_v47, %v9590_v29 }
 0x462   : > { %5077 = vst.msk [vmem:[%s8881_s13 + $0x1f8] sm:$0xf] %vm2902_vm1, %v5880_v57 }
 0x463   : > { %v5881_v60 = vpack.c.bf16 %v4438_v30, %v4438_v30 }
 0x465   : > { %5078 = vst.msk [vmem:[%s8881_s13 + $0x1fc] sm:$0xf] %vm2902_vm1, %v5881_v60 }
 0x466 PF: > { %s24_s29 = sadd.s32 1, %s6929_s29  }
 0x467   : > { %p21_p13 = scmp.ge.s32.totalorder %s24_s29, 4  }
 0x469   :  { %23 = sbr.rel (!%p21_p13) target bundleno = 16 (0x10), region = 94 }

</bundles_post_ra>
